<compile_context>
chip_gen: v6e
topology: v6e:2x2x1
jax: 0.10.0
libtpu: 0.0.40
codegen_flags: <defaults>
</compile_context>

<pallas_src>
import jax
import jax.numpy as jnp
from jax.experimental import pallas as pl
from jax.experimental.pallas import tpu as pltpu


def _round_up(x, m):
    return ((x + m - 1) // m) * m


# ----------------------------------------------------------------------------
# Kernel 1: fused phone-level pipeline (3 predictors + 2 embed-adds)
# ----------------------------------------------------------------------------
def _variance_phone_kernel(ctrl_ref,                    # (2,) f32 SMEM: (ctl_energy, ctl_pitch)
                           x_ref,                       # (1, T, C) f32
                           mcol_ref, mrow_ref,          # (1, T, 1) f32, (1, 1, T) f32
                           cw_ref,                      # (3, L, K*C, C) bf16 (im2col layout)
                           cb_ref, g_ref, be_ref,       # (3, L, C) f32 each
                           lw_ref, lb_ref,              # (3, C) f32, (3, 1) f32
                           bins_ref,                    # (2, NBP) f32 (+inf padded)
                           tab_ref,                     # (2, NB, C) f32
                           xo_ref,                      # (1, T, C) f32
                           ep_ref, pp_ref, ld_ref,      # (1, 1, T) f32 each (lane-dense)
                           hp_ref):                     # scratch (>= T + K - 1, C) f32
    T = x_ref.shape[1]
    C = x_ref.shape[2]
    L = cb_ref.shape[1]
    K = cw_ref.shape[2] // C
    pad = (K - 1) // 2
    NB = tab_ref.shape[1]

    mask_col = mcol_ref[0]                               # (T, 1)
    mask_row = mrow_ref[0]                               # (1, T)

    # Zero only the halo rows once; interior rows are fully rewritten every layer.
    if pad > 0:
        hp_ref[0:pad, :] = jnp.zeros((pad, C), jnp.float32)
        hp_ref[pad + T:pad + T + pad, :] = jnp.zeros((pad, C), jnp.float32)

    def predictor(h, pidx, ctrl, need_col):
        # n_layers x [Conv1d(k, 'same') -> ReLU -> LayerNorm]; dropout = identity (inference).
        for layer in range(L):
            hp_ref[pad:pad + T, :] = h
            # im2col: K shifted views laid side by side -> one bf16 MXU matmul per layer.
            if K > 1:
                cols = jnp.concatenate([hp_ref[k:k + T, :] for k in range(K)],
                                       axis=-1)                                   # (T, K*C)
            else:
                cols = h
            acc = jnp.dot(cols.astype(jnp.bfloat16), cw_ref[pidx, layer],
                          preferred_element_type=jnp.float32)                     # (T, C)
            acc = jnp.maximum(acc + cb_ref[pidx, layer][None, :], 0.0)            # bias + ReLU
            mu = jnp.mean(acc, axis=-1, keepdims=True)                            # LN (f32)
            cen = acc - mu
            var = jnp.mean(cen * cen, axis=-1, keepdims=True)
            h = (cen * jax.lax.rsqrt(var + 1e-5) * g_ref[pidx, layer][None, :]
                 + be_ref[pidx, layer][None, :])
        lw_row = lw_ref[pidx][None, :]                                            # (1, C)
        bias = lb_ref[pidx]                                                       # (1,)
        # Lane-dense row form for the (1, T) output block (1-row MXU matmul).
        row = jax.lax.dot_general(lw_row, h, (((1,), (1,)), ((), ())),
                                  preferred_element_type=jnp.float32)             # (1, T)
        row = (row + bias) * mask_row * ctrl
        col = None
        if need_col:
            # Column form feeds the bucketize/one-hot path: VPU multiply + lane reduce
            # (avoids a width-1 MXU matmul result).
            col = (jnp.sum(h * lw_row, axis=-1, keepdims=True) + bias) * mask_col * ctrl
        return col, row

    def embed_add(h, pred_col, bidx):
        # torch.bucketize(v, bins) == #{bins < v}; bins padded with +inf -> unmasked compare.
        cmp = (bins_ref[bidx][None, :] < pred_col).astype(jnp.int32)              # (T, NBP)
        buckets = jnp.sum(cmp, axis=-1, keepdims=True)                            # (T, 1)
        onehot = (jax.lax.broadcasted_iota(jnp.int32, (T, NB), 1) == buckets
                  ).astype(jnp.float32)
        emb = jnp.dot(onehot, tab_ref[bidx], preferred_element_type=jnp.float32)  # (T, C)
        return h + emb

    x0 = x_ref[0]                                                                 # (T, C)
    e_col, e_row = predictor(x0, 0, ctrl_ref[0], need_col=True)   # energy (control-scaled)
    x1 = embed_add(x0, e_col, 0)
    p_col, p_row = predictor(x1, 1, ctrl_ref[1], need_col=True)   # pitch (control-scaled)
    x2 = embed_add(x1, p_col, 1)
    _, d_row = predictor(x2, 2, 1.0, need_col=False)              # log duration

    xo_ref[0] = x2
    ep_ref[0] = e_row
    pp_ref[0] = p_row
    ld_ref[0] = d_row


def variance_phone_fused(params, x, src_mask, control_energy, control_pitch):
    """x: (B,T,C) f32, src_mask: (B,T) (1 = valid).
    Returns (x + energy_emb + pitch_emb, energy_pred (B,T), pitch_pred (B,T), log_dur (B,T))."""
    B, T, C = x.shape
    L = params["cb"].shape[1]
    KC = params["cw"].shape[2]
    K = KC // C
    NBP = params["bins"].shape[1]
    NB = params["tab"].shape[1]

    ctrl = jnp.asarray([control_energy, control_pitch], jnp.float32)       # (2,) -> SMEM
    m = src_mask.astype(jnp.float32)
    mask_col = m[:, :, None]                                               # (B, T, 1)
    mask_row = m[:, None, :]                                               # (B, 1, T)

    halo_rows = _round_up(T + K - 1, 8)                                    # sublane-aligned

    out_shapes = (
        jax.ShapeDtypeStruct((B, T, C), jnp.float32),   # x after both residual adds
        jax.ShapeDtypeStruct((B, 1, T), jnp.float32),   # energy prediction (lane-dense)
        jax.ShapeDtypeStruct((B, 1, T), jnp.float32),   # pitch prediction
        jax.ShapeDtypeStruct((B, 1, T), jnp.float32),   # log duration prediction
    )
    grid_spec = pltpu.PrefetchScalarGridSpec(
        num_scalar_prefetch=0,
        grid=(B,),
        in_specs=[
            pl.BlockSpec(memory_space=pltpu.MemorySpace.SMEM),             # ctrl scalars
            pl.BlockSpec((1, T, C), lambda b: (b, 0, 0)),
            pl.BlockSpec((1, T, 1), lambda b: (b, 0, 0)),
            pl.BlockSpec((1, 1, T), lambda b: (b, 0, 0)),
            pl.BlockSpec((3, L, KC, C), lambda b: (0, 0, 0, 0)),           # grid-invariant
            pl.BlockSpec((3, L, C), lambda b: (0, 0, 0)),
            pl.BlockSpec((3, L, C), lambda b: (0, 0, 0)),
            pl.BlockSpec((3, L, C), lambda b: (0, 0, 0)),
            pl.BlockSpec((3, C), lambda b: (0, 0)),
            pl.BlockSpec((3, 1), lambda b: (0, 0)),
            pl.BlockSpec((2, NBP), lambda b: (0, 0)),
            pl.BlockSpec((2, NB, C), lambda b: (0, 0, 0)),
        ],
        out_specs=[
            pl.BlockSpec((1, T, C), lambda b: (b, 0, 0)),
            pl.BlockSpec((1, 1, T), lambda b: (b, 0, 0)),
            pl.BlockSpec((1, 1, T), lambda b: (b, 0, 0)),
            pl.BlockSpec((1, 1, T), lambda b: (b, 0, 0)),
        ],
        scratch_shapes=[pltpu.VMEM((halo_rows, C), jnp.float32)],
    )
    x_out, e_pred, p_pred, log_d = pl.pallas_call(
        _variance_phone_kernel,
        out_shape=out_shapes,
        grid_spec=grid_spec,
        compiler_params=pltpu.CompilerParams(dimension_semantics=("parallel",)),
    )(ctrl, x, mask_col, mask_row,
      params["cw"], params["cb"], params["gamma"], params["beta"],
      params["lw"], params["lb"], params["bins"], params["tab"])
    return x_out, e_pred[:, 0, :], p_pred[:, 0, :], log_d[:, 0, :]


# ----------------------------------------------------------------------------
# Kernel 2: LengthRegulator (repeat_interleave as tiled one-hot gather matmul)
# ----------------------------------------------------------------------------
def _length_regulator_kernel(x_ref, starts_ref, ends_ref, out_ref):
    # x_ref: (1, T, C) f32   starts/ends: (1, T, 1) int32   out_ref: (1, TM, C) f32
    T = x_ref.shape[1]
    TM = out_ref.shape[1]
    base = pl.program_id(1) * TM
    m_idx = base + jax.lax.broadcasted_iota(jnp.int32, (T, TM), 1)      # global frame indices
    onehot = jnp.logical_and(m_idx >= starts_ref[0],
                             m_idx < ends_ref[0]).astype(jnp.float32)   # (T, TM)
    # out[m, :] = x[phone(m), :]  (gather as an f32 matmul so values are copied exactly —
    # exactly one nonzero per output frame, so the multiply/add path is lossless)
    out_ref[0] = jax.lax.dot_general(onehot, x_ref[0], (((0,), (0,)), ((), ())),
                                     preferred_element_type=jnp.float32)


def length_regulate(x, durations, max_length, frame_tile=None):
    """x: (B,T,C) f32, durations: (B,T) int -> (out (B,M,C) f32, mask (B,M) bool)."""
    B, T, C = x.shape
    M = int(max_length)
    if frame_tile is None:
        frame_tile = M if M <= 256 else 256
    assert M % frame_tile == 0, "max_length must be a multiple of frame_tile"

    dur = durations.astype(jnp.int32)
    ends = jnp.cumsum(dur, axis=1)          # phone frame boundaries, in plain JAX (cheap glue)
    starts = ends - dur

    out = pl.pallas_call(
        _length_regulator_kernel,
        out_shape=jax.ShapeDtypeStruct((B, M, C), jnp.float32),
        grid_spec=pltpu.PrefetchScalarGridSpec(
            num_scalar_prefetch=0,
            grid=(B, M // frame_tile),
            in_specs=[
                pl.BlockSpec((1, T, C), lambda b, m: (b, 0, 0)),
                pl.BlockSpec((1, T, 1), lambda b, m: (b, 0, 0)),
                pl.BlockSpec((1, T, 1), lambda b, m: (b, 0, 0)),
            ],
            out_specs=pl.BlockSpec((1, frame_tile, C), lambda b, m: (b, m, 0)),
        ),
        compiler_params=pltpu.CompilerParams(
            dimension_semantics=("parallel", "parallel")),
    )(x, starts[:, :, None], ends[:, :, None])

    lengths = ends[:, -1]                                               # total frames per item
    tgt_mask = jnp.arange(M, dtype=jnp.int32)[None, :] < lengths[:, None]
    return out, tgt_mask


# ----------------------------------------------------------------------------
# VarianceAdaptor forward (inference path, phone-level pitch & energy)
# ----------------------------------------------------------------------------
def variance_adaptor_forward(params, encoder_output, src_mask, max_mel_len,
                             control_energy=1.0, control_pitch=1.0, control_duration=1.0,
                             frame_tile=None):
    x_out, energy_prediction, pitch_prediction, log_d = variance_phone_fused(
        params, encoder_output, src_mask, control_energy, control_pitch)

    # torch: clamp(round(exp(log_d) - 1) * control.duration, min=0).int()
    duration_rounded = jnp.maximum(
        jnp.round(jnp.exp(log_d) - 1.0) * control_duration, 0.0).astype(jnp.int32)

    x_up, tgt_mask = length_regulate(x_out, duration_rounded, max_mel_len, frame_tile)

    return {
        "output": x_up,
        "attn_logprob": None,
        "attn_soft": None,
        "attn_hard": None,
        "duration_prediction": log_d,
        "duration_target": None,
        "pitch_prediction": pitch_prediction,
        "pitch_target": None,
        "energy_prediction": energy_prediction,
        "energy_target": None,
        "duration_rounded": duration_rounded,
        "target_mask": tgt_mask,
    }


# ----------------------------------------------------------------------------
# Deterministic parameter construction (stacked: 0=energy, 1=pitch, 2=duration)
# ----------------------------------------------------------------------------
def make_params(key, n_channels, n_layers, kernel_size, n_bins):
    C, L, K, NB = n_channels, n_layers, kernel_size, n_bins
    keys = jax.random.split(key, 3)
    nbp = max(128, _round_up(NB - 1, 128))   # pad bins to a lane multiple with +inf sentinel

    def padded_bins(lo, hi):
        b = jnp.linspace(lo, hi, NB - 1, dtype=jnp.float32)
        return jnp.concatenate([b, jnp.full((nbp - (NB - 1),), jnp.inf, jnp.float32)])

    return {
        # im2col layout: cw[p, l, k*C + c_in, c_out]; bf16 for MXU-native matmuls.
        "cw": (jax.random.normal(keys[0], (3, L, K * C, C), jnp.float32) * 0.05
               ).astype(jnp.bfloat16),
        "cb": jnp.zeros((3, L, C), jnp.float32),
        "gamma": jnp.ones((3, L, C), jnp.float32),
        "beta": jnp.zeros((3, L, C), jnp.float32),
        "lw": jax.random.normal(keys[1], (3, C), jnp.float32) * 0.05,
        # duration predictor (index 2) gets bias 1.0 so random-weight durations are nonzero
        "lb": jnp.array([[0.0], [0.0], [1.0]], jnp.float32),
        "bins": jnp.stack([padded_bins(-2.0, 2.0), padded_bins(-3.0, 3.0)]),   # (2, NBP)
        "tab": jax.random.normal(keys[2], (2, NB, C), jnp.float32) * 0.1,      # embeddings
    }


if __name__ == "__main__":
    # Small but hardware-friendly config: C multiple of 128, T multiple of 8.
    B, T, C = 2, 16, 128        # batch, phone sequence length, hidden/channels
    N_LAYERS, KSIZE, N_BINS = 3, 5, 16
    MAX_MEL_LEN = 64            # static frame budget for the length regulator
    FRAME_TILE = 32             # frame-axis tile (2 tiles -> exercises the tiled LR grid)

    root = jax.random.PRNGKey(0)
    k_param, k_x = jax.random.split(root)
    params = make_params(k_param, C, N_LAYERS, KSIZE, N_BINS)

    encoder_output = jax.random.normal(k_x, (B, T, C), jnp.float32)
    src_lens = jnp.array([T, T - 3], jnp.int32)
    src_mask = (jnp.arange(T)[None, :] < src_lens[:, None]).astype(jnp.float32)  # 1 = valid

    out = variance_adaptor_forward(params, encoder_output, src_mask, MAX_MEL_LEN,
                                   frame_tile=FRAME_TILE)
    jax.block_until_ready(out["output"])
    jax.block_until_ready(out["target_mask"])
    jax.block_until_ready(out["duration_rounded"])

    assert out["output"].shape == (B, MAX_MEL_LEN, C)
    assert out["target_mask"].shape == (B, MAX_MEL_LEN)
    assert out["energy_prediction"].shape == (B, T)
    assert out["pitch_prediction"].shape == (B, T)
    assert out["duration_prediction"].shape == (B, T)
    assert out["duration_rounded"].shape == (B, T)
    assert bool(jnp.all(jnp.isfinite(out["output"])))
    print("KERNEL_OK")
</pallas_src>

<mosaic_0001>
module attributes {stable_mosaic.version = 11 : i64} {
  func.func @_variance_phone_kernel(%arg0: i32, %arg1: memref<2xf32, #tpu.memory_space<smem>>, %arg2: memref<1x16x128xf32, #tpu.memory_space<vmem>>, %arg3: memref<1x16x1xf32, #tpu.memory_space<vmem>>, %arg4: memref<1x1x16xf32, #tpu.memory_space<vmem>>, %arg5: memref<3x3x640x128xbf16, #tpu.memory_space<vmem>>, %arg6: memref<3x3x128xf32, #tpu.memory_space<vmem>>, %arg7: memref<3x3x128xf32, #tpu.memory_space<vmem>>, %arg8: memref<3x3x128xf32, #tpu.memory_space<vmem>>, %arg9: memref<3x128xf32, #tpu.memory_space<vmem>>, %arg10: memref<3x1xf32, #tpu.memory_space<vmem>>, %arg11: memref<2x128xf32, #tpu.memory_space<vmem>>, %arg12: memref<2x16x128xf32, #tpu.memory_space<vmem>>, %arg13: memref<1x16x128xf32, #tpu.memory_space<vmem>>, %arg14: memref<1x1x16xf32, #tpu.memory_space<vmem>>, %arg15: memref<1x1x16xf32, #tpu.memory_space<vmem>>, %arg16: memref<1x1x16xf32, #tpu.memory_space<vmem>>, %arg17: memref<24x128xf32, #tpu.memory_space<vmem>>) attributes {dimension_semantics = [#tpu.dimension_semantics<parallel>], iteration_bounds = array<i64: 2>, scalar_prefetch = 0 : i64, scratch_operands = 1 : i64, tpu.core_type = #tpu.core_type<tc>, window_params = [{transform_indices = @transform_0, window_bounds = array<i64: 2>}, {transform_indices = @transform_1, window_bounds = array<i64: 1, 16, 128>}, {transform_indices = @transform_2, window_bounds = array<i64: 1, 16, 1>}, {transform_indices = @transform_3, window_bounds = array<i64: 1, 1, 16>}, {pipeline_mode = #tpu.pipeline_mode<synchronous>, transform_indices = @transform_4, window_bounds = array<i64: 3, 3, 640, 128>}, {pipeline_mode = #tpu.pipeline_mode<synchronous>, transform_indices = @transform_5, window_bounds = array<i64: 3, 3, 128>}, {pipeline_mode = #tpu.pipeline_mode<synchronous>, transform_indices = @transform_6, window_bounds = array<i64: 3, 3, 128>}, {pipeline_mode = #tpu.pipeline_mode<synchronous>, transform_indices = @transform_7, window_bounds = array<i64: 3, 3, 128>}, {pipeline_mode = #tpu.pipeline_mode<synchronous>, transform_indices = @transform_8, window_bounds = array<i64: 3, 128>}, {pipeline_mode = #tpu.pipeline_mode<synchronous>, transform_indices = @transform_9, window_bounds = array<i64: 3, 1>}, {pipeline_mode = #tpu.pipeline_mode<synchronous>, transform_indices = @transform_10, window_bounds = array<i64: 2, 128>}, {pipeline_mode = #tpu.pipeline_mode<synchronous>, transform_indices = @transform_11, window_bounds = array<i64: 2, 16, 128>}, {transform_indices = @transform_12, window_bounds = array<i64: 1, 16, 128>}, {transform_indices = @transform_13, window_bounds = array<i64: 1, 1, 16>}, {transform_indices = @transform_14, window_bounds = array<i64: 1, 1, 16>}, {transform_indices = @transform_15, window_bounds = array<i64: 1, 1, 16>}]} {
    %c0 = arith.constant 0 : index
    %c0_0 = arith.constant 0 : index
    %c0_1 = arith.constant 0 : index
    %0 = vector.load %arg3[%c0, %c0_0, %c0_1] : memref<1x16x1xf32, #tpu.memory_space<vmem>>, vector<1x16x1xf32>
    %1 = vector.shape_cast %0 : vector<1x16x1xf32> to vector<16x1xf32>
    %c0_2 = arith.constant 0 : index
    %c0_3 = arith.constant 0 : index
    %c0_4 = arith.constant 0 : index
    %2 = vector.load %arg4[%c0_2, %c0_3, %c0_4] : memref<1x1x16xf32, #tpu.memory_space<vmem>>, vector<1x1x16xf32>
    %3 = vector.shape_cast %2 : vector<1x1x16xf32> to vector<1x16xf32>
    %cst = arith.constant 0.000000e+00 : f32
    %4 = vector.broadcast %cst : f32 to vector<2x128xf32>
    %c0_5 = arith.constant 0 : index
    %c0_6 = arith.constant 0 : index
    %5 = vector.load %arg17[%c0_5, %c0_6] : memref<24x128xf32, #tpu.memory_space<vmem>>, vector<2x128xf32>
    tpu.vector_store %arg17[%c0_5, %c0_6], %4 {strides = array<i32>} : memref<24x128xf32, #tpu.memory_space<vmem>>, vector<2x128xf32>,
    %cst_7 = arith.constant 0.000000e+00 : f32
    %6 = vector.broadcast %cst_7 : f32 to vector<2x128xf32>
    %c18 = arith.constant 18 : index
    %c0_8 = arith.constant 0 : index
    %7 = vector.load %arg17[%c18, %c0_8] : memref<24x128xf32, #tpu.memory_space<vmem>>, vector<2x128xf32>
    tpu.vector_store %arg17[%c18, %c0_8], %6 {strides = array<i32>} : memref<24x128xf32, #tpu.memory_space<vmem>>, vector<2x128xf32>,
    %c0_9 = arith.constant 0 : index
    %c0_10 = arith.constant 0 : index
    %c0_11 = arith.constant 0 : index
    %8 = vector.load %arg2[%c0_9, %c0_10, %c0_11] : memref<1x16x128xf32, #tpu.memory_space<vmem>>, vector<1x16x128xf32>
    %9 = vector.shape_cast %8 : vector<1x16x128xf32> to vector<16x128xf32>
    %c0_12 = arith.constant 0 : index
    %10 = memref.load %arg1[%c0_12] : memref<2xf32, #tpu.memory_space<smem>>
    %c2 = arith.constant 2 : index
    %c0_13 = arith.constant 0 : index
    %11 = vector.load %arg17[%c2, %c0_13] : memref<24x128xf32, #tpu.memory_space<vmem>>, vector<16x128xf32>
    tpu.vector_store %arg17[%c2, %c0_13], %9 {strides = array<i32>} : memref<24x128xf32, #tpu.memory_space<vmem>>, vector<16x128xf32>,
    %c0_14 = arith.constant 0 : index
    %c0_15 = arith.constant 0 : index
    %12 = vector.load %arg17[%c0_14, %c0_15] : memref<24x128xf32, #tpu.memory_space<vmem>>, vector<16x128xf32>
    %c1 = arith.constant 1 : index
    %c0_16 = arith.constant 0 : index
    %13 = vector.load %arg17[%c1, %c0_16] : memref<24x128xf32, #tpu.memory_space<vmem>>, vector<16x128xf32>
    %c2_17 = arith.constant 2 : index
    %c0_18 = arith.constant 0 : index
    %14 = vector.load %arg17[%c2_17, %c0_18] : memref<24x128xf32, #tpu.memory_space<vmem>>, vector<16x128xf32>
    %c3 = arith.constant 3 : index
    %c0_19 = arith.constant 0 : index
    %15 = vector.load %arg17[%c3, %c0_19] : memref<24x128xf32, #tpu.memory_space<vmem>>, vector<16x128xf32>
    %c4 = arith.constant 4 : index
    %c0_20 = arith.constant 0 : index
    %16 = vector.load %arg17[%c4, %c0_20] : memref<24x128xf32, #tpu.memory_space<vmem>>, vector<16x128xf32>
    %17 = tpu.concatenate %12, %13, %14, %15, %16 in 1 : vector<16x128xf32>, vector<16x128xf32>, vector<16x128xf32>, vector<16x128xf32>, vector<16x128xf32> -> vector<16x640xf32>
    %18 = arith.truncf %17 : vector<16x640xf32> to vector<16x640xbf16>
    %c0_21 = arith.constant 0 : index
    %c0_22 = arith.constant 0 : index
    %c0_23 = arith.constant 0 : index
    %c0_24 = arith.constant 0 : index
    %19 = vector.load %arg5[%c0_21, %c0_22, %c0_23, %c0_24] : memref<3x3x640x128xbf16, #tpu.memory_space<vmem>>, vector<1x1x640x128xbf16>
    %20 = vector.shape_cast %19 : vector<1x1x640x128xbf16> to vector<640x128xbf16>
    %cst_25 = arith.constant dense<0.000000e+00> : vector<16x128xf32>
    %21 = tpu.matmul %18, %20, %cst_25 {dimension_numbers = #tpu.dot_dimension_numbers<[1], [0], [0], [1], [0, 0, 1, 1], [], []>} : vector<16x640xbf16>, vector<640x128xbf16>, vector<16x128xf32> -> vector<16x128xf32>
    %c0_26 = arith.constant 0 : index
    %c0_27 = arith.constant 0 : index
    %c0_28 = arith.constant 0 : index
    %22 = vector.load %arg6[%c0_26, %c0_27, %c0_28] : memref<3x3x128xf32, #tpu.memory_space<vmem>>, vector<1x1x128xf32>
    %23 = vector.shape_cast %22 : vector<1x1x128xf32> to vector<128xf32>
    %24 = vector.shape_cast %23 : vector<128xf32> to vector<1x128xf32>
    %25 = vector.broadcast %24 : vector<1x128xf32> to vector<16x128xf32>
    %26 = arith.addf %21, %25 : vector<16x128xf32>
    %cst_29 = arith.constant 0.000000e+00 : f32
    %27 = vector.broadcast %cst_29 : f32 to vector<16x128xf32>
    %28 = arith.maximumf %26, %27 : vector<16x128xf32>
    %cst_30 = arith.constant dense<0.000000e+00> : vector<16xf32>
    %29 = vector.multi_reduction <add>, %28, %cst_30 [1] : vector<16x128xf32> to vector<16xf32>
    %30 = vector.shape_cast %29 : vector<16xf32> to vector<16x1xf32>
    %cst_31 = arith.constant 1.280000e+02 : f32
    %31 = vector.broadcast %cst_31 : f32 to vector<16x1xf32>
    %32 = arith.divf %30, %31 : vector<16x1xf32>
    %33 = vector.broadcast %32 : vector<16x1xf32> to vector<16x128xf32>
    %34 = arith.subf %28, %33 : vector<16x128xf32>
    %35 = arith.mulf %34, %34 : vector<16x128xf32>
    %cst_32 = arith.constant dense<0.000000e+00> : vector<16xf32>
    %36 = vector.multi_reduction <add>, %35, %cst_32 [1] : vector<16x128xf32> to vector<16xf32>
    %37 = vector.shape_cast %36 : vector<16xf32> to vector<16x1xf32>
    %cst_33 = arith.constant 1.280000e+02 : f32
    %38 = vector.broadcast %cst_33 : f32 to vector<16x1xf32>
    %39 = arith.divf %37, %38 : vector<16x1xf32>
    %cst_34 = arith.constant 9.99999974E-6 : f32
    %40 = vector.broadcast %cst_34 : f32 to vector<16x1xf32>
    %41 = arith.addf %39, %40 : vector<16x1xf32>
    %42 = math.rsqrt %41 : vector<16x1xf32>
    %43 = vector.broadcast %42 : vector<16x1xf32> to vector<16x128xf32>
    %44 = arith.mulf %34, %43 : vector<16x128xf32>
    %c0_35 = arith.constant 0 : index
    %c0_36 = arith.constant 0 : index
    %c0_37 = arith.constant 0 : index
    %45 = vector.load %arg7[%c0_35, %c0_36, %c0_37] : memref<3x3x128xf32, #tpu.memory_space<vmem>>, vector<1x1x128xf32>
    %46 = vector.shape_cast %45 : vector<1x1x128xf32> to vector<128xf32>
    %47 = vector.shape_cast %46 : vector<128xf32> to vector<1x128xf32>
    %48 = vector.broadcast %47 : vector<1x128xf32> to vector<16x128xf32>
    %49 = arith.mulf %44, %48 : vector<16x128xf32>
    %c0_38 = arith.constant 0 : index
    %c0_39 = arith.constant 0 : index
    %c0_40 = arith.constant 0 : index
    %50 = vector.load %arg8[%c0_38, %c0_39, %c0_40] : memref<3x3x128xf32, #tpu.memory_space<vmem>>, vector<1x1x128xf32>
    %51 = vector.shape_cast %50 : vector<1x1x128xf32> to vector<128xf32>
    %52 = vector.shape_cast %51 : vector<128xf32> to vector<1x128xf32>
    %53 = vector.broadcast %52 : vector<1x128xf32> to vector<16x128xf32>
    %54 = arith.addf %49, %53 : vector<16x128xf32>
    %c2_41 = arith.constant 2 : index
    %c0_42 = arith.constant 0 : index
    %55 = vector.load %arg17[%c2_41, %c0_42] : memref<24x128xf32, #tpu.memory_space<vmem>>, vector<16x128xf32>
    tpu.vector_store %arg17[%c2_41, %c0_42], %54 {strides = array<i32>} : memref<24x128xf32, #tpu.memory_space<vmem>>, vector<16x128xf32>,
    %c0_43 = arith.constant 0 : index
    %c0_44 = arith.constant 0 : index
    %56 = vector.load %arg17[%c0_43, %c0_44] : memref<24x128xf32, #tpu.memory_space<vmem>>, vector<16x128xf32>
    %c1_45 = arith.constant 1 : index
    %c0_46 = arith.constant 0 : index
    %57 = vector.load %arg17[%c1_45, %c0_46] : memref<24x128xf32, #tpu.memory_space<vmem>>, vector<16x128xf32>
    %c2_47 = arith.constant 2 : index
    %c0_48 = arith.constant 0 : index
    %58 = vector.load %arg17[%c2_47, %c0_48] : memref<24x128xf32, #tpu.memory_space<vmem>>, vector<16x128xf32>
    %c3_49 = arith.constant 3 : index
    %c0_50 = arith.constant 0 : index
    %59 = vector.load %arg17[%c3_49, %c0_50] : memref<24x128xf32, #tpu.memory_space<vmem>>, vector<16x128xf32>
    %c4_51 = arith.constant 4 : index
    %c0_52 = arith.constant 0 : index
    %60 = vector.load %arg17[%c4_51, %c0_52] : memref<24x128xf32, #tpu.memory_space<vmem>>, vector<16x128xf32>
    %61 = tpu.concatenate %56, %57, %58, %59, %60 in 1 : vector<16x128xf32>, vector<16x128xf32>, vector<16x128xf32>, vector<16x128xf32>, vector<16x128xf32> -> vector<16x640xf32>
    %62 = arith.truncf %61 : vector<16x640xf32> to vector<16x640xbf16>
    %c0_53 = arith.constant 0 : index
    %c1_54 = arith.constant 1 : index
    %c0_55 = arith.constant 0 : index
    %c0_56 = arith.constant 0 : index
    %63 = vector.load %arg5[%c0_53, %c1_54, %c0_55, %c0_56] : memref<3x3x640x128xbf16, #tpu.memory_space<vmem>>, vector<1x1x640x128xbf16>
    %64 = vector.shape_cast %63 : vector<1x1x640x128xbf16> to vector<640x128xbf16>
    %cst_57 = arith.constant dense<0.000000e+00> : vector<16x128xf32>
    %65 = tpu.matmul %62, %64, %cst_57 {dimension_numbers = #tpu.dot_dimension_numbers<[1], [0], [0], [1], [0, 0, 1, 1], [], []>} : vector<16x640xbf16>, vector<640x128xbf16>, vector<16x128xf32> -> vector<16x128xf32>
    %c0_58 = arith.constant 0 : index
    %c1_59 = arith.constant 1 : index
    %c0_60 = arith.constant 0 : index
    %66 = vector.load %arg6[%c0_58, %c1_59, %c0_60] : memref<3x3x128xf32, #tpu.memory_space<vmem>>, vector<1x1x128xf32>
    %67 = vector.shape_cast %66 : vector<1x1x128xf32> to vector<128xf32>
    %68 = vector.shape_cast %67 : vector<128xf32> to vector<1x128xf32>
    %69 = vector.broadcast %68 : vector<1x128xf32> to vector<16x128xf32>
    %70 = arith.addf %65, %69 : vector<16x128xf32>
    %cst_61 = arith.constant 0.000000e+00 : f32
    %71 = vector.broadcast %cst_61 : f32 to vector<16x128xf32>
    %72 = arith.maximumf %70, %71 : vector<16x128xf32>
    %cst_62 = arith.constant dense<0.000000e+00> : vector<16xf32>
    %73 = vector.multi_reduction <add>, %72, %cst_62 [1] : vector<16x128xf32> to vector<16xf32>
    %74 = vector.shape_cast %73 : vector<16xf32> to vector<16x1xf32>
    %cst_63 = arith.constant 1.280000e+02 : f32
    %75 = vector.broadcast %cst_63 : f32 to vector<16x1xf32>
    %76 = arith.divf %74, %75 : vector<16x1xf32>
    %77 = vector.broadcast %76 : vector<16x1xf32> to vector<16x128xf32>
    %78 = arith.subf %72, %77 : vector<16x128xf32>
    %79 = arith.mulf %78, %78 : vector<16x128xf32>
    %cst_64 = arith.constant dense<0.000000e+00> : vector<16xf32>
    %80 = vector.multi_reduction <add>, %79, %cst_64 [1] : vector<16x128xf32> to vector<16xf32>
    %81 = vector.shape_cast %80 : vector<16xf32> to vector<16x1xf32>
    %cst_65 = arith.constant 1.280000e+02 : f32
    %82 = vector.broadcast %cst_65 : f32 to vector<16x1xf32>
    %83 = arith.divf %81, %82 : vector<16x1xf32>
    %cst_66 = arith.constant 9.99999974E-6 : f32
    %84 = vector.broadcast %cst_66 : f32 to vector<16x1xf32>
    %85 = arith.addf %83, %84 : vector<16x1xf32>
    %86 = math.rsqrt %85 : vector<16x1xf32>
    %87 = vector.broadcast %86 : vector<16x1xf32> to vector<16x128xf32>
    %88 = arith.mulf %78, %87 : vector<16x128xf32>
    %c0_67 = arith.constant 0 : index
    %c1_68 = arith.constant 1 : index
    %c0_69 = arith.constant 0 : index
    %89 = vector.load %arg7[%c0_67, %c1_68, %c0_69] : memref<3x3x128xf32, #tpu.memory_space<vmem>>, vector<1x1x128xf32>
    %90 = vector.shape_cast %89 : vector<1x1x128xf32> to vector<128xf32>
    %91 = vector.shape_cast %90 : vector<128xf32> to vector<1x128xf32>
    %92 = vector.broadcast %91 : vector<1x128xf32> to vector<16x128xf32>
    %93 = arith.mulf %88, %92 : vector<16x128xf32>
    %c0_70 = arith.constant 0 : index
    %c1_71 = arith.constant 1 : index
    %c0_72 = arith.constant 0 : index
    %94 = vector.load %arg8[%c0_70, %c1_71, %c0_72] : memref<3x3x128xf32, #tpu.memory_space<vmem>>, vector<1x1x128xf32>
    %95 = vector.shape_cast %94 : vector<1x1x128xf32> to vector<128xf32>
    %96 = vector.shape_cast %95 : vector<128xf32> to vector<1x128xf32>
    %97 = vector.broadcast %96 : vector<1x128xf32> to vector<16x128xf32>
    %98 = arith.addf %93, %97 : vector<16x128xf32>
    %c2_73 = arith.constant 2 : index
    %c0_74 = arith.constant 0 : index
    %99 = vector.load %arg17[%c2_73, %c0_74] : memref<24x128xf32, #tpu.memory_space<vmem>>, vector<16x128xf32>
    tpu.vector_store %arg17[%c2_73, %c0_74], %98 {strides = array<i32>} : memref<24x128xf32, #tpu.memory_space<vmem>>, vector<16x128xf32>,
    %c0_75 = arith.constant 0 : index
    %c0_76 = arith.constant 0 : index
    %100 = vector.load %arg17[%c0_75, %c0_76] : memref<24x128xf32, #tpu.memory_space<vmem>>, vector<16x128xf32>
    %c1_77 = arith.constant 1 : index
    %c0_78 = arith.constant 0 : index
    %101 = vector.load %arg17[%c1_77, %c0_78] : memref<24x128xf32, #tpu.memory_space<vmem>>, vector<16x128xf32>
    %c2_79 = arith.constant 2 : index
    %c0_80 = arith.constant 0 : index
    %102 = vector.load %arg17[%c2_79, %c0_80] : memref<24x128xf32, #tpu.memory_space<vmem>>, vector<16x128xf32>
    %c3_81 = arith.constant 3 : index
    %c0_82 = arith.constant 0 : index
    %103 = vector.load %arg17[%c3_81, %c0_82] : memref<24x128xf32, #tpu.memory_space<vmem>>, vector<16x128xf32>
    %c4_83 = arith.constant 4 : index
    %c0_84 = arith.constant 0 : index
    %104 = vector.load %arg17[%c4_83, %c0_84] : memref<24x128xf32, #tpu.memory_space<vmem>>, vector<16x128xf32>
    %105 = tpu.concatenate %100, %101, %102, %103, %104 in 1 : vector<16x128xf32>, vector<16x128xf32>, vector<16x128xf32>, vector<16x128xf32>, vector<16x128xf32> -> vector<16x640xf32>
    %106 = arith.truncf %105 : vector<16x640xf32> to vector<16x640xbf16>
    %c0_85 = arith.constant 0 : index
    %c2_86 = arith.constant 2 : index
    %c0_87 = arith.constant 0 : index
    %c0_88 = arith.constant 0 : index
    %107 = vector.load %arg5[%c0_85, %c2_86, %c0_87, %c0_88] : memref<3x3x640x128xbf16, #tpu.memory_space<vmem>>, vector<1x1x640x128xbf16>
    %108 = vector.shape_cast %107 : vector<1x1x640x128xbf16> to vector<640x128xbf16>
    %cst_89 = arith.constant dense<0.000000e+00> : vector<16x128xf32>
    %109 = tpu.matmul %106, %108, %cst_89 {dimension_numbers = #tpu.dot_dimension_numbers<[1], [0], [0], [1], [0, 0, 1, 1], [], []>} : vector<16x640xbf16>, vector<640x128xbf16>, vector<16x128xf32> -> vector<16x128xf32>
    %c0_90 = arith.constant 0 : index
    %c2_91 = arith.constant 2 : index
    %c0_92 = arith.constant 0 : index
    %110 = vector.load %arg6[%c0_90, %c2_91, %c0_92] : memref<3x3x128xf32, #tpu.memory_space<vmem>>, vector<1x1x128xf32>
    %111 = vector.shape_cast %110 : vector<1x1x128xf32> to vector<128xf32>
    %112 = vector.shape_cast %111 : vector<128xf32> to vector<1x128xf32>
    %113 = vector.broadcast %112 : vector<1x128xf32> to vector<16x128xf32>
    %114 = arith.addf %109, %113 : vector<16x128xf32>
    %cst_93 = arith.constant 0.000000e+00 : f32
    %115 = vector.broadcast %cst_93 : f32 to vector<16x128xf32>
    %116 = arith.maximumf %114, %115 : vector<16x128xf32>
    %cst_94 = arith.constant dense<0.000000e+00> : vector<16xf32>
    %117 = vector.multi_reduction <add>, %116, %cst_94 [1] : vector<16x128xf32> to vector<16xf32>
    %118 = vector.shape_cast %117 : vector<16xf32> to vector<16x1xf32>
    %cst_95 = arith.constant 1.280000e+02 : f32
    %119 = vector.broadcast %cst_95 : f32 to vector<16x1xf32>
    %120 = arith.divf %118, %119 : vector<16x1xf32>
    %121 = vector.broadcast %120 : vector<16x1xf32> to vector<16x128xf32>
    %122 = arith.subf %116, %121 : vector<16x128xf32>
    %123 = arith.mulf %122, %122 : vector<16x128xf32>
    %cst_96 = arith.constant dense<0.000000e+00> : vector<16xf32>
    %124 = vector.multi_reduction <add>, %123, %cst_96 [1] : vector<16x128xf32> to vector<16xf32>
    %125 = vector.shape_cast %124 : vector<16xf32> to vector<16x1xf32>
    %cst_97 = arith.constant 1.280000e+02 : f32
    %126 = vector.broadcast %cst_97 : f32 to vector<16x1xf32>
    %127 = arith.divf %125, %126 : vector<16x1xf32>
    %cst_98 = arith.constant 9.99999974E-6 : f32
    %128 = vector.broadcast %cst_98 : f32 to vector<16x1xf32>
    %129 = arith.addf %127, %128 : vector<16x1xf32>
    %130 = math.rsqrt %129 : vector<16x1xf32>
    %131 = vector.broadcast %130 : vector<16x1xf32> to vector<16x128xf32>
    %132 = arith.mulf %122, %131 : vector<16x128xf32>
    %c0_99 = arith.constant 0 : index
    %c2_100 = arith.constant 2 : index
    %c0_101 = arith.constant 0 : index
    %133 = vector.load %arg7[%c0_99, %c2_100, %c0_101] : memref<3x3x128xf32, #tpu.memory_space<vmem>>, vector<1x1x128xf32>
    %134 = vector.shape_cast %133 : vector<1x1x128xf32> to vector<128xf32>
    %135 = vector.shape_cast %134 : vector<128xf32> to vector<1x128xf32>
    %136 = vector.broadcast %135 : vector<1x128xf32> to vector<16x128xf32>
    %137 = arith.mulf %132, %136 : vector<16x128xf32>
    %c0_102 = arith.constant 0 : index
    %c2_103 = arith.constant 2 : index
    %c0_104 = arith.constant 0 : index
    %138 = vector.load %arg8[%c0_102, %c2_103, %c0_104] : memref<3x3x128xf32, #tpu.memory_space<vmem>>, vector<1x1x128xf32>
    %139 = vector.shape_cast %138 : vector<1x1x128xf32> to vector<128xf32>
    %140 = vector.shape_cast %139 : vector<128xf32> to vector<1x128xf32>
    %141 = vector.broadcast %140 : vector<1x128xf32> to vector<16x128xf32>
    %142 = arith.addf %137, %141 : vector<16x128xf32>
    %c0_105 = arith.constant 0 : index
    %c0_106 = arith.constant 0 : index
    %143 = vector.load %arg9[%c0_105, %c0_106] : memref<3x128xf32, #tpu.memory_space<vmem>>, vector<1x128xf32>
    %144 = vector.shape_cast %143 : vector<1x128xf32> to vector<128xf32>
    %145 = vector.shape_cast %144 : vector<128xf32> to vector<1x128xf32>
    %c0_107 = arith.constant 0 : index
    %c0_108 = arith.constant 0 : index
    %146 = vector.load %arg10[%c0_107, %c0_108] : memref<3x1xf32, #tpu.memory_space<vmem>>, vector<1x1xf32>
    %147 = vector.shape_cast %146 : vector<1x1xf32> to vector<1xf32>
    %cst_109 = arith.constant dense<0.000000e+00> : vector<1x16xf32>
    %148 = tpu.matmul %145, %142, %cst_109 {dimension_numbers = #tpu.dot_dimension_numbers<[1], [1], [0], [0], [0, 0, 1, 0], [], []>} : vector<1x128xf32>, vector<16x128xf32>, vector<1x16xf32> -> vector<1x16xf32>
    %149 = vector.shape_cast %147 : vector<1xf32> to vector<1x1xf32>
    %150 = vector.broadcast %149 : vector<1x1xf32> to vector<1x16xf32>
    %151 = arith.addf %148, %150 : vector<1x16xf32>
    %152 = arith.mulf %151, %3 : vector<1x16xf32>
    %153 = vector.broadcast %10 : f32 to vector<1x16xf32>
    %154 = arith.mulf %152, %153 : vector<1x16xf32>
    %155 = vector.broadcast %145 : vector<1x128xf32> to vector<16x128xf32>
    %156 = arith.mulf %142, %155 : vector<16x128xf32>
    %cst_110 = arith.constant dense<0.000000e+00> : vector<16xf32>
    %157 = vector.multi_reduction <add>, %156, %cst_110 [1] : vector<16x128xf32> to vector<16xf32>
    %158 = vector.shape_cast %157 : vector<16xf32> to vector<16x1xf32>
    %159 = vector.shape_cast %147 : vector<1xf32> to vector<1x1xf32>
    %160 = vector.broadcast %159 : vector<1x1xf32> to vector<16x1xf32>
    %161 = arith.addf %158, %160 : vector<16x1xf32>
    %162 = arith.mulf %161, %1 : vector<16x1xf32>
    %163 = vector.broadcast %10 : f32 to vector<16x1xf32>
    %164 = arith.mulf %162, %163 : vector<16x1xf32>
    %c0_111 = arith.constant 0 : index
    %c0_112 = arith.constant 0 : index
    %165 = vector.load %arg11[%c0_111, %c0_112] : memref<2x128xf32, #tpu.memory_space<vmem>>, vector<1x128xf32>
    %166 = vector.shape_cast %165 : vector<1x128xf32> to vector<128xf32>
    %167 = vector.shape_cast %166 : vector<128xf32> to vector<1x128xf32>
    %168 = vector.broadcast %167 : vector<1x128xf32> to vector<16x128xf32>
    %169 = vector.broadcast %164 : vector<16x1xf32> to vector<16x128xf32>
    %170 = arith.cmpf olt, %168, %169 : vector<16x128xf32>
    %171 = arith.extui %170 : vector<16x128xi1> to vector<16x128xi32>
    %cst_113 = arith.constant dense<0> : vector<16xi32>
    %172 = vector.multi_reduction <add>, %171, %cst_113 [1] : vector<16x128xi32> to vector<16xi32>
    %173 = vector.shape_cast %172 : vector<16xi32> to vector<16x1xi32>
    %174 = tpu.iota {dimensions = array<i32: 1>} : vector<16x16xi32>
    %175 = vector.broadcast %173 : vector<16x1xi32> to vector<16x16xi32>
    %176 = arith.cmpi eq, %174, %175 : vector<16x16xi32>
    %177 = arith.extui %176 : vector<16x16xi1> to vector<16x16xi32>
    %178 = arith.sitofp %177 : vector<16x16xi32> to vector<16x16xf32>
    %c0_114 = arith.constant 0 : index
    %c0_115 = arith.constant 0 : index
    %c0_116 = arith.constant 0 : index
    %179 = vector.load %arg12[%c0_114, %c0_115, %c0_116] : memref<2x16x128xf32, #tpu.memory_space<vmem>>, vector<1x16x128xf32>
    %180 = vector.shape_cast %179 : vector<1x16x128xf32> to vector<16x128xf32>
    %cst_117 = arith.constant dense<0.000000e+00> : vector<16x128xf32>
    %181 = tpu.matmul %178, %180, %cst_117 {dimension_numbers = #tpu.dot_dimension_numbers<[1], [0], [0], [1], [0, 0, 1, 1], [], []>} : vector<16x16xf32>, vector<16x128xf32>, vector<16x128xf32> -> vector<16x128xf32>
    %182 = arith.addf %9, %181 : vector<16x128xf32>
    %c1_118 = arith.constant 1 : index
    %183 = memref.load %arg1[%c1_118] : memref<2xf32, #tpu.memory_space<smem>>
    %c2_119 = arith.constant 2 : index
    %c0_120 = arith.constant 0 : index
    %184 = vector.load %arg17[%c2_119, %c0_120] : memref<24x128xf32, #tpu.memory_space<vmem>>, vector<16x128xf32>
    tpu.vector_store %arg17[%c2_119, %c0_120], %182 {strides = array<i32>} : memref<24x128xf32, #tpu.memory_space<vmem>>, vector<16x128xf32>,
    %c0_121 = arith.constant 0 : index
    %c0_122 = arith.constant 0 : index
    %185 = vector.load %arg17[%c0_121, %c0_122] : memref<24x128xf32, #tpu.memory_space<vmem>>, vector<16x128xf32>
    %c1_123 = arith.constant 1 : index
    %c0_124 = arith.constant 0 : index
    %186 = vector.load %arg17[%c1_123, %c0_124] : memref<24x128xf32, #tpu.memory_space<vmem>>, vector<16x128xf32>
    %c2_125 = arith.constant 2 : index
    %c0_126 = arith.constant 0 : index
    %187 = vector.load %arg17[%c2_125, %c0_126] : memref<24x128xf32, #tpu.memory_space<vmem>>, vector<16x128xf32>
    %c3_127 = arith.constant 3 : index
    %c0_128 = arith.constant 0 : index
    %188 = vector.load %arg17[%c3_127, %c0_128] : memref<24x128xf32, #tpu.memory_space<vmem>>, vector<16x128xf32>
    %c4_129 = arith.constant 4 : index
    %c0_130 = arith.constant 0 : index
    %189 = vector.load %arg17[%c4_129, %c0_130] : memref<24x128xf32, #tpu.memory_space<vmem>>, vector<16x128xf32>
    %190 = tpu.concatenate %185, %186, %187, %188, %189 in 1 : vector<16x128xf32>, vector<16x128xf32>, vector<16x128xf32>, vector<16x128xf32>, vector<16x128xf32> -> vector<16x640xf32>
    %191 = arith.truncf %190 : vector<16x640xf32> to vector<16x640xbf16>
    %c1_131 = arith.constant 1 : index
    %c0_132 = arith.constant 0 : index
    %c0_133 = arith.constant 0 : index
    %c0_134 = arith.constant 0 : index
    %192 = vector.load %arg5[%c1_131, %c0_132, %c0_133, %c0_134] : memref<3x3x640x128xbf16, #tpu.memory_space<vmem>>, vector<1x1x640x128xbf16>
    %193 = vector.shape_cast %192 : vector<1x1x640x128xbf16> to vector<640x128xbf16>
    %cst_135 = arith.constant dense<0.000000e+00> : vector<16x128xf32>
    %194 = tpu.matmul %191, %193, %cst_135 {dimension_numbers = #tpu.dot_dimension_numbers<[1], [0], [0], [1], [0, 0, 1, 1], [], []>} : vector<16x640xbf16>, vector<640x128xbf16>, vector<16x128xf32> -> vector<16x128xf32>
    %c1_136 = arith.constant 1 : index
    %c0_137 = arith.constant 0 : index
    %c0_138 = arith.constant 0 : index
    %195 = vector.load %arg6[%c1_136, %c0_137, %c0_138] : memref<3x3x128xf32, #tpu.memory_space<vmem>>, vector<1x1x128xf32>
    %196 = vector.shape_cast %195 : vector<1x1x128xf32> to vector<128xf32>
    %197 = vector.shape_cast %196 : vector<128xf32> to vector<1x128xf32>
    %198 = vector.broadcast %197 : vector<1x128xf32> to vector<16x128xf32>
    %199 = arith.addf %194, %198 : vector<16x128xf32>
    %cst_139 = arith.constant 0.000000e+00 : f32
    %200 = vector.broadcast %cst_139 : f32 to vector<16x128xf32>
    %201 = arith.maximumf %199, %200 : vector<16x128xf32>
    %cst_140 = arith.constant dense<0.000000e+00> : vector<16xf32>
    %202 = vector.multi_reduction <add>, %201, %cst_140 [1] : vector<16x128xf32> to vector<16xf32>
    %203 = vector.shape_cast %202 : vector<16xf32> to vector<16x1xf32>
    %cst_141 = arith.constant 1.280000e+02 : f32
    %204 = vector.broadcast %cst_141 : f32 to vector<16x1xf32>
    %205 = arith.divf %203, %204 : vector<16x1xf32>
    %206 = vector.broadcast %205 : vector<16x1xf32> to vector<16x128xf32>
    %207 = arith.subf %201, %206 : vector<16x128xf32>
    %208 = arith.mulf %207, %207 : vector<16x128xf32>
    %cst_142 = arith.constant dense<0.000000e+00> : vector<16xf32>
    %209 = vector.multi_reduction <add>, %208, %cst_142 [1] : vector<16x128xf32> to vector<16xf32>
    %210 = vector.shape_cast %209 : vector<16xf32> to vector<16x1xf32>
    %cst_143 = arith.constant 1.280000e+02 : f32
    %211 = vector.broadcast %cst_143 : f32 to vector<16x1xf32>
    %212 = arith.divf %210, %211 : vector<16x1xf32>
    %cst_144 = arith.constant 9.99999974E-6 : f32
    %213 = vector.broadcast %cst_144 : f32 to vector<16x1xf32>
    %214 = arith.addf %212, %213 : vector<16x1xf32>
    %215 = math.rsqrt %214 : vector<16x1xf32>
    %216 = vector.broadcast %215 : vector<16x1xf32> to vector<16x128xf32>
    %217 = arith.mulf %207, %216 : vector<16x128xf32>
    %c1_145 = arith.constant 1 : index
    %c0_146 = arith.constant 0 : index
    %c0_147 = arith.constant 0 : index
    %218 = vector.load %arg7[%c1_145, %c0_146, %c0_147] : memref<3x3x128xf32, #tpu.memory_space<vmem>>, vector<1x1x128xf32>
    %219 = vector.shape_cast %218 : vector<1x1x128xf32> to vector<128xf32>
    %220 = vector.shape_cast %219 : vector<128xf32> to vector<1x128xf32>
    %221 = vector.broadcast %220 : vector<1x128xf32> to vector<16x128xf32>
    %222 = arith.mulf %217, %221 : vector<16x128xf32>
    %c1_148 = arith.constant 1 : index
    %c0_149 = arith.constant 0 : index
    %c0_150 = arith.constant 0 : index
    %223 = vector.load %arg8[%c1_148, %c0_149, %c0_150] : memref<3x3x128xf32, #tpu.memory_space<vmem>>, vector<1x1x128xf32>
    %224 = vector.shape_cast %223 : vector<1x1x128xf32> to vector<128xf32>
    %225 = vector.shape_cast %224 : vector<128xf32> to vector<1x128xf32>
    %226 = vector.broadcast %225 : vector<1x128xf32> to vector<16x128xf32>
    %227 = arith.addf %222, %226 : vector<16x128xf32>
    %c2_151 = arith.constant 2 : index
    %c0_152 = arith.constant 0 : index
    %228 = vector.load %arg17[%c2_151, %c0_152] : memref<24x128xf32, #tpu.memory_space<vmem>>, vector<16x128xf32>
    tpu.vector_store %arg17[%c2_151, %c0_152], %227 {strides = array<i32>} : memref<24x128xf32, #tpu.memory_space<vmem>>, vector<16x128xf32>,
    %c0_153 = arith.constant 0 : index
    %c0_154 = arith.constant 0 : index
    %229 = vector.load %arg17[%c0_153, %c0_154] : memref<24x128xf32, #tpu.memory_space<vmem>>, vector<16x128xf32>
    %c1_155 = arith.constant 1 : index
    %c0_156 = arith.constant 0 : index
    %230 = vector.load %arg17[%c1_155, %c0_156] : memref<24x128xf32, #tpu.memory_space<vmem>>, vector<16x128xf32>
    %c2_157 = arith.constant 2 : index
    %c0_158 = arith.constant 0 : index
    %231 = vector.load %arg17[%c2_157, %c0_158] : memref<24x128xf32, #tpu.memory_space<vmem>>, vector<16x128xf32>
    %c3_159 = arith.constant 3 : index
    %c0_160 = arith.constant 0 : index
    %232 = vector.load %arg17[%c3_159, %c0_160] : memref<24x128xf32, #tpu.memory_space<vmem>>, vector<16x128xf32>
    %c4_161 = arith.constant 4 : index
    %c0_162 = arith.constant 0 : index
    %233 = vector.load %arg17[%c4_161, %c0_162] : memref<24x128xf32, #tpu.memory_space<vmem>>, vector<16x128xf32>
    %234 = tpu.concatenate %229, %230, %231, %232, %233 in 1 : vector<16x128xf32>, vector<16x128xf32>, vector<16x128xf32>, vector<16x128xf32>, vector<16x128xf32> -> vector<16x640xf32>
    %235 = arith.truncf %234 : vector<16x640xf32> to vector<16x640xbf16>
    %c1_163 = arith.constant 1 : index
    %c1_164 = arith.constant 1 : index
    %c0_165 = arith.constant 0 : index
    %c0_166 = arith.constant 0 : index
    %236 = vector.load %arg5[%c1_163, %c1_164, %c0_165, %c0_166] : memref<3x3x640x128xbf16, #tpu.memory_space<vmem>>, vector<1x1x640x128xbf16>
    %237 = vector.shape_cast %236 : vector<1x1x640x128xbf16> to vector<640x128xbf16>
    %cst_167 = arith.constant dense<0.000000e+00> : vector<16x128xf32>
    %238 = tpu.matmul %235, %237, %cst_167 {dimension_numbers = #tpu.dot_dimension_numbers<[1], [0], [0], [1], [0, 0, 1, 1], [], []>} : vector<16x640xbf16>, vector<640x128xbf16>, vector<16x128xf32> -> vector<16x128xf32>
    %c1_168 = arith.constant 1 : index
    %c1_169 = arith.constant 1 : index
    %c0_170 = arith.constant 0 : index
    %239 = vector.load %arg6[%c1_168, %c1_169, %c0_170] : memref<3x3x128xf32, #tpu.memory_space<vmem>>, vector<1x1x128xf32>
    %240 = vector.shape_cast %239 : vector<1x1x128xf32> to vector<128xf32>
    %241 = vector.shape_cast %240 : vector<128xf32> to vector<1x128xf32>
    %242 = vector.broadcast %241 : vector<1x128xf32> to vector<16x128xf32>
    %243 = arith.addf %238, %242 : vector<16x128xf32>
    %cst_171 = arith.constant 0.000000e+00 : f32
    %244 = vector.broadcast %cst_171 : f32 to vector<16x128xf32>
    %245 = arith.maximumf %243, %244 : vector<16x128xf32>
    %cst_172 = arith.constant dense<0.000000e+00> : vector<16xf32>
    %246 = vector.multi_reduction <add>, %245, %cst_172 [1] : vector<16x128xf32> to vector<16xf32>
    %247 = vector.shape_cast %246 : vector<16xf32> to vector<16x1xf32>
    %cst_173 = arith.constant 1.280000e+02 : f32
    %248 = vector.broadcast %cst_173 : f32 to vector<16x1xf32>
    %249 = arith.divf %247, %248 : vector<16x1xf32>
    %250 = vector.broadcast %249 : vector<16x1xf32> to vector<16x128xf32>
    %251 = arith.subf %245, %250 : vector<16x128xf32>
    %252 = arith.mulf %251, %251 : vector<16x128xf32>
    %cst_174 = arith.constant dense<0.000000e+00> : vector<16xf32>
    %253 = vector.multi_reduction <add>, %252, %cst_174 [1] : vector<16x128xf32> to vector<16xf32>
    %254 = vector.shape_cast %253 : vector<16xf32> to vector<16x1xf32>
    %cst_175 = arith.constant 1.280000e+02 : f32
    %255 = vector.broadcast %cst_175 : f32 to vector<16x1xf32>
    %256 = arith.divf %254, %255 : vector<16x1xf32>
    %cst_176 = arith.constant 9.99999974E-6 : f32
    %257 = vector.broadcast %cst_176 : f32 to vector<16x1xf32>
    %258 = arith.addf %256, %257 : vector<16x1xf32>
    %259 = math.rsqrt %258 : vector<16x1xf32>
    %260 = vector.broadcast %259 : vector<16x1xf32> to vector<16x128xf32>
    %261 = arith.mulf %251, %260 : vector<16x128xf32>
    %c1_177 = arith.constant 1 : index
    %c1_178 = arith.constant 1 : index
    %c0_179 = arith.constant 0 : index
    %262 = vector.load %arg7[%c1_177, %c1_178, %c0_179] : memref<3x3x128xf32, #tpu.memory_space<vmem>>, vector<1x1x128xf32>
    %263 = vector.shape_cast %262 : vector<1x1x128xf32> to vector<128xf32>
    %264 = vector.shape_cast %263 : vector<128xf32> to vector<1x128xf32>
    %265 = vector.broadcast %264 : vector<1x128xf32> to vector<16x128xf32>
    %266 = arith.mulf %261, %265 : vector<16x128xf32>
    %c1_180 = arith.constant 1 : index
    %c1_181 = arith.constant 1 : index
    %c0_182 = arith.constant 0 : index
    %267 = vector.load %arg8[%c1_180, %c1_181, %c0_182] : memref<3x3x128xf32, #tpu.memory_space<vmem>>, vector<1x1x128xf32>
    %268 = vector.shape_cast %267 : vector<1x1x128xf32> to vector<128xf32>
    %269 = vector.shape_cast %268 : vector<128xf32> to vector<1x128xf32>
    %270 = vector.broadcast %269 : vector<1x128xf32> to vector<16x128xf32>
    %271 = arith.addf %266, %270 : vector<16x128xf32>
    %c2_183 = arith.constant 2 : index
    %c0_184 = arith.constant 0 : index
    %272 = vector.load %arg17[%c2_183, %c0_184] : memref<24x128xf32, #tpu.memory_space<vmem>>, vector<16x128xf32>
    tpu.vector_store %arg17[%c2_183, %c0_184], %271 {strides = array<i32>} : memref<24x128xf32, #tpu.memory_space<vmem>>, vector<16x128xf32>,
    %c0_185 = arith.constant 0 : index
    %c0_186 = arith.constant 0 : index
    %273 = vector.load %arg17[%c0_185, %c0_186] : memref<24x128xf32, #tpu.memory_space<vmem>>, vector<16x128xf32>
    %c1_187 = arith.constant 1 : index
    %c0_188 = arith.constant 0 : index
    %274 = vector.load %arg17[%c1_187, %c0_188] : memref<24x128xf32, #tpu.memory_space<vmem>>, vector<16x128xf32>
    %c2_189 = arith.constant 2 : index
    %c0_190 = arith.constant 0 : index
    %275 = vector.load %arg17[%c2_189, %c0_190] : memref<24x128xf32, #tpu.memory_space<vmem>>, vector<16x128xf32>
    %c3_191 = arith.constant 3 : index
    %c0_192 = arith.constant 0 : index
    %276 = vector.load %arg17[%c3_191, %c0_192] : memref<24x128xf32, #tpu.memory_space<vmem>>, vector<16x128xf32>
    %c4_193 = arith.constant 4 : index
    %c0_194 = arith.constant 0 : index
    %277 = vector.load %arg17[%c4_193, %c0_194] : memref<24x128xf32, #tpu.memory_space<vmem>>, vector<16x128xf32>
    %278 = tpu.concatenate %273, %274, %275, %276, %277 in 1 : vector<16x128xf32>, vector<16x128xf32>, vector<16x128xf32>, vector<16x128xf32>, vector<16x128xf32> -> vector<16x640xf32>
    %279 = arith.truncf %278 : vector<16x640xf32> to vector<16x640xbf16>
    %c1_195 = arith.constant 1 : index
    %c2_196 = arith.constant 2 : index
    %c0_197 = arith.constant 0 : index
    %c0_198 = arith.constant 0 : index
    %280 = vector.load %arg5[%c1_195, %c2_196, %c0_197, %c0_198] : memref<3x3x640x128xbf16, #tpu.memory_space<vmem>>, vector<1x1x640x128xbf16>
    %281 = vector.shape_cast %280 : vector<1x1x640x128xbf16> to vector<640x128xbf16>
    %cst_199 = arith.constant dense<0.000000e+00> : vector<16x128xf32>
    %282 = tpu.matmul %279, %281, %cst_199 {dimension_numbers = #tpu.dot_dimension_numbers<[1], [0], [0], [1], [0, 0, 1, 1], [], []>} : vector<16x640xbf16>, vector<640x128xbf16>, vector<16x128xf32> -> vector<16x128xf32>
    %c1_200 = arith.constant 1 : index
    %c2_201 = arith.constant 2 : index
    %c0_202 = arith.constant 0 : index
    %283 = vector.load %arg6[%c1_200, %c2_201, %c0_202] : memref<3x3x128xf32, #tpu.memory_space<vmem>>, vector<1x1x128xf32>
    %284 = vector.shape_cast %283 : vector<1x1x128xf32> to vector<128xf32>
    %285 = vector.shape_cast %284 : vector<128xf32> to vector<1x128xf32>
    %286 = vector.broadcast %285 : vector<1x128xf32> to vector<16x128xf32>
    %287 = arith.addf %282, %286 : vector<16x128xf32>
    %cst_203 = arith.constant 0.000000e+00 : f32
    %288 = vector.broadcast %cst_203 : f32 to vector<16x128xf32>
    %289 = arith.maximumf %287, %288 : vector<16x128xf32>
    %cst_204 = arith.constant dense<0.000000e+00> : vector<16xf32>
    %290 = vector.multi_reduction <add>, %289, %cst_204 [1] : vector<16x128xf32> to vector<16xf32>
    %291 = vector.shape_cast %290 : vector<16xf32> to vector<16x1xf32>
    %cst_205 = arith.constant 1.280000e+02 : f32
    %292 = vector.broadcast %cst_205 : f32 to vector<16x1xf32>
    %293 = arith.divf %291, %292 : vector<16x1xf32>
    %294 = vector.broadcast %293 : vector<16x1xf32> to vector<16x128xf32>
    %295 = arith.subf %289, %294 : vector<16x128xf32>
    %296 = arith.mulf %295, %295 : vector<16x128xf32>
    %cst_206 = arith.constant dense<0.000000e+00> : vector<16xf32>
    %297 = vector.multi_reduction <add>, %296, %cst_206 [1] : vector<16x128xf32> to vector<16xf32>
    %298 = vector.shape_cast %297 : vector<16xf32> to vector<16x1xf32>
    %cst_207 = arith.constant 1.280000e+02 : f32
    %299 = vector.broadcast %cst_207 : f32 to vector<16x1xf32>
    %300 = arith.divf %298, %299 : vector<16x1xf32>
    %cst_208 = arith.constant 9.99999974E-6 : f32
    %301 = vector.broadcast %cst_208 : f32 to vector<16x1xf32>
    %302 = arith.addf %300, %301 : vector<16x1xf32>
    %303 = math.rsqrt %302 : vector<16x1xf32>
    %304 = vector.broadcast %303 : vector<16x1xf32> to vector<16x128xf32>
    %305 = arith.mulf %295, %304 : vector<16x128xf32>
    %c1_209 = arith.constant 1 : index
    %c2_210 = arith.constant 2 : index
    %c0_211 = arith.constant 0 : index
    %306 = vector.load %arg7[%c1_209, %c2_210, %c0_211] : memref<3x3x128xf32, #tpu.memory_space<vmem>>, vector<1x1x128xf32>
    %307 = vector.shape_cast %306 : vector<1x1x128xf32> to vector<128xf32>
    %308 = vector.shape_cast %307 : vector<128xf32> to vector<1x128xf32>
    %309 = vector.broadcast %308 : vector<1x128xf32> to vector<16x128xf32>
    %310 = arith.mulf %305, %309 : vector<16x128xf32>
    %c1_212 = arith.constant 1 : index
    %c2_213 = arith.constant 2 : index
    %c0_214 = arith.constant 0 : index
    %311 = vector.load %arg8[%c1_212, %c2_213, %c0_214] : memref<3x3x128xf32, #tpu.memory_space<vmem>>, vector<1x1x128xf32>
    %312 = vector.shape_cast %311 : vector<1x1x128xf32> to vector<128xf32>
    %313 = vector.shape_cast %312 : vector<128xf32> to vector<1x128xf32>
    %314 = vector.broadcast %313 : vector<1x128xf32> to vector<16x128xf32>
    %315 = arith.addf %310, %314 : vector<16x128xf32>
    %c1_215 = arith.constant 1 : index
    %c0_216 = arith.constant 0 : index
    %316 = vector.load %arg9[%c1_215, %c0_216] : memref<3x128xf32, #tpu.memory_space<vmem>>, vector<1x128xf32>
    %317 = vector.shape_cast %316 : vector<1x128xf32> to vector<128xf32>
    %318 = vector.shape_cast %317 : vector<128xf32> to vector<1x128xf32>
    %c1_217 = arith.constant 1 : index
    %c0_218 = arith.constant 0 : index
    %319 = vector.load %arg10[%c1_217, %c0_218] : memref<3x1xf32, #tpu.memory_space<vmem>>, vector<1x1xf32>
    %320 = vector.shape_cast %319 : vector<1x1xf32> to vector<1xf32>
    %cst_219 = arith.constant dense<0.000000e+00> : vector<1x16xf32>
    %321 = tpu.matmul %318, %315, %cst_219 {dimension_numbers = #tpu.dot_dimension_numbers<[1], [1], [0], [0], [0, 0, 1, 0], [], []>} : vector<1x128xf32>, vector<16x128xf32>, vector<1x16xf32> -> vector<1x16xf32>
    %322 = vector.shape_cast %320 : vector<1xf32> to vector<1x1xf32>
    %323 = vector.broadcast %322 : vector<1x1xf32> to vector<1x16xf32>
    %324 = arith.addf %321, %323 : vector<1x16xf32>
    %325 = arith.mulf %324, %3 : vector<1x16xf32>
    %326 = vector.broadcast %183 : f32 to vector<1x16xf32>
    %327 = arith.mulf %325, %326 : vector<1x16xf32>
    %328 = vector.broadcast %318 : vector<1x128xf32> to vector<16x128xf32>
    %329 = arith.mulf %315, %328 : vector<16x128xf32>
    %cst_220 = arith.constant dense<0.000000e+00> : vector<16xf32>
    %330 = vector.multi_reduction <add>, %329, %cst_220 [1] : vector<16x128xf32> to vector<16xf32>
    %331 = vector.shape_cast %330 : vector<16xf32> to vector<16x1xf32>
    %332 = vector.shape_cast %320 : vector<1xf32> to vector<1x1xf32>
    %333 = vector.broadcast %332 : vector<1x1xf32> to vector<16x1xf32>
    %334 = arith.addf %331, %333 : vector<16x1xf32>
    %335 = arith.mulf %334, %1 : vector<16x1xf32>
    %336 = vector.broadcast %183 : f32 to vector<16x1xf32>
    %337 = arith.mulf %335, %336 : vector<16x1xf32>
    %c1_221 = arith.constant 1 : index
    %c0_222 = arith.constant 0 : index
    %338 = vector.load %arg11[%c1_221, %c0_222] : memref<2x128xf32, #tpu.memory_space<vmem>>, vector<1x128xf32>
    %339 = vector.shape_cast %338 : vector<1x128xf32> to vector<128xf32>
    %340 = vector.shape_cast %339 : vector<128xf32> to vector<1x128xf32>
    %341 = vector.broadcast %340 : vector<1x128xf32> to vector<16x128xf32>
    %342 = vector.broadcast %337 : vector<16x1xf32> to vector<16x128xf32>
    %343 = arith.cmpf olt, %341, %342 : vector<16x128xf32>
    %344 = arith.extui %343 : vector<16x128xi1> to vector<16x128xi32>
    %cst_223 = arith.constant dense<0> : vector<16xi32>
    %345 = vector.multi_reduction <add>, %344, %cst_223 [1] : vector<16x128xi32> to vector<16xi32>
    %346 = vector.shape_cast %345 : vector<16xi32> to vector<16x1xi32>
    %347 = tpu.iota {dimensions = array<i32: 1>} : vector<16x16xi32>
    %348 = vector.broadcast %346 : vector<16x1xi32> to vector<16x16xi32>
    %349 = arith.cmpi eq, %347, %348 : vector<16x16xi32>
    %350 = arith.extui %349 : vector<16x16xi1> to vector<16x16xi32>
    %351 = arith.sitofp %350 : vector<16x16xi32> to vector<16x16xf32>
    %c1_224 = arith.constant 1 : index
    %c0_225 = arith.constant 0 : index
    %c0_226 = arith.constant 0 : index
    %352 = vector.load %arg12[%c1_224, %c0_225, %c0_226] : memref<2x16x128xf32, #tpu.memory_space<vmem>>, vector<1x16x128xf32>
    %353 = vector.shape_cast %352 : vector<1x16x128xf32> to vector<16x128xf32>
    %cst_227 = arith.constant dense<0.000000e+00> : vector<16x128xf32>
    %354 = tpu.matmul %351, %353, %cst_227 {dimension_numbers = #tpu.dot_dimension_numbers<[1], [0], [0], [1], [0, 0, 1, 1], [], []>} : vector<16x16xf32>, vector<16x128xf32>, vector<16x128xf32> -> vector<16x128xf32>
    %355 = arith.addf %182, %354 : vector<16x128xf32>
    %c2_228 = arith.constant 2 : index
    %c0_229 = arith.constant 0 : index
    %356 = vector.load %arg17[%c2_228, %c0_229] : memref<24x128xf32, #tpu.memory_space<vmem>>, vector<16x128xf32>
    tpu.vector_store %arg17[%c2_228, %c0_229], %355 {strides = array<i32>} : memref<24x128xf32, #tpu.memory_space<vmem>>, vector<16x128xf32>,
    %c0_230 = arith.constant 0 : index
    %c0_231 = arith.constant 0 : index
    %357 = vector.load %arg17[%c0_230, %c0_231] : memref<24x128xf32, #tpu.memory_space<vmem>>, vector<16x128xf32>
    %c1_232 = arith.constant 1 : index
    %c0_233 = arith.constant 0 : index
    %358 = vector.load %arg17[%c1_232, %c0_233] : memref<24x128xf32, #tpu.memory_space<vmem>>, vector<16x128xf32>
    %c2_234 = arith.constant 2 : index
    %c0_235 = arith.constant 0 : index
    %359 = vector.load %arg17[%c2_234, %c0_235] : memref<24x128xf32, #tpu.memory_space<vmem>>, vector<16x128xf32>
    %c3_236 = arith.constant 3 : index
    %c0_237 = arith.constant 0 : index
    %360 = vector.load %arg17[%c3_236, %c0_237] : memref<24x128xf32, #tpu.memory_space<vmem>>, vector<16x128xf32>
    %c4_238 = arith.constant 4 : index
    %c0_239 = arith.constant 0 : index
    %361 = vector.load %arg17[%c4_238, %c0_239] : memref<24x128xf32, #tpu.memory_space<vmem>>, vector<16x128xf32>
    %362 = tpu.concatenate %357, %358, %359, %360, %361 in 1 : vector<16x128xf32>, vector<16x128xf32>, vector<16x128xf32>, vector<16x128xf32>, vector<16x128xf32> -> vector<16x640xf32>
    %363 = arith.truncf %362 : vector<16x640xf32> to vector<16x640xbf16>
    %c2_240 = arith.constant 2 : index
    %c0_241 = arith.constant 0 : index
    %c0_242 = arith.constant 0 : index
    %c0_243 = arith.constant 0 : index
    %364 = vector.load %arg5[%c2_240, %c0_241, %c0_242, %c0_243] : memref<3x3x640x128xbf16, #tpu.memory_space<vmem>>, vector<1x1x640x128xbf16>
    %365 = vector.shape_cast %364 : vector<1x1x640x128xbf16> to vector<640x128xbf16>
    %cst_244 = arith.constant dense<0.000000e+00> : vector<16x128xf32>
    %366 = tpu.matmul %363, %365, %cst_244 {dimension_numbers = #tpu.dot_dimension_numbers<[1], [0], [0], [1], [0, 0, 1, 1], [], []>} : vector<16x640xbf16>, vector<640x128xbf16>, vector<16x128xf32> -> vector<16x128xf32>
    %c2_245 = arith.constant 2 : index
    %c0_246 = arith.constant 0 : index
    %c0_247 = arith.constant 0 : index
    %367 = vector.load %arg6[%c2_245, %c0_246, %c0_247] : memref<3x3x128xf32, #tpu.memory_space<vmem>>, vector<1x1x128xf32>
    %368 = vector.shape_cast %367 : vector<1x1x128xf32> to vector<128xf32>
    %369 = vector.shape_cast %368 : vector<128xf32> to vector<1x128xf32>
    %370 = vector.broadcast %369 : vector<1x128xf32> to vector<16x128xf32>
    %371 = arith.addf %366, %370 : vector<16x128xf32>
    %cst_248 = arith.constant 0.000000e+00 : f32
    %372 = vector.broadcast %cst_248 : f32 to vector<16x128xf32>
    %373 = arith.maximumf %371, %372 : vector<16x128xf32>
    %cst_249 = arith.constant dense<0.000000e+00> : vector<16xf32>
    %374 = vector.multi_reduction <add>, %373, %cst_249 [1] : vector<16x128xf32> to vector<16xf32>
    %375 = vector.shape_cast %374 : vector<16xf32> to vector<16x1xf32>
    %cst_250 = arith.constant 1.280000e+02 : f32
    %376 = vector.broadcast %cst_250 : f32 to vector<16x1xf32>
    %377 = arith.divf %375, %376 : vector<16x1xf32>
    %378 = vector.broadcast %377 : vector<16x1xf32> to vector<16x128xf32>
    %379 = arith.subf %373, %378 : vector<16x128xf32>
    %380 = arith.mulf %379, %379 : vector<16x128xf32>
    %cst_251 = arith.constant dense<0.000000e+00> : vector<16xf32>
    %381 = vector.multi_reduction <add>, %380, %cst_251 [1] : vector<16x128xf32> to vector<16xf32>
    %382 = vector.shape_cast %381 : vector<16xf32> to vector<16x1xf32>
    %cst_252 = arith.constant 1.280000e+02 : f32
    %383 = vector.broadcast %cst_252 : f32 to vector<16x1xf32>
    %384 = arith.divf %382, %383 : vector<16x1xf32>
    %cst_253 = arith.constant 9.99999974E-6 : f32
    %385 = vector.broadcast %cst_253 : f32 to vector<16x1xf32>
    %386 = arith.addf %384, %385 : vector<16x1xf32>
    %387 = math.rsqrt %386 : vector<16x1xf32>
    %388 = vector.broadcast %387 : vector<16x1xf32> to vector<16x128xf32>
    %389 = arith.mulf %379, %388 : vector<16x128xf32>
    %c2_254 = arith.constant 2 : index
    %c0_255 = arith.constant 0 : index
    %c0_256 = arith.constant 0 : index
    %390 = vector.load %arg7[%c2_254, %c0_255, %c0_256] : memref<3x3x128xf32, #tpu.memory_space<vmem>>, vector<1x1x128xf32>
    %391 = vector.shape_cast %390 : vector<1x1x128xf32> to vector<128xf32>
    %392 = vector.shape_cast %391 : vector<128xf32> to vector<1x128xf32>
    %393 = vector.broadcast %392 : vector<1x128xf32> to vector<16x128xf32>
    %394 = arith.mulf %389, %393 : vector<16x128xf32>
    %c2_257 = arith.constant 2 : index
    %c0_258 = arith.constant 0 : index
    %c0_259 = arith.constant 0 : index
    %395 = vector.load %arg8[%c2_257, %c0_258, %c0_259] : memref<3x3x128xf32, #tpu.memory_space<vmem>>, vector<1x1x128xf32>
    %396 = vector.shape_cast %395 : vector<1x1x128xf32> to vector<128xf32>
    %397 = vector.shape_cast %396 : vector<128xf32> to vector<1x128xf32>
    %398 = vector.broadcast %397 : vector<1x128xf32> to vector<16x128xf32>
    %399 = arith.addf %394, %398 : vector<16x128xf32>
    %c2_260 = arith.constant 2 : index
    %c0_261 = arith.constant 0 : index
    %400 = vector.load %arg17[%c2_260, %c0_261] : memref<24x128xf32, #tpu.memory_space<vmem>>, vector<16x128xf32>
    tpu.vector_store %arg17[%c2_260, %c0_261], %399 {strides = array<i32>} : memref<24x128xf32, #tpu.memory_space<vmem>>, vector<16x128xf32>,
    %c0_262 = arith.constant 0 : index
    %c0_263 = arith.constant 0 : index
    %401 = vector.load %arg17[%c0_262, %c0_263] : memref<24x128xf32, #tpu.memory_space<vmem>>, vector<16x128xf32>
    %c1_264 = arith.constant 1 : index
    %c0_265 = arith.constant 0 : index
    %402 = vector.load %arg17[%c1_264, %c0_265] : memref<24x128xf32, #tpu.memory_space<vmem>>, vector<16x128xf32>
    %c2_266 = arith.constant 2 : index
    %c0_267 = arith.constant 0 : index
    %403 = vector.load %arg17[%c2_266, %c0_267] : memref<24x128xf32, #tpu.memory_space<vmem>>, vector<16x128xf32>
    %c3_268 = arith.constant 3 : index
    %c0_269 = arith.constant 0 : index
    %404 = vector.load %arg17[%c3_268, %c0_269] : memref<24x128xf32, #tpu.memory_space<vmem>>, vector<16x128xf32>
    %c4_270 = arith.constant 4 : index
    %c0_271 = arith.constant 0 : index
    %405 = vector.load %arg17[%c4_270, %c0_271] : memref<24x128xf32, #tpu.memory_space<vmem>>, vector<16x128xf32>
    %406 = tpu.concatenate %401, %402, %403, %404, %405 in 1 : vector<16x128xf32>, vector<16x128xf32>, vector<16x128xf32>, vector<16x128xf32>, vector<16x128xf32> -> vector<16x640xf32>
    %407 = arith.truncf %406 : vector<16x640xf32> to vector<16x640xbf16>
    %c2_272 = arith.constant 2 : index
    %c1_273 = arith.constant 1 : index
    %c0_274 = arith.constant 0 : index
    %c0_275 = arith.constant 0 : index
    %408 = vector.load %arg5[%c2_272, %c1_273, %c0_274, %c0_275] : memref<3x3x640x128xbf16, #tpu.memory_space<vmem>>, vector<1x1x640x128xbf16>
    %409 = vector.shape_cast %408 : vector<1x1x640x128xbf16> to vector<640x128xbf16>
    %cst_276 = arith.constant dense<0.000000e+00> : vector<16x128xf32>
    %410 = tpu.matmul %407, %409, %cst_276 {dimension_numbers = #tpu.dot_dimension_numbers<[1], [0], [0], [1], [0, 0, 1, 1], [], []>} : vector<16x640xbf16>, vector<640x128xbf16>, vector<16x128xf32> -> vector<16x128xf32>
    %c2_277 = arith.constant 2 : index
    %c1_278 = arith.constant 1 : index
    %c0_279 = arith.constant 0 : index
    %411 = vector.load %arg6[%c2_277, %c1_278, %c0_279] : memref<3x3x128xf32, #tpu.memory_space<vmem>>, vector<1x1x128xf32>
    %412 = vector.shape_cast %411 : vector<1x1x128xf32> to vector<128xf32>
    %413 = vector.shape_cast %412 : vector<128xf32> to vector<1x128xf32>
    %414 = vector.broadcast %413 : vector<1x128xf32> to vector<16x128xf32>
    %415 = arith.addf %410, %414 : vector<16x128xf32>
    %cst_280 = arith.constant 0.000000e+00 : f32
    %416 = vector.broadcast %cst_280 : f32 to vector<16x128xf32>
    %417 = arith.maximumf %415, %416 : vector<16x128xf32>
    %cst_281 = arith.constant dense<0.000000e+00> : vector<16xf32>
    %418 = vector.multi_reduction <add>, %417, %cst_281 [1] : vector<16x128xf32> to vector<16xf32>
    %419 = vector.shape_cast %418 : vector<16xf32> to vector<16x1xf32>
    %cst_282 = arith.constant 1.280000e+02 : f32
    %420 = vector.broadcast %cst_282 : f32 to vector<16x1xf32>
    %421 = arith.divf %419, %420 : vector<16x1xf32>
    %422 = vector.broadcast %421 : vector<16x1xf32> to vector<16x128xf32>
    %423 = arith.subf %417, %422 : vector<16x128xf32>
    %424 = arith.mulf %423, %423 : vector<16x128xf32>
    %cst_283 = arith.constant dense<0.000000e+00> : vector<16xf32>
    %425 = vector.multi_reduction <add>, %424, %cst_283 [1] : vector<16x128xf32> to vector<16xf32>
    %426 = vector.shape_cast %425 : vector<16xf32> to vector<16x1xf32>
    %cst_284 = arith.constant 1.280000e+02 : f32
    %427 = vector.broadcast %cst_284 : f32 to vector<16x1xf32>
    %428 = arith.divf %426, %427 : vector<16x1xf32>
    %cst_285 = arith.constant 9.99999974E-6 : f32
    %429 = vector.broadcast %cst_285 : f32 to vector<16x1xf32>
    %430 = arith.addf %428, %429 : vector<16x1xf32>
    %431 = math.rsqrt %430 : vector<16x1xf32>
    %432 = vector.broadcast %431 : vector<16x1xf32> to vector<16x128xf32>
    %433 = arith.mulf %423, %432 : vector<16x128xf32>
    %c2_286 = arith.constant 2 : index
    %c1_287 = arith.constant 1 : index
    %c0_288 = arith.constant 0 : index
    %434 = vector.load %arg7[%c2_286, %c1_287, %c0_288] : memref<3x3x128xf32, #tpu.memory_space<vmem>>, vector<1x1x128xf32>
    %435 = vector.shape_cast %434 : vector<1x1x128xf32> to vector<128xf32>
    %436 = vector.shape_cast %435 : vector<128xf32> to vector<1x128xf32>
    %437 = vector.broadcast %436 : vector<1x128xf32> to vector<16x128xf32>
    %438 = arith.mulf %433, %437 : vector<16x128xf32>
    %c2_289 = arith.constant 2 : index
    %c1_290 = arith.constant 1 : index
    %c0_291 = arith.constant 0 : index
    %439 = vector.load %arg8[%c2_289, %c1_290, %c0_291] : memref<3x3x128xf32, #tpu.memory_space<vmem>>, vector<1x1x128xf32>
    %440 = vector.shape_cast %439 : vector<1x1x128xf32> to vector<128xf32>
    %441 = vector.shape_cast %440 : vector<128xf32> to vector<1x128xf32>
    %442 = vector.broadcast %441 : vector<1x128xf32> to vector<16x128xf32>
    %443 = arith.addf %438, %442 : vector<16x128xf32>
    %c2_292 = arith.constant 2 : index
    %c0_293 = arith.constant 0 : index
    %444 = vector.load %arg17[%c2_292, %c0_293] : memref<24x128xf32, #tpu.memory_space<vmem>>, vector<16x128xf32>
    tpu.vector_store %arg17[%c2_292, %c0_293], %443 {strides = array<i32>} : memref<24x128xf32, #tpu.memory_space<vmem>>, vector<16x128xf32>,
    %c0_294 = arith.constant 0 : index
    %c0_295 = arith.constant 0 : index
    %445 = vector.load %arg17[%c0_294, %c0_295] : memref<24x128xf32, #tpu.memory_space<vmem>>, vector<16x128xf32>
    %c1_296 = arith.constant 1 : index
    %c0_297 = arith.constant 0 : index
    %446 = vector.load %arg17[%c1_296, %c0_297] : memref<24x128xf32, #tpu.memory_space<vmem>>, vector<16x128xf32>
    %c2_298 = arith.constant 2 : index
    %c0_299 = arith.constant 0 : index
    %447 = vector.load %arg17[%c2_298, %c0_299] : memref<24x128xf32, #tpu.memory_space<vmem>>, vector<16x128xf32>
    %c3_300 = arith.constant 3 : index
    %c0_301 = arith.constant 0 : index
    %448 = vector.load %arg17[%c3_300, %c0_301] : memref<24x128xf32, #tpu.memory_space<vmem>>, vector<16x128xf32>
    %c4_302 = arith.constant 4 : index
    %c0_303 = arith.constant 0 : index
    %449 = vector.load %arg17[%c4_302, %c0_303] : memref<24x128xf32, #tpu.memory_space<vmem>>, vector<16x128xf32>
    %450 = tpu.concatenate %445, %446, %447, %448, %449 in 1 : vector<16x128xf32>, vector<16x128xf32>, vector<16x128xf32>, vector<16x128xf32>, vector<16x128xf32> -> vector<16x640xf32>
    %451 = arith.truncf %450 : vector<16x640xf32> to vector<16x640xbf16>
    %c2_304 = arith.constant 2 : index
    %c2_305 = arith.constant 2 : index
    %c0_306 = arith.constant 0 : index
    %c0_307 = arith.constant 0 : index
    %452 = vector.load %arg5[%c2_304, %c2_305, %c0_306, %c0_307] : memref<3x3x640x128xbf16, #tpu.memory_space<vmem>>, vector<1x1x640x128xbf16>
    %453 = vector.shape_cast %452 : vector<1x1x640x128xbf16> to vector<640x128xbf16>
    %cst_308 = arith.constant dense<0.000000e+00> : vector<16x128xf32>
    %454 = tpu.matmul %451, %453, %cst_308 {dimension_numbers = #tpu.dot_dimension_numbers<[1], [0], [0], [1], [0, 0, 1, 1], [], []>} : vector<16x640xbf16>, vector<640x128xbf16>, vector<16x128xf32> -> vector<16x128xf32>
    %c2_309 = arith.constant 2 : index
    %c2_310 = arith.constant 2 : index
    %c0_311 = arith.constant 0 : index
    %455 = vector.load %arg6[%c2_309, %c2_310, %c0_311] : memref<3x3x128xf32, #tpu.memory_space<vmem>>, vector<1x1x128xf32>
    %456 = vector.shape_cast %455 : vector<1x1x128xf32> to vector<128xf32>
    %457 = vector.shape_cast %456 : vector<128xf32> to vector<1x128xf32>
    %458 = vector.broadcast %457 : vector<1x128xf32> to vector<16x128xf32>
    %459 = arith.addf %454, %458 : vector<16x128xf32>
    %cst_312 = arith.constant 0.000000e+00 : f32
    %460 = vector.broadcast %cst_312 : f32 to vector<16x128xf32>
    %461 = arith.maximumf %459, %460 : vector<16x128xf32>
    %cst_313 = arith.constant dense<0.000000e+00> : vector<16xf32>
    %462 = vector.multi_reduction <add>, %461, %cst_313 [1] : vector<16x128xf32> to vector<16xf32>
    %463 = vector.shape_cast %462 : vector<16xf32> to vector<16x1xf32>
    %cst_314 = arith.constant 1.280000e+02 : f32
    %464 = vector.broadcast %cst_314 : f32 to vector<16x1xf32>
    %465 = arith.divf %463, %464 : vector<16x1xf32>
    %466 = vector.broadcast %465 : vector<16x1xf32> to vector<16x128xf32>
    %467 = arith.subf %461, %466 : vector<16x128xf32>
    %468 = arith.mulf %467, %467 : vector<16x128xf32>
    %cst_315 = arith.constant dense<0.000000e+00> : vector<16xf32>
    %469 = vector.multi_reduction <add>, %468, %cst_315 [1] : vector<16x128xf32> to vector<16xf32>
    %470 = vector.shape_cast %469 : vector<16xf32> to vector<16x1xf32>
    %cst_316 = arith.constant 1.280000e+02 : f32
    %471 = vector.broadcast %cst_316 : f32 to vector<16x1xf32>
    %472 = arith.divf %470, %471 : vector<16x1xf32>
    %cst_317 = arith.constant 9.99999974E-6 : f32
    %473 = vector.broadcast %cst_317 : f32 to vector<16x1xf32>
    %474 = arith.addf %472, %473 : vector<16x1xf32>
    %475 = math.rsqrt %474 : vector<16x1xf32>
    %476 = vector.broadcast %475 : vector<16x1xf32> to vector<16x128xf32>
    %477 = arith.mulf %467, %476 : vector<16x128xf32>
    %c2_318 = arith.constant 2 : index
    %c2_319 = arith.constant 2 : index
    %c0_320 = arith.constant 0 : index
    %478 = vector.load %arg7[%c2_318, %c2_319, %c0_320] : memref<3x3x128xf32, #tpu.memory_space<vmem>>, vector<1x1x128xf32>
    %479 = vector.shape_cast %478 : vector<1x1x128xf32> to vector<128xf32>
    %480 = vector.shape_cast %479 : vector<128xf32> to vector<1x128xf32>
    %481 = vector.broadcast %480 : vector<1x128xf32> to vector<16x128xf32>
    %482 = arith.mulf %477, %481 : vector<16x128xf32>
    %c2_321 = arith.constant 2 : index
    %c2_322 = arith.constant 2 : index
    %c0_323 = arith.constant 0 : index
    %483 = vector.load %arg8[%c2_321, %c2_322, %c0_323] : memref<3x3x128xf32, #tpu.memory_space<vmem>>, vector<1x1x128xf32>
    %484 = vector.shape_cast %483 : vector<1x1x128xf32> to vector<128xf32>
    %485 = vector.shape_cast %484 : vector<128xf32> to vector<1x128xf32>
    %486 = vector.broadcast %485 : vector<1x128xf32> to vector<16x128xf32>
    %487 = arith.addf %482, %486 : vector<16x128xf32>
    %c2_324 = arith.constant 2 : index
    %c0_325 = arith.constant 0 : index
    %488 = vector.load %arg9[%c2_324, %c0_325] : memref<3x128xf32, #tpu.memory_space<vmem>>, vector<1x128xf32>
    %489 = vector.shape_cast %488 : vector<1x128xf32> to vector<128xf32>
    %490 = vector.shape_cast %489 : vector<128xf32> to vector<1x128xf32>
    %c2_326 = arith.constant 2 : index
    %c0_327 = arith.constant 0 : index
    %491 = vector.load %arg10[%c2_326, %c0_327] : memref<3x1xf32, #tpu.memory_space<vmem>>, vector<1x1xf32>
    %492 = vector.shape_cast %491 : vector<1x1xf32> to vector<1xf32>
    %cst_328 = arith.constant dense<0.000000e+00> : vector<1x16xf32>
    %493 = tpu.matmul %490, %487, %cst_328 {dimension_numbers = #tpu.dot_dimension_numbers<[1], [1], [0], [0], [0, 0, 1, 0], [], []>} : vector<1x128xf32>, vector<16x128xf32>, vector<1x16xf32> -> vector<1x16xf32>
    %494 = vector.shape_cast %492 : vector<1xf32> to vector<1x1xf32>
    %495 = vector.broadcast %494 : vector<1x1xf32> to vector<1x16xf32>
    %496 = arith.addf %493, %495 : vector<1x16xf32>
    %497 = arith.mulf %496, %3 : vector<1x16xf32>
    %cst_329 = arith.constant 1.000000e+00 : f32
    %498 = vector.broadcast %cst_329 : f32 to vector<1x16xf32>
    %499 = arith.mulf %497, %498 : vector<1x16xf32>
    %c0_330 = arith.constant 0 : index
    %c0_331 = arith.constant 0 : index
    %c0_332 = arith.constant 0 : index
    %500 = vector.load %arg13[%c0_330, %c0_331, %c0_332] : memref<1x16x128xf32, #tpu.memory_space<vmem>>, vector<1x16x128xf32>
    %501 = vector.shape_cast %500 : vector<1x16x128xf32> to vector<16x128xf32>
    %502 = vector.shape_cast %355 : vector<16x128xf32> to vector<1x16x128xf32>
    tpu.vector_store %arg13[%c0_330, %c0_331, %c0_332], %502 {strides = array<i32>} : memref<1x16x128xf32, #tpu.memory_space<vmem>>, vector<1x16x128xf32>,
    %c0_333 = arith.constant 0 : index
    %c0_334 = arith.constant 0 : index
    %c0_335 = arith.constant 0 : index
    %503 = vector.load %arg14[%c0_333, %c0_334, %c0_335] : memref<1x1x16xf32, #tpu.memory_space<vmem>>, vector<1x1x16xf32>
    %504 = vector.shape_cast %503 : vector<1x1x16xf32> to vector<1x16xf32>
    %505 = vector.shape_cast %154 : vector<1x16xf32> to vector<1x1x16xf32>
    tpu.vector_store %arg14[%c0_333, %c0_334, %c0_335], %505 {strides = array<i32>} : memref<1x1x16xf32, #tpu.memory_space<vmem>>, vector<1x1x16xf32>,
    %c0_336 = arith.constant 0 : index
    %c0_337 = arith.constant 0 : index
    %c0_338 = arith.constant 0 : index
    %506 = vector.load %arg15[%c0_336, %c0_337, %c0_338] : memref<1x1x16xf32, #tpu.memory_space<vmem>>, vector<1x1x16xf32>
    %507 = vector.shape_cast %506 : vector<1x1x16xf32> to vector<1x16xf32>
    %508 = vector.shape_cast %327 : vector<1x16xf32> to vector<1x1x16xf32>
    tpu.vector_store %arg15[%c0_336, %c0_337, %c0_338], %508 {strides = array<i32>} : memref<1x1x16xf32, #tpu.memory_space<vmem>>, vector<1x1x16xf32>,
    %c0_339 = arith.constant 0 : index
    %c0_340 = arith.constant 0 : index
    %c0_341 = arith.constant 0 : index
    %509 = vector.load %arg16[%c0_339, %c0_340, %c0_341] : memref<1x1x16xf32, #tpu.memory_space<vmem>>, vector<1x1x16xf32>
    %510 = vector.shape_cast %509 : vector<1x1x16xf32> to vector<1x16xf32>
    %511 = vector.shape_cast %499 : vector<1x16xf32> to vector<1x1x16xf32>
    tpu.vector_store %arg16[%c0_339, %c0_340, %c0_341], %511 {strides = array<i32>} : memref<1x1x16xf32, #tpu.memory_space<vmem>>, vector<1x1x16xf32>,
    return
  }
  func.func @transform_0(%arg0: i32) -> i32 {
    %c0_i32 = arith.constant 0 : i32
    %c0_i32_0 = arith.constant 0 : i32
    return %c0_i32 : i32
  }
  func.func @transform_1(%arg0: i32) -> (i32, i32, i32) {
    %c0_i32 = arith.constant 0 : i32
    %c0_i32_0 = arith.constant 0 : i32
    %c0_i32_1 = arith.constant 0 : i32
    return %arg0, %c0_i32, %c0_i32_0 : i32, i32, i32
  }
  func.func @transform_2(%arg0: i32) -> (i32, i32, i32) {
    %c0_i32 = arith.constant 0 : i32
    %c0_i32_0 = arith.constant 0 : i32
    %c0_i32_1 = arith.constant 0 : i32
    return %arg0, %c0_i32, %c0_i32_0 : i32, i32, i32
  }
  func.func @transform_3(%arg0: i32) -> (i32, i32, i32) {
    %c0_i32 = arith.constant 0 : i32
    %c0_i32_0 = arith.constant 0 : i32
    %c0_i32_1 = arith.constant 0 : i32
    return %arg0, %c0_i32, %c0_i32_0 : i32, i32, i32
  }
  func.func @transform_4(%arg0: i32) -> (i32, i32, i32, i32) {
    %c0_i32 = arith.constant 0 : i32
    %c0_i32_0 = arith.constant 0 : i32
    %c0_i32_1 = arith.constant 0 : i32
    %c0_i32_2 = arith.constant 0 : i32
    %c0_i32_3 = arith.constant 0 : i32
    return %c0_i32, %c0_i32_0, %c0_i32_1, %c0_i32_2 : i32, i32, i32, i32
  }
  func.func @transform_5(%arg0: i32) -> (i32, i32, i32) {
    %c0_i32 = arith.constant 0 : i32
    %c0_i32_0 = arith.constant 0 : i32
    %c0_i32_1 = arith.constant 0 : i32
    %c0_i32_2 = arith.constant 0 : i32
    return %c0_i32, %c0_i32_0, %c0_i32_1 : i32, i32, i32
  }
  func.func @transform_6(%arg0: i32) -> (i32, i32, i32) {
    %c0_i32 = arith.constant 0 : i32
    %c0_i32_0 = arith.constant 0 : i32
    %c0_i32_1 = arith.constant 0 : i32
    %c0_i32_2 = arith.constant 0 : i32
    return %c0_i32, %c0_i32_0, %c0_i32_1 : i32, i32, i32
  }
  func.func @transform_7(%arg0: i32) -> (i32, i32, i32) {
    %c0_i32 = arith.constant 0 : i32
    %c0_i32_0 = arith.constant 0 : i32
    %c0_i32_1 = arith.constant 0 : i32
    %c0_i32_2 = arith.constant 0 : i32
    return %c0_i32, %c0_i32_0, %c0_i32_1 : i32, i32, i32
  }
  func.func @transform_8(%arg0: i32) -> (i32, i32) {
    %c0_i32 = arith.constant 0 : i32
    %c0_i32_0 = arith.constant 0 : i32
    %c0_i32_1 = arith.constant 0 : i32
    return %c0_i32, %c0_i32_0 : i32, i32
  }
  func.func @transform_9(%arg0: i32) -> (i32, i32) {
    %c0_i32 = arith.constant 0 : i32
    %c0_i32_0 = arith.constant 0 : i32
    %c0_i32_1 = arith.constant 0 : i32
    return %c0_i32, %c0_i32_0 : i32, i32
  }
  func.func @transform_10(%arg0: i32) -> (i32, i32) {
    %c0_i32 = arith.constant 0 : i32
    %c0_i32_0 = arith.constant 0 : i32
    %c0_i32_1 = arith.constant 0 : i32
    return %c0_i32, %c0_i32_0 : i32, i32
  }
  func.func @transform_11(%arg0: i32) -> (i32, i32, i32) {
    %c0_i32 = arith.constant 0 : i32
    %c0_i32_0 = arith.constant 0 : i32
    %c0_i32_1 = arith.constant 0 : i32
    %c0_i32_2 = arith.constant 0 : i32
    return %c0_i32, %c0_i32_0, %c0_i32_1 : i32, i32, i32
  }
  func.func @transform_12(%arg0: i32) -> (i32, i32, i32) {
    %c0_i32 = arith.constant 0 : i32
    %c0_i32_0 = arith.constant 0 : i32
    %c0_i32_1 = arith.constant 0 : i32
    return %arg0, %c0_i32, %c0_i32_0 : i32, i32, i32
  }
  func.func @transform_13(%arg0: i32) -> (i32, i32, i32) {
    %c0_i32 = arith.constant 0 : i32
    %c0_i32_0 = arith.constant 0 : i32
    %c0_i32_1 = arith.constant 0 : i32
    return %arg0, %c0_i32, %c0_i32_0 : i32, i32, i32
  }
  func.func @transform_14(%arg0: i32) -> (i32, i32, i32) {
    %c0_i32 = arith.constant 0 : i32
    %c0_i32_0 = arith.constant 0 : i32
    %c0_i32_1 = arith.constant 0 : i32
    return %arg0, %c0_i32, %c0_i32_0 : i32, i32, i32
  }
  func.func @transform_15(%arg0: i32) -> (i32, i32, i32) {
    %c0_i32 = arith.constant 0 : i32
    %c0_i32_0 = arith.constant 0 : i32
    %c0_i32_1 = arith.constant 0 : i32
    return %arg0, %c0_i32, %c0_i32_0 : i32, i32, i32
  }
}

</mosaic_0001>

<bundles_post_ra>
// kernel: tpu_custom_call.1
= control target key start
LH: loop header
LB: loop body
LE: loop exit
PB: predicated region body
PF: predicated region fallthrough
CT: control target
= control target key end

     0   :  { %s9040_s0 = inlined_call_operand.hbm [shape: f32[2], index: 0, kind: input, shape index: {}]   ;;  %s9041_s1 = inlined_call_operand.hbm [shape: f32[2,16,128], index: 1, kind: input, shape index: {}]   ;;  %s9042_s2 = inlined_call_operand.vmem [shape: f32[2,16,1], index: 2, kind: input, shape index: {}]   ;;  %s9043_s3 = inlined_call_operand.hbm [shape: f32[2,1,16], index: 3, kind: input, shape index: {}]   ;;  %s9044_s4 = inlined_call_operand.hbm [shape: bf16[3,3,640,128], index: 4, kind: input, shape index: {}]   ;;  %s9045_s5 = inlined_call_operand.hbm [shape: f32[3,3,128], index: 5, kind: input, shape index: {}]   ;;  %s9046_s6 = inlined_call_operand.hbm [shape: f32[3,3,128], index: 6, kind: input, shape index: {}]   ;;  %s9047_s7 = inlined_call_operand.hbm [shape: f32[3,3,128], index: 7, kind: input, shape index: {}]   ;;  %s9048_s8 = inlined_call_operand.hbm [shape: f32[3,128], index: 8, kind: input, shape index: {}]   ;;  %s9049_s9 = inlined_call_operand.vmem [shape: f32[3,1], index: 9, kind: input, shape index: {}]   ;;  %s9050_s10 = inlined_call_operand.hbm [shape: f32[2,128], index: 10, kind: input, shape index: {}]   ;;  %s9051_s11 = inlined_call_operand.hbm [shape: f32[2,16,128], index: 11, kind: input, shape index: {}]   ;;  %s9052_s12 = inlined_call_operand.hbm [shape: f32[2,16,128], index: 12, kind: output, shape index: {0}]   ;;  %s9053_s13 = inlined_call_operand.hbm [shape: f32[2,1,16], index: 13, kind: output, shape index: {1}]   ;;  %s9054_s14 = inlined_call_operand.hbm [shape: f32[2,1,16], index: 14, kind: output, shape index: {2}]   ;;  %s9055_s15 = inlined_call_operand.hbm [shape: f32[2,1,16], index: 15, kind: output, shape index: {3}]  }
   0x1   :  { %9070 = sst [smem:[#allocation39_spill]] %s9040_s0 }
   0x2   :  { %9071 = sst [smem:[#allocation40_spill]] %s9041_s1 }
   0x3   :  { %9072 = sst [smem:[#allocation41_spill]] %s9044_s4 }
   0x4   :  { %9073 = sst [smem:[#allocation42_spill]] %s9045_s5 }
   0x5   :  { %9074 = sst [smem:[#allocation43_spill]] %s9046_s6 }
   0x6   :  { %9075 = sst [smem:[#allocation44_spill]] %s9047_s7 }
   0x7   :  { %9076 = sst [smem:[#allocation45_spill]] %s9048_s8 }
   0x8   :  { %9077 = sst [smem:[#allocation46_spill]] %s9050_s10 }
   0x9   :  { %9078 = sst [smem:[#allocation47_spill]] %s9051_s11 }
   0xa   :  { %9079 = sst [smem:[#allocation48_spill]] %s9054_s14 }
   0xb   :  { %9080 = sst [smem:[#allocation49_spill]] %s9055_s15 }
   0xc   :  { %21 = vsyncpa [#allocation6], 0 }
   0xd   :  { %22 = vsyncpa [#allocation4], 0 }
   0xe   :  { %24 = vsyncpa [#allocation4 + $0x1], 0 }
   0xf   :  { %25 = vsyncpa [#allocation9], 0 }
  0x10   :  { %27 = vsyncpa [#allocation9 + $0x1], 0 }
  0x11   :  { %28 = vsyncpa [#allocation12], 0 }
  0x12   :  { %29 = vsyncpa [#allocation15], 0 }
  0x13   :  { %30 = vsyncpa [#allocation18], 0 }
  0x14   :  { %31 = vsyncpa [#allocation5], 0 }
  0x15   :  { %33 = vsyncpa [#allocation5 + $0x1], 0 }
  0x16   :  { %34 = vsyncpa [#allocation22], 0 }
  0x17   :  { %36 = vsyncpa [#allocation22 + $0x1], 0 }
  0x18   :  { %37 = vsyncpa [#allocation25], 0 }
  0x19   :  { %39 = vsyncpa [#allocation25 + $0x1], 0  ;;  %s8372_s18 = smov 0   ;;  %s8374_s19 = smov 0  }
  0x1a   :  { %s8376_s20 = smov 0   ;;  %s8378_s21 = smov 0  }
  0x1b LB: > { %9081 = sst [smem:[#allocation36_spill]] %s8263_s20  ;;  %s8269_s22 = smov [#allocation10]   ;;  %s8267_s21 = sphi %s8378_s21, %s9124_s21   ;;  %s8263_s20 = sphi %s8376_s20, %s9126_s20   ;;  %s8259_s19 = sphi %s8374_s19, %s9128_s19   ;;  %s8255_s18 = sphi %s8372_s18, %s9127_s18  }
  0x1c   : > { %s442_s23 = sshll.u32 %s8269_s22, 4  ;;  %s8393_s24 = sadd.s32 4294967295, %s8267_s21   ;;  %s443_s23 = int_to_ptr.vmem [resolvable:$true] %s442_s23 }
  0x1d   : > { %p6139_p0 = scmp.ge.s32.totalorder %s8267_s21, 1  ;;  %p9063_p1 = scmp.eq.s32.totalorder %s8393_s24, 0 }
  0x1e   : > { %p421_p2 = scmp.lt.s32.totalorder %s8267_s21, 3  ;;  %s8270_s26 = smov [#allocation11]  }
  0x1f   : > { %s455_s27 = sshll.u32 %s8270_s26, 4  ;;  %s8271_s29 = smov [#allocation14]   ;;  %s8411_s27 = int_to_ptr.vmem [resolvable:$true] %s455_s27 }
  0x20   : > { %p8398_p3 = pnand %p6139_p0, %p421_p2  ;;  %s481_s30 = sshll.u32 %s8271_s29, 4  ;;  %s8413_s30 = int_to_ptr.vmem [resolvable:$true] %s481_s30 }
  0x21   : > { %s7855_s17 = scalar_lea.vmem %s443_s23, 46080  ;;  %p7863_p11 = scmp.lt.s32.totalorder %s443_s23, %s443_s23 }
  0x22   : > { %s9082_s25 = scalar_select %p8398_p3, 1, 0 }
  0x23   : > { %p7328_p5 = pneg %p8398_p3  ;;  %p7856_p8 = scmp.ne.s32.totalorder %s443_s23, %s7855_s17 }
  0x24   : > { %p7864_p12 = scmp.lt.s32.totalorder %s7855_s17, %s7855_s17 }
  0x25   : > { %p8407_p6 = pnand %p7328_p5, %p9063_p1 }
  0x26   : > { %p7865_p13 = por %p7864_p12, %p7863_p11 }
  0x27   : > { %p8417_p7 = pneg %p8407_p6 }
  0x29   : > { %p7858_p9 = pnand %p7856_p8, %p8417_p7 }
  0x2b   : > { %p7859_p10 = pneg %p7858_p9 }
  0x2d   : > { %p7866_p0 = pnand %p7865_p13, %p7859_p10 }
  0x2f   : > { %7869 = shalt.err (!%p7866_p0)
}
  0x30   : > { %s9058_s22 = smov 64   ;;  %s9059_s26 = smov 4  }
  0x31   : > { %s9085_s4 = sld [smem:[#allocation41_spill]]  ;;  %s7881_s14 = scalar_lea.vmem %s8411_s27, 192 }
  0x32   : > { %p7882_p2 = scmp.ne.s32.totalorder %s8411_s27, %s7881_s14  ;;  %p7889_p9 = scmp.lt.s32.totalorder %s8411_s27, %s8411_s27 }
  0x33   : > { %p7890_p10 = scmp.lt.s32.totalorder %s7881_s14, %s7881_s14 }
  0x34   : > { %p7884_p5 = pnand %p7882_p2, %p8417_p7 }
  0x35   : > { %p7891_p11 = por %p7890_p10, %p7889_p9 }
  0x36   : > { %p7885_p8 = pneg %p7884_p5 }
  0x37   : > { %7334 = dma.hbm_to_vmem [thread:$0]  (!%p8407_p6), %s9085_s4, 46080, %s443_s23, [#allocation9], %s9058_s22, %s9058_s22, %s9059_s26  }
  0x38   : > { %p7892_p12 = pnand %p7891_p11, %p7885_p8 }
  0x3a   : > { %7895 = shalt.err (!%p7892_p12)
}
  0x3b   : > { %s9086_s5 = sld [smem:[#allocation42_spill]]  ;;  %s7907_s23 = scalar_lea.vmem %s8413_s30, 192 }
  0x3c   : > { %p7908_p13 = scmp.ne.s32.totalorder %s8413_s30, %s7907_s23  ;;  %p7915_p5 = scmp.lt.s32.totalorder %s8413_s30, %s8413_s30 }
  0x3d   : > { %p7916_p8 = scmp.lt.s32.totalorder %s7907_s23, %s7907_s23 }
  0x3e   : > { %p7910_p0 = pnand %p7908_p13, %p8417_p7 }
  0x3f   : > { %p7917_p9 = por %p7916_p8, %p7915_p5 }
  0x40   : > { %p7911_p2 = pneg %p7910_p0 }
  0x41   : > { %7337 = dma.hbm_to_vmem [thread:$0]  (!%p8407_p6), %s9086_s5, 192, %s8411_s27, [#allocation12], %s9058_s22, %s9058_s22, %s9059_s26  }
  0x42   : > { %p7918_p10 = pnand %p7917_p9, %p7911_p2 }
  0x44   : > { %7921 = shalt.err (!%p7918_p10)
}
  0x45   : > { %s9087_s7 = sld [smem:[#allocation44_spill]]  ;;  %s8274_s27 = smov [#allocation17]  }
  0x46   : > { %s509_s17 = sshll.u32 %s8274_s27, 4  ;;  %s510_s17 = int_to_ptr.vmem [resolvable:$true] %s509_s17 }
  0x47   : > { %s7933_s15 = scalar_lea.vmem %s510_s17, 32  ;;  %p7941_p0 = scmp.lt.s32.totalorder %s510_s17, %s510_s17 }
  0x48   : > { %p7934_p11 = scmp.ne.s32.totalorder %s510_s17, %s7933_s15  ;;  %p7942_p2 = scmp.lt.s32.totalorder %s7933_s15, %s7933_s15 }
  0x4a   : > { %p7936_p12 = pnand %p7934_p11, %p8417_p7  ;;  %p7943_p5 = por %p7942_p2, %p7941_p0 }
  0x4b   : > { %7343 = dma.hbm_to_vmem [thread:$0]  (!%p8407_p6), %s9087_s7, 192, %s8413_s30, [#allocation15], %s9058_s22, %s9058_s22, %s9059_s26  }
  0x4c   : > { %p7937_p13 = pneg %p7936_p12 }
  0x4e   : > { %p7944_p8 = pnand %p7943_p5, %p7937_p13 }
  0x50   : > { %7947 = shalt.err (!%p7944_p8)
}
  0x51   : > { %s9088_s10 = sld [smem:[#allocation46_spill]]  ;;  %s8275_s30 = smov [#allocation3]  }
  0x52   : > { %s9089_s0 = sld [smem:[#allocation39_spill]]  ;;  %s8276_s27 = smov [#allocation13]  }
  0x53   : > { %s468_s22 = sshll.u32 %s8276_s27, 4  ;;  %s8277_s15 = smov [#allocation16]   ;;  %s469_s22 = int_to_ptr.vmem [resolvable:$true] %s468_s22 }
  0x54   : > { %s495_s26 = sshll.u32 %s8277_s15, 4  ;;  %s7970_s5 = scalar_lea.vmem %s469_s22, 192  ;;  %s496_s26 = int_to_ptr.vmem [resolvable:$true] %s495_s26 }
  0x55   : > { %p7971_p9 = scmp.ne.s32.totalorder %s469_s22, %s7970_s5  ;;  %p7978_p12 = scmp.lt.s32.totalorder %s469_s22, %s469_s22 }
  0x56   : > { %p7979_p13 = scmp.lt.s32.totalorder %s7970_s5, %s7970_s5 }
  0x57   : > { %7349 = dma.hbm_to_vmem [thread:$0]  (!%p8407_p6), %s9088_s10, 32, %s510_s17, [#allocation18]  }
  0x58   : > { %7331 = dma.hbm_to_smem (!%p8407_p6), %s9089_s0, 16, %s8275_s30, [#allocation6]  }
  0x59   : > { %p7973_p10 = pnand %p7971_p9, %p8417_p7  ;;  %p7980_p0 = por %p7979_p13, %p7978_p12 }
  0x5b   : > { %p7974_p11 = pneg %p7973_p10 }
  0x5d   : > { %p7981_p2 = pnand %p7980_p0, %p7974_p11 }
  0x5f   : > { %7984 = shalt.err (!%p7981_p2)
}
  0x60   : > { %s9090_s4 = smov 4   ;;  %s9091_s17 = smov 64  }
  0x61   : > { %s9092_s6 = sld [smem:[#allocation43_spill]]  ;;  %s7996_s14 = scalar_lea.vmem %s496_s26, 64 }
  0x62   : > { %p7997_p5 = scmp.ne.s32.totalorder %s496_s26, %s7996_s14  ;;  %p8004_p10 = scmp.lt.s32.totalorder %s496_s26, %s496_s26 }
  0x63   : > { %p8005_p12 = scmp.lt.s32.totalorder %s7996_s14, %s7996_s14 }
  0x64   : > { %p7999_p8 = pnand %p7997_p5, %p8417_p7 }
  0x65   : > { %p8006_p11 = por %p8005_p12, %p8004_p10 }
  0x66   : > { %p8000_p9 = pneg %p7999_p8 }
  0x67   : > { %7340 = dma.hbm_to_vmem [thread:$0]  (!%p8407_p6), %s9092_s6, 192, %s469_s22, [#allocation12], %s9091_s17, %s9091_s17, %s9090_s4  }
  0x68   : > { %p8007_p13 = pnand %p8006_p11, %p8000_p9 }
  0x6a   : > { %8010 = shalt.err (!%p8007_p13)
}
  0x6b   : > { %s9093_s8 = sld [smem:[#allocation45_spill]]  ;;  %s8278_s27 = smov [#allocation19]  }
  0x6c   : > { %s519_s22 = sshll.u32 %s8278_s27, 4  ;;  %s520_s22 = int_to_ptr.vmem [resolvable:$true] %s519_s22 }
  0x6d   : > { %s8022_s15 = scalar_lea.vmem %s520_s22, 512  ;;  %p8030_p8 = scmp.lt.s32.totalorder %s520_s22, %s520_s22 }
  0x6e   : > { %p8023_p0 = scmp.ne.s32.totalorder %s520_s22, %s8022_s15  ;;  %p8031_p4 = scmp.lt.s32.totalorder %s8022_s15, %s8022_s15 }
  0x70   : > { %p8025_p2 = pnand %p8023_p0, %p8417_p7  ;;  %p8032_p10 = por %p8031_p4, %p8030_p8 }
  0x71   : > { %7346 = dma.hbm_to_vmem [thread:$0]  (!%p8407_p6), %s9093_s8, 64, %s496_s26, [#allocation15]  }
  0x72   : > { %p8026_p5 = pneg %p8025_p2 }
  0x74   : > { %p8033_p9 = pnand %p8032_p10, %p8026_p5 }
  0x76   : > { %8036 = shalt.err (!%p8033_p9)
}
  0x77   : > { %s9060_s4 = smov 128   ;;  %s9061_s16 = smov 8  }
  0x78   : > { %s9094_s11 = sld [smem:[#allocation47_spill]]  ;;  %s9062_s23 = sadd.s32 4294967294, %s8267_s21  }
  0x79   : > { %s8502_s30 = sadd.s32 1, %s8267_s21   ;;  %s73_s5 = sadd.s32 1, %s8263_s20 }
  0x7a   : > { %9095 = sst [smem:[#allocation37_spill]] %s8502_s30  ;;  %s70_s14 = ssub.s32 %s8267_s21, %s8502_s30 }
  0x7b   : > { %p71_p4 = scmp.eq.s32.totalorder %s70_s14, 0  ;;  %p80_p7 = scmp.ne.s32.totalorder %s8263_s20, %s8259_s19 }
  0x7c   : > { %p81_p12 = scmp.eq.s32.totalorder %s8267_s21, 0  ;;  %p86_p11 = scmp.ne.s32.totalorder %s8259_s19, %s8255_s18 }
  0x7d   : > { %s8513_s28 = scalar_select %p71_p4, %s8263_s20, %s73_s5  }
  0x7e   : > { %7352 = dma.hbm_to_vmem [thread:$0]  (!%p8407_p6), %s9094_s11, 512, %s520_s22, [#allocation18], %s9060_s4, %s9060_s4, %s9061_s16  }
  0x7f   : > { %9096 = sst [smem:[#allocation38_spill]] %s8513_s28  ;;  %p8515_p13 = por %p81_p12, %p80_p7 }
  0x80   : > { %p8521_p6 = por %p9063_p1, %p86_p11  ;;  %p330_p0 = scmp.eq.s32.totalorder %s8393_s24, 1 }
  0x81   : > { %p336_p2 = scmp.eq.s32.totalorder %s9062_s23, 1  ;;  %p7381_p5 = scmp.lt.s32.totalorder %s8267_s21, 2 }
  0x82   : > { %s9098_s27 = scalar_select %p8521_p6, 1, 0 }
  0x83   : > { %s8530_s22 = sand.u32 1, %s8263_s20   ;;  %p8532_p8 = por %p330_p0, %p80_p7 }
  0x84   : > { %p8536_p10 = por %p336_p2, %p86_p11  ;;  %s6149_s17 = sshll.u32 %s8530_s22, 4 }
  0x85   : > { %s9099_s15 = scalar_select %p8532_p8, 1, 0 }
  0x86   : > { %s9100_s26 = scalar_select %p8536_p10, 1, 0 }
  0x87   : > { %s6572_s14 = sshll.u32 %s8267_s21, 8  ;;  %s9101_s1 = sld [smem:[#allocation40_spill]] }
  0x88   : > { %s537_s23 = scalar_lea.vmem [#allocation7], %s6149_s17  ;;  %p8551_p9 = pnand %p7381_p5, %p8515_p13 }
  0x89   : > { %s544_s0 = sshll.u32 %s537_s23, 4  ;;  %s534_s8 = scalar_lea.sflag [#allocation4], %s8530_s22  ;;  %s8547_s0 = int_to_ptr.vmem [resolvable:$true] %s544_s0 }
  0x8a   : > { %p8039_p7 = pneg %p8551_p9 }
  0x8d   : > { %s8545_s16 = scalar_lea.hbm %s9101_s1, %s6572_s14  ;;  %s8042_s29 = scalar_lea.hbm %s9101_s1, 512 }
  0x8e   : > { %s8037_s10 = scalar_lea.hbm %s8545_s16, 256  ;;  %p8043_p13 = scmp.lt.s32.totalorder %s8545_s16, %s9101_s1 }
  0x8f   : > { %p8038_p4 = scmp.ne.s32.totalorder %s8545_s16, %s8037_s10  ;;  %p8044_p0 = scmp.lt.s32.totalorder %s8042_s29, %s8037_s10 }
  0x91   : > { %p8040_p12 = pnand %p8039_p7, %p8038_p4  ;;  %p8045_p2 = por %p8044_p0, %p8043_p13 }
  0x93   : > { %p8041_p11 = pneg %p8040_p12 }
  0x95   : > { %p8046_p5 = pnand %p8045_p2, %p8041_p11 }
  0x97   : > { %8049 = shalt.err (!%p8046_p5)
}
  0x98   : > { %s8050_s5 = scalar_lea.vmem %s8547_s0, 256  ;;  %s8281_s4 = smov [#allocation7]  }
  0x99   : > { %p8051_p1 = scmp.ne.s32.totalorder %s8547_s0, %s8050_s5  ;;  %s8055_s23 = sshll.u32 %s8281_s4, 4  ;;  %s8056_s23 = int_to_ptr.vmem [resolvable:$false] %s8055_s23 }
  0x9a   : > { %s8057_s7 = scalar_lea.vmem %s8056_s23, 512  ;;  %p8058_p10 = scmp.lt.s32.totalorder %s8547_s0, %s8056_s23 }
  0x9b   : > { %p8053_p4 = pnand %p8051_p1, %p8039_p7  ;;  %p8059_p8 = scmp.lt.s32.totalorder %s8057_s7, %s8050_s5 }
  0x9d   : > { %p8054_p12 = pneg %p8053_p4  ;;  %p8060_p6 = por %p8059_p8, %p8058_p10 }
  0x9f   : > { %p8061_p13 = pnand %p8060_p6, %p8054_p12 }
  0xa1   : > { %8064 = shalt.err (!%p8061_p13)
}
  0xa2   : > { %s9103_s10 = smov 8   ;;  %s9104_s29 = smov 128  }
  0xa3   : > { %7356 = dma.hbm_to_vmem [thread:$0]  (!%p8551_p9), %s8545_s16, 256, %s8547_s0, %s534_s8, %s9104_s29, %s9104_s29, %s9103_s10  }
  0xa4   : > { %s6152_s17 = sshll.u32 %s8267_s21, 4  ;;  %s565_s14 = scalar_lea.vmem [#allocation8], %s8530_s22 }
  0xa5   : > { %s572_s7 = sshll.u32 %s565_s14, 4  ;;  %s570_s23 = scalar_lea.hbm %s9043_s3, %s6152_s17  ;;  %s573_s7 = int_to_ptr.vmem [resolvable:$true] %s572_s7 }
  0xa6   : > { %s9105_s1 = sand.u32 1, %s8267_s21   ;;  %s8065_s28 = scalar_lea.hbm %s570_s23, 16 }
  0xa7   : > { %s563_s11 = scalar_lea.sflag [#allocation9], %s9105_s1  ;;  %p8066_p1 = scmp.ne.s32.totalorder %s570_s23, %s8065_s28 }
  0xa8   : > { %s8070_s0 = scalar_lea.hbm %s9043_s3, 32  ;;  %p8071_p10 = scmp.lt.s32.totalorder %s570_s23, %s9043_s3 }
  0xa9   : > { %p8068_p6 = pnand %p8066_p1, %p8039_p7  ;;  %p8072_p11 = scmp.lt.s32.totalorder %s8070_s0, %s8065_s28 }
  0xab   : > { %p8069_p8 = pneg %p8068_p6  ;;  %p8073_p0 = por %p8072_p11, %p8071_p10 }
  0xad   : > { %p8074_p2 = pnand %p8073_p0, %p8069_p8 }
  0xaf   : > { %8077 = shalt.err (!%p8074_p2)
}
  0xb0   : > { %s8078_s22 = scalar_lea.vmem %s573_s7, 16  ;;  %s8282_s1 = smov [#allocation8]  }
  0xb1   : > { %p8079_p5 = scmp.ne.s32.totalorder %s573_s7, %s8078_s22  ;;  %s8083_s10 = sshll.u32 %s8282_s1, 4  ;;  %s8084_s10 = int_to_ptr.vmem [resolvable:$false] %s8083_s10 }
  0xb2   : > { %s8085_s20 = scalar_lea.vmem %s8084_s10, 32  ;;  %p8086_p13 = scmp.lt.s32.totalorder %s573_s7, %s8084_s10 }
  0xb3   : > { %p8081_p4 = pnand %p8079_p5, %p8039_p7  ;;  %p8087_p1 = scmp.lt.s32.totalorder %s8085_s20, %s8078_s22 }
  0xb5   : > { %p8082_p12 = pneg %p8081_p4  ;;  %p8088_p6 = por %p8087_p1, %p8086_p13 }
  0xb7   : > { %p8089_p3 = pnand %p8088_p6, %p8082_p12 }
  0xb9   : > { %8092 = shalt.err (!%p8089_p3)
}
  0xba   : > { %7359 = dma.hbm_to_vmem [thread:$0]  (!%p8551_p9), %s570_s23, 16, %s573_s7, %s563_s11  }
  0xbb   : > { %p9106_p8 = scmp.ne.s32.totalorder %s9082_s25, 0 }
  0xbc   : > { %p9107_p10 = scmp.eq.s32.totalorder (!%p9106_p8), %s8393_s24, 0 }
  0xbd   : > { %581 = sbr.rel (%p9106_p8) target bundleno = 6657 (0x1a01), region = 68 }
  0xc2   : > { %8214 = dma.done.wait (%p9107_p10), [#allocation6], 16   ;;  %p9108_p7 = pmov %p9107_p10 }
  0xc3   : > { %s8614_s30 = sand.u32 1, %s8259_s19   ;;  %p9109_p3 = scmp.ne.s32.totalorder %s9098_s27, 0 }
  0xc4   : > { %8216 = vsyncadd (%p9108_p7), [#allocation6], 4294967280  ;;  %s6155_s28 = sshll.u32 %s8614_s30, 4  ;;  %s588_s29 = scalar_lea.sflag [#allocation4], %s8614_s30 }
  0xc5   : > { %s8620_s6 = scalar_lea.vmem [#allocation7], %s6155_s28 }
  0xc6   : > { %8218 = dma.done.wait (%p9109_p3), %s588_s29, 256  }
  0xc7   : > { %8220 = vsyncadd (%p9109_p3), %s588_s29, 4294967040  ;;  %s596_s11 = sand.u32 1, %s8393_s24   ;;  %s599_s17 = scalar_lea.vmem [#allocation8], %s8614_s30 }
  0xc8   : > { %s597_s25 = scalar_lea.sflag [#allocation9], %s596_s11 }
  0xc9   : > { %8222 = dma.done.wait (%p9109_p3), %s597_s25, 16  }
  0xca   : > { %8224 = vsyncadd (%p9109_p3), %s597_s25, 4294967280  ;;  %p9110_p9 = pmov %p9108_p7 }
  0xcb   : > { %p9111_p11 = pmov %p9108_p7 }
  0xcc   : > { %8226 = dma.done.wait (%p9110_p9), [#allocation9], 46080  }
  0xcd   : > { %8228 = vsyncadd (%p9111_p11), [#allocation9], 4294921216  ;;  %p9112_p0 = pmov %p9108_p7 }
  0xcf   : > { %8230 = dma.done.wait (%p9112_p0), [#allocation12], 384   ;;  %p9113_p2 = pmov %p9112_p0 }
  0xd0   : > { %p9114_p5 = pmov %p9112_p0 }
  0xd1   : > { %8232 = vsyncadd (%p9113_p2), [#allocation12], 4294966912 }
  0xd2   : > { %8234 = dma.done.wait (%p9114_p5), [#allocation15], 256   ;;  %p9115_p4 = pmov %p9112_p0 }
  0xd3   : > { %p9116_p12 = pmov %p9112_p0 }
  0xd4   : > { %8236 = vsyncadd (%p9115_p4), [#allocation15], 4294967040 }
  0xd5   : > { %8238 = dma.done.wait (%p9116_p12), [#allocation18], 544   ;;  %p9117_p13 = pmov %p9112_p0 }
  0xd7   : > { %8240 = vsyncadd (%p9117_p13), [#allocation18], 4294966752 }
  0xd8   : > { %632 = sfence }
  0xd9   : > { %v7442_v0 = vld [vmem:[#allocation10 + $0x78] sm:$0xff]   ;;  %v8283_v2 = vmov 0.0   ;;  %v7446_v5 = vld [vmem:[#allocation10 + $0x70] sm:$0xff]   ;;  %v7450_v9 = vld [vmem:[#allocation10 + $0x68] sm:$0xff]   ;;  %vm8284_vm0 = vmmov 0   ;;  %p696_p1 = scmp.lt.s32.totalorder %s8393_s24, 1 }
  0xda   : > { %v7443_v1 = vld [vmem:[#allocation10 + $0x38] sm:$0xff]   ;;  %705 = vst [vmem:[#allocation2] sm:$0x3] %v8283_v2  ;;  %706 = vst [vmem:[#allocation2 + $0x12] sm:$0x3] %v8283_v2  ;;  %6575 = vmatprep.subr.bf16.mxu0 %v7442_v0  ;;  %v7447_v6 = vld [vmem:[#allocation10 + $0x30] sm:$0xff]  }
  0xdb   : > { %v7444_v3 = vld [vmem:[#allocation10 + $0xf8] sm:$0xff]   ;;  %6576 = vmatpush3.bf16.msra.mxu0 %v7443_v1  ;;  %v7448_v7 = vld [vmem:[#allocation10 + $0xf0] sm:$0xff]   ;;  %v7451_v10 = vld [vmem:[#allocation10 + $0x28] sm:$0xff]   ;;  %s697_s27 = scalar_select %p696_p1, %s8393_s24, 1  ;;  %vm2375_vm3 = vcmask 130048   ;;  %vm5805_vm10 = vcmask 122880  }
  0xdc   : > { %v7445_v4 = vld [vmem:[#allocation10 + $0xb8] sm:$0xff]   ;;  %6597 = vmatprep.subr.bf16.mxu1 %v7444_v3  ;;  %6577 = vmatprep.subr.bf16.mxu0 %v7446_v5  ;;  %v7449_v8 = vld [vmem:[#allocation10 + $0xb0] sm:$0xff]   ;;  %v7452_v11 = vld [vmem:[#allocation10 + $0xe8] sm:$0xff]   ;;  %s709_s4 = sld [smem:[#allocation3]]  ;;  %s8842_s10 = scalar_lea.vmem [#allocation20], %s6155_s28 }
  0xdd   : > { %6598 = vmatpush3.bf16.msra.mxu1 %v7445_v4  ;;  %v7453_v12 = vld [vmem:[#allocation10 + $0xa8] sm:$0xff]   ;;  %v7454_v13 = vld [vmem:[#allocation10 + $0x60] sm:$0xff]   ;;  %v7458_v17 = vld [vmem:[#allocation10 + $0x58] sm:$0xff]   ;;  %s6573_s5 = sshll.u32 %s697_s27, 4  ;;  %s6300_s1 = sld [smem:[#allocation3 + $0x1]] }
  0xde   : > { %6599 = vmatprep.subr.bf16.mxu1 %v7448_v7  ;;  %v7455_v14 = vld [vmem:[#allocation10 + $0x20] sm:$0xff]   ;;  %v7459_v18 = vld [vmem:[#allocation10 + $0x18] sm:$0xff]   ;;  %v7462_v21 = vld [vmem:[#allocation10 + $0x50] sm:$0xff]   ;;  %s8732_s8 = scalar_lea.vmem %s9042_s2, %s6573_s5  ;;  %s689_s14 = scalar_lea.vmem [#allocation23], %s8614_s30 }
  0xdf   : > { %6578 = vmatpush3.bf16.msra.mxu0 %v7447_v6  ;;  %v7456_v15 = vld [vmem:[#allocation10 + $0xe0] sm:$0xff]   ;;  %v7460_v19 = vld [vmem:[#allocation10 + $0xd8] sm:$0xff]   ;;  %v7463_v22 = vld [vmem:[#allocation10 + $0x10] sm:$0xff]   ;;  %s5835_s7 = sshll.u32 %s8842_s10, 4  ;;  %s8929_s5 = sshll.u32 %s8393_s24, 4  ;;  %s8926_s7 = int_to_ptr.vmem [resolvable:$true] %s5835_s7 }
  0xe0   : > { %6579 = vmatprep.subr.bf16.mxu0 %v7450_v9  ;;  %v7457_v16 = vld [vmem:[#allocation10 + $0xa0] sm:$0xff]   ;;  %v7461_v20 = vld [vmem:[#allocation10 + $0x98] sm:$0xff]   ;;  %v7464_v23 = vld [vmem:[#allocation10 + $0xd0] sm:$0xff]   ;;  %s5849_s0 = scalar_lea.hbm %s9053_s13, %s8929_s5  ;;  %s8937_s16 = scalar_lea.sflag [#allocation22], %s596_s11 }
  0xe1   : > { %6600 = vmatpush3.bf16.msra.mxu1 %v7449_v8  ;;  %v7465_v24 = vld [vmem:[#allocation10 + $0x90] sm:$0xff]   ;;  %v7466_v25 = vld [vmem:[#allocation10 + $0x48] sm:$0xff]   ;;  %v7470_v29 = vld [vmem:[#allocation10 + $0x40] sm:$0xff]   ;;  %p9118_p8 = scmp.ne.s32.totalorder %s9099_s15, 0 }
  0xe2   : > { %6601 = vmatprep.subr.bf16.mxu1 %v7452_v11  ;;  %v7467_v26 = vld [vmem:[#allocation10 + $0x8] sm:$0xff]   ;;  %v7471_v30 = vld [vmem:[#allocation10] sm:$0xff]   ;;  %v7474_v35 = vld [vmem:[#allocation10 + $0x138] sm:$0xff]  }
  0xe3   : > { %6580 = vmatpush3.bf16.msra.mxu0 %v7451_v10  ;;  %v7468_v27 = vld [vmem:[#allocation10 + $0xc8] sm:$0xff]   ;;  %v7472_v31 = vld [vmem:[#allocation10 + $0xc0] sm:$0xff]   ;;  %v7475_v46 = vld [vmem:[#allocation10 + $0x130] sm:$0xff]  }
  0xe4   : > { %6581 = vmatprep.subr.bf16.mxu0 %v7454_v13  ;;  %v7469_v28 = vld [vmem:[#allocation10 + $0x88] sm:$0xff]   ;;  %v7473_v34 = vld [vmem:[#allocation10 + $0x80] sm:$0xff]   ;;  %v7478_v49 = vld [vmem:[#allocation10 + $0x118] sm:$0xff]  }
  0xe5   : > { %6602 = vmatpush3.bf16.msra.mxu1 %v7453_v12  ;;  %v8653_v32 = vld [vmem:[%s8620_s6] sm:$0xff]  ;;  %v8656_v33 = vld [vmem:[%s8620_s6 + $0x8] sm:$0xff] }
  0xe6   : > { %6603 = vmatprep.subr.bf16.mxu1 %v7456_v15  ;;  %710 = vst [vmem:[#allocation2 + $0x2] sm:$0xff] %v8653_v32  ;;  %711 = vst [vmem:[#allocation2 + $0xa] sm:$0xff] %v8656_v33  ;;  %v724_v43 = vpack.c.bf16 %v8656_v33, %v8653_v32  ;;  %v7476_v47 = vld [vmem:[#allocation10 + $0x128] sm:$0xff]   ;;  %v7477_v48 = vld [vmem:[#allocation10 + $0x120] sm:$0xff]  }
  0xe7   : > { %6582 = vmatpush3.bf16.msra.mxu0 %v7455_v14  ;;  %v7479_v50 = vld [vmem:[#allocation10 + $0x110] sm:$0xff]   ;;  %v7480_v51 = vld [vmem:[#allocation10 + $0x108] sm:$0xff]   ;;  %v7481_v52 = vld [vmem:[#allocation10 + $0x100] sm:$0xff]  }
  0xe8   : > { %6583 = vmatprep.subr.bf16.mxu0 %v7458_v17  ;;  %v6166_v62 = vld [vmem:[#allocation11] ss:$0 sm:$0xff] }
  0xe9   : > { %6604 = vmatpush3.bf16.msra.mxu1 %v7457_v16 }
  0xea   : > { %6605 = vmatprep.subr.bf16.mxu1 %v7460_v19 }
  0xeb   : > { %6584 = vmatpush3.bf16.msra.mxu0 %v7459_v18 }
  0xec   : > { %6585 = vmatprep.subr.bf16.mxu0 %v7462_v21 }
  0xed   : > { %6606 = vmatpush3.bf16.msra.mxu1 %v7461_v20  ;;  %v714_v36 = vld [vmem:[#allocation2 + $0x1] sm:$0xff]  ;;  %v715_v37 = vld [vmem:[#allocation2 + $0x9] sm:$0xff] }
  0xee   : > { %6607 = vmatprep.subr.bf16.mxu1 %v7464_v23  ;;  %v712_v38 = vld [vmem:[#allocation2] sm:$0xff]  ;;  %v723_v39 = vpack.c.bf16 %v715_v37, %v714_v36  ;;  %v713_v40 = vld [vmem:[#allocation2 + $0x8] sm:$0xff] }
  0xef   : > { %6586 = vmatpush3.bf16.msra.mxu0 %v7463_v22  ;;  %v718_v41 = vld [vmem:[#allocation2 + $0x3] sm:$0xff]  ;;  %v719_v42 = vld [vmem:[#allocation2 + $0xb] sm:$0xff]  ;;  %v722_v44 = vpack.c.bf16 %v713_v40, %v712_v38  ;;  %v7494_v40 = vld [vmem:[#allocation10 + $0x1a0] sm:$0xff]  }
  0xf0   : > { %6587 = vmatprep.subr.bf16.mxu0 %v7466_v25  ;;  %v725_v45 = vpack.c.bf16 %v719_v42, %v718_v41  ;;  %1084 = vmatprep.mubr.bf16.mxu0 %v723_v39  ;;  %v720_v53 = vld [vmem:[#allocation2 + $0x4] sm:$0xff]  ;;  %v721_v54 = vld [vmem:[#allocation2 + $0xc] sm:$0xff]  ;;  %v7495_v41 = vld [vmem:[#allocation10 + $0x160] sm:$0xff]  }
  0xf1   : > { %6608 = vmatpush3.bf16.msra.mxu1 %v7465_v24  ;;  %v726_v55 = vpack.c.bf16 %v721_v54, %v720_v53  ;;  %v7490_v36 = vld [vmem:[#allocation10 + $0x1a8] sm:$0xff]   ;;  %v7496_v42 = vld [vmem:[#allocation10 + $0x220] sm:$0xff]  }
  0xf2   : > { %6609 = vmatprep.subr.bf16.mxu1 %v7468_v27  ;;  %1125 = vmatprep.mubr.bf16.mxu1 %v725_v45  ;;  %v7483_v27 = vld [vmem:[#allocation10 + $0x178] sm:$0xff]   ;;  %v7491_v37 = vld [vmem:[#allocation10 + $0x168] sm:$0xff]  }
  0xf3   : > { %6588 = vmatpush3.bf16.msra.mxu0 %v7467_v26  ;;  %v7482_v26 = vld [vmem:[#allocation10 + $0x1b8] sm:$0xff]   ;;  %v7492_v38 = vld [vmem:[#allocation10 + $0x228] sm:$0xff]  }
  0xf4   : > { %6589 = vmatprep.subr.bf16.mxu0 %v7470_v29  ;;  %v7485_v29 = vld [vmem:[#allocation10 + $0x1f8] sm:$0xff]   ;;  %v7493_v39 = vld [vmem:[#allocation10 + $0x1e8] sm:$0xff]  }
  0xf5   : > { %6610 = vmatpush3.bf16.msra.mxu1 %v7469_v28  ;;  %v7484_v28 = vld [vmem:[#allocation10 + $0x238] sm:$0xff]   ;;  %v7507_v53 = vld [vmem:[#allocation10 + $0x148] sm:$0xff]  }
  0xf6   : > { %6611 = vmatprep.subr.bf16.mxu1 %v7472_v31  ;;  %v7487_v31 = vld [vmem:[#allocation10 + $0x170] sm:$0xff]   ;;  %v7499_v45 = vld [vmem:[#allocation10 + $0x158] sm:$0xff]   ;;  %v7508_v54 = vld [vmem:[#allocation10 + $0x208] sm:$0xff]  }
  0xf7   : > { %6590 = vmatpush3.bf16.msra.mxu0 %v7471_v30  ;;  %v7486_v30 = vld [vmem:[#allocation10 + $0x1b0] sm:$0xff]  }
  0xf8   : > { %7069 = vmatprep.subr.bf16.mxu0 %v8283_v2 }
  0xf9   : > { %6612 = vmatpush3.bf16.msra.mxu1 %v7473_v34  ;;  %v7488_v34 = vld [vmem:[#allocation10 + $0x230] sm:$0xff]  }
  0xfa   : > { %1085 = vmatmul.mubr.bf16.vlgmr.msra.gmra.mxu0 %v722_v44  ;;  %6628 = vmatprep.subr.bf16.mxu1 %v7482_v26  ;;  %v7498_v44 = vld [vmem:[#allocation10 + $0x198] sm:$0xff]   ;;  %v7517_v26 = vld [vmem:[#allocation10 + $0x260] sm:$0xff]  }
  0xfb   : > { %7070 = vmatpush3.bf16.msra.mxu0 %v7474_v35  ;;  %7085 = vmatprep.mubr.msk.bf16.mxu0 %vm8284_vm0, %v8283_v2  ;;  %v7489_v35 = vld [vmem:[#allocation10 + $0x1f0] sm:$0xff]  }
  0xfc   : > { %1126 = vmatmul.mubr.bf16.vlgmr.msra.gmra.mxu1 %v724_v43  ;;  %7071 = vmatprep.subr.bf16.mxu0 %v8283_v2  ;;  %v7497_v43 = vld [vmem:[#allocation10 + $0x1e0] sm:$0xff]  }
  0xfd   : > { %6629 = vmatpush3.bf16.msra.mxu1 %v7483_v27  ;;  %v7518_v27 = vld [vmem:[#allocation10 + $0x258] sm:$0xff]  }
  0xfe   : > { %6630 = vmatprep.subr.bf16.mxu1 %v7486_v30  ;;  %v7521_v30 = vld [vmem:[#allocation10 + $0x240] sm:$0xff]  }
  0xff   : > { %7072 = vmatpush3.bf16.msra.mxu0 %v7475_v46  ;;  %v7500_v46 = vld [vmem:[#allocation10 + $0x218] sm:$0xff]  }
 0x100   : > { %7073 = vmatprep.subr.bf16.mxu0 %v8283_v2 }
 0x101   : > { %6631 = vmatpush3.bf16.msra.mxu1 %v7487_v31 }
 0x102   : > { %6632 = vmatprep.subr.bf16.mxu1 %v7490_v36 }
 0x103   : > { %7074 = vmatpush3.bf16.msra.mxu0 %v7476_v47  ;;  %v7501_v47 = vld [vmem:[#allocation10 + $0x1d8] sm:$0xff]  }
 0x104   : > { %7075 = vmatprep.subr.bf16.mxu0 %v8283_v2 }
 0x105   : > { %6633 = vmatpush3.bf16.msra.mxu1 %v7491_v37 }
 0x106   : > { %6634 = vmatprep.subr.bf16.mxu1 %v7494_v40 }
 0x107   : > { %7076 = vmatpush3.bf16.msra.mxu0 %v7477_v48  ;;  %v7502_v48 = vld [vmem:[#allocation10 + $0x190] sm:$0xff]  }
 0x108   : > { %7077 = vmatprep.subr.bf16.mxu0 %v8283_v2 }
 0x109   : > { %6635 = vmatpush3.bf16.msra.mxu1 %v7495_v41 }
 0x10a   : > { %6636 = vmatprep.subr.bf16.mxu1 %v7498_v44 }
 0x10b   : > { %7078 = vmatpush3.bf16.msra.mxu0 %v7478_v49  ;;  %v7503_v49 = vld [vmem:[#allocation10 + $0x150] sm:$0xff]  }
 0x10c   : > { %7079 = vmatprep.subr.bf16.mxu0 %v8283_v2 }
 0x10d   : > { %6637 = vmatpush3.bf16.msra.mxu1 %v7499_v45 }
 0x10e   : > { %6638 = vmatprep.subr.bf16.mxu1 %v7502_v48 }
 0x10f   : > { %7080 = vmatpush3.bf16.msra.mxu0 %v7479_v50  ;;  %v7504_v50 = vld [vmem:[#allocation10 + $0x210] sm:$0xff]  }
 0x110   : > { %7081 = vmatprep.subr.bf16.mxu0 %v8283_v2 }
 0x111   : > { %6639 = vmatpush3.bf16.msra.mxu1 %v7503_v49 }
 0x113   : > { %7082 = vmatpush3.bf16.msra.mxu0 %v7480_v51  ;;  %v7505_v51 = vld [vmem:[#allocation10 + $0x1d0] sm:$0xff]  }
 0x114   : > { %7083 = vmatprep.subr.bf16.mxu0 %v8283_v2 }
 0x117   : > { %7084 = vmatpush3.bf16.msra.mxu0 %v7481_v52  ;;  %v7506_v52 = vld [vmem:[#allocation10 + $0x188] sm:$0xff]  }
 0x118   : > { %6650 = vmatprep.subr.bf16.mxu0 %v7484_v28  ;;  %6640 = vmatprep.subr.bf16.mxu1 %v7506_v52  ;;  %v7519_v28 = vld [vmem:[#allocation10 + $0x250] sm:$0xff]  }
 0x119   : > { %6641 = vmatpush3.bf16.msra.mxu1 %v7507_v53 }
 0x11a   : > { %7086 = vmatmul.mubr.bf16.vlgmr.msra.gmra.mxu0 %v726_v55  ;;  %v7509_v55 = vld [vmem:[#allocation10 + $0x1c8] sm:$0xff]  }
 0x11b   : > { %6651 = vmatpush3.bf16.msra.mxu0 %v7485_v29  ;;  %v7520_v29 = vld [vmem:[#allocation10 + $0x248] sm:$0xff]  }
 0x11c   : > { %6652 = vmatprep.subr.bf16.mxu0 %v7488_v34 }
 0x11f   : > { %6653 = vmatpush3.bf16.msra.mxu0 %v7489_v35 }
 0x120   : > { %6654 = vmatprep.subr.bf16.mxu0 %v7492_v38 }
 0x123   : > { %6655 = vmatpush3.bf16.msra.mxu0 %v7493_v39 }
 0x124   : > { %6656 = vmatprep.subr.bf16.mxu0 %v7496_v42  ;;  %v6209_v42 = vld [vmem:[#allocation11 + $0x1] ss:$0 sm:$0xff] }
 0x127   : > { %6657 = vmatpush3.bf16.msra.mxu0 %v7497_v43 }
 0x128   : > { %6658 = vmatprep.subr.bf16.mxu0 %v7500_v46 }
 0x12b   : > { %6659 = vmatpush3.bf16.msra.mxu0 %v7501_v47 }
 0x12c   : > { %6660 = vmatprep.subr.bf16.mxu0 %v7504_v50 }
 0x12f   : > { %6661 = vmatpush3.bf16.msra.mxu0 %v7505_v51 }
 0x130   : > { %6662 = vmatprep.subr.bf16.mxu0 %v7508_v54 }
 0x133   : > { %6663 = vmatpush3.bf16.msra.mxu0 %v7509_v55 }
 0x1ba   : > { %v6591_v56 = vpop.f32.mrf.mxu0 }
 0x1bc   : > { %v6592_v57 = vpop.f32.mrf.mxu0  ;;  %v6613_v58 = vpop.f32.mrf.mxu1 }
 0x1bd   : > { %v6593_v61 = vadd.f32 %v6592_v57, %v6591_v56  ;;  %v7510_v56 = vld [vmem:[#allocation10 + $0x180] sm:$0xff]  }
 0x1be   : > { %v6594_v59 = vpop.f32.mrf.mxu0  ;;  %v6614_v60 = vpop.f32.mrf.mxu1  ;;  %v7512_v57 = vld [vmem:[#allocation10 + $0x200] sm:$0xff]   ;;  %6642 = vmatprep.subr.bf16.mxu1 %v7510_v56 }
 0x1bf   : > { %v1087_v1 = vadd.f32 %v6593_v61, %v6166_v62  ;;  %v6615_v3 = vadd.f32 %v6614_v60, %v6613_v58  ;;  %v7511_v58 = vld [vmem:[#allocation10 + $0x140] sm:$0xff]   ;;  %6664 = vmatprep.subr.bf16.mxu0 %v7512_v57 }
 0x1c0   : > { %v6595_v63 = vpop.f32.mrf.mxu0  ;;  %v6616_v0 = vpop.f32.mrf.mxu1  ;;  %6643 = vmatpush3.bf16.msra.mxu1 %v7511_v58 }
 0x1c1   : > { %v6596_v4 = vadd.f32 %v6595_v63, %v6594_v59  ;;  %v1128_v8 = vadd.f32 %v6615_v3, %v1087_v1  ;;  %v7513_v59 = vld [vmem:[#allocation10 + $0x1c0] sm:$0xff]   ;;  %7089 = vmatprep.subr.bf16.mxu1 %v8283_v2 }
 0x1c2   : > { %v6617_v5 = vpop.f32.mrf.mxu1  ;;  %6665 = vmatpush3.bf16.msra.mxu0 %v7513_v59 }
 0x1c3   : > { %v1090_v6 = vadd.f32 %v6596_v4, %v6166_v62  ;;  %v6618_v7 = vadd.f32 %v6617_v5, %v6616_v0  ;;  %v6207_v4 = vld [vmem:[#allocation13] ss:$0 sm:$0xff] }
 0x1c5   : > { %v1131_v13 = vadd.f32 %v6618_v7, %v1090_v6  ;;  %v6208_v6 = vld [vmem:[#allocation14] ss:$0 sm:$0xff] }
 0x1da   : > { %v1168_v9 = vpop.f32.mrf.mxu0 }
 0x1db   : > { %v1169_v10 = vadd.f32 %v1168_v9, %v1128_v8 }
 0x1dc   : > { %v7087_v11 = vpop.f32.mrf.mxu0 }
 0x1dd   : > { %v1175_v12 = vmax.f32 %v1169_v10, 0.0 }
 0x1de   : > { %v1171_v14 = vpop.f32.mrf.mxu0 }
 0x1df   : > { %v1172_v15 = vadd.f32 %v1171_v14, %v1131_v13  ;;  %1177 = vadd.xlane.f32.xlu0 %v1175_v12 }
 0x1e0   : > { %v7088_v16 = vpop.f32.mrf.mxu0 }
 0x1e1   : > { %v1176_v17 = vmax.f32 %v1172_v15, 0.0 }
 0x1e3   : > { %1179 = vadd.xlane.f32.xlu0 %v1176_v17 }
 0x268   : > { %v1178_v18 = vpop.xlane.xlu0 %1177 }
 0x269   : > { %v1182_v19 = vmul.f32 0.0078125, %v1178_v18 }
 0x26b   : > { %v8672_v20 = vsub.f32 %v1175_v12, %v1182_v19 }
 0x26c   : > { %v1180_v21 = vpop.xlane.xlu0 %1179 }
 0x26d   : > { %v1183_v22 = vmul.f32 0.0078125, %v1180_v21  ;;  %v1186_v23 = vmul.f32 %v8672_v20, %v8672_v20 }
 0x26f   : > { %v8676_v24 = vsub.f32 %v1176_v17, %v1183_v22  ;;  %1188 = vadd.xlane.f32.xlu1 %v1186_v23  ;;  %v7514_v22 = vld [vmem:[#allocation10 + $0x278] sm:$0xff]  }
 0x271   : > { %v1187_v25 = vmul.f32 %v8676_v24, %v8676_v24 }
 0x273   : > { %1190 = vadd.xlane.f32.xlu1 %v1187_v25  ;;  %v7516_v25 = vld [vmem:[#allocation10 + $0x268] sm:$0xff]  }
 0x2f8   : > { %v1189_v60 = vpop.xlane.xlu1 %1188 }
 0x2f9   : > { %v1192_v61 = vmul.f32 0.0078125, %v1189_v60 }
 0x2fb   : > { %v1194_v62 = vadd.f32 1e-05, %v1192_v61 }
 0x2fc   : > { %v1191_v63 = vpop.xlane.xlu1 %1190 }
 0x2fd   : > { %7802 = vrsqrt.f32 %v1194_v62  ;;  %v1193_v0 = vmul.f32 0.0078125, %v1191_v63 }
 0x2ff   : > { %v1195_v1 = vadd.f32 1e-05, %v1193_v0 }
 0x301   : > { %7804 = vrsqrt.f32 %v1195_v1 }
 0x30a   : > { %v7803_v3 = vpop.eup %7802 }
 0x30b   : > { %v1198_v5 = vmul.f32 %v7803_v3, %v8672_v20 }
 0x30d   : > { %v1205_v7 = vmul.f32 %v6207_v4, %v1198_v5 }
 0x30e   : > { %v7805_v8 = vpop.eup %7804 }
 0x30f   : > { %v1212_v9 = vadd.f32 %v6208_v6, %v1205_v7  ;;  %v1199_v10 = vmul.f32 %v7805_v8, %v8676_v24  ;;  %v7515_v24 = vld [vmem:[#allocation10 + $0x270] sm:$0xff]   ;;  %v7523_v7 = vld [vmem:[#allocation10 + $0x2b8] sm:$0xff]  }
 0x310   : > { %v7524_v8 = vld [vmem:[#allocation10 + $0x378] sm:$0xff]  }
 0x311   : > { %1214 = vst [vmem:[#allocation2 + $0x2] sm:$0xff] %v1212_v9  ;;  %v1206_v11 = vmul.f32 %v6207_v4, %v1199_v10  ;;  %v7526_v10 = vld [vmem:[#allocation10 + $0x2f0] sm:$0xff]  }
 0x313   : > { %v1213_v12 = vadd.f32 %v6208_v6, %v1206_v11  ;;  %v7522_v6 = vld [vmem:[#allocation10 + $0x2f8] sm:$0xff]   ;;  %v7527_v11 = vld [vmem:[#allocation10 + $0x2b0] sm:$0xff]  }
 0x314   : > { %6681 = vmatprep.subr.bf16.mxu0 %v7522_v6  ;;  %v7557_v6 = vld [vmem:[#allocation10 + $0x3a0] sm:$0xff]  }
 0x315   : > { %1215 = vst [vmem:[#allocation2 + $0xa] sm:$0xff] %v1213_v12  ;;  %v1228_v23 = vpack.c.bf16 %v1213_v12, %v1212_v9  ;;  %v7525_v9 = vld [vmem:[#allocation10 + $0x338] sm:$0xff]   ;;  %v7528_v12 = vld [vmem:[#allocation10 + $0x370] sm:$0xff]  }
 0x318   : > { %v1218_v13 = vld [vmem:[#allocation2 + $0x1] sm:$0xff] }
 0x319   : > { %v1216_v19 = vld [vmem:[#allocation2] sm:$0xff] }
 0x31c   : > { %v1219_v14 = vld [vmem:[#allocation2 + $0x9] sm:$0xff] }
 0x31d   : > { %v1222_v15 = vld [vmem:[#allocation2 + $0x3] sm:$0xff]  ;;  %v1223_v16 = vld [vmem:[#allocation2 + $0xb] sm:$0xff]  ;;  %v1227_v17 = vpack.c.bf16 %v1219_v14, %v1218_v13 }
 0x31e   : > { %v1229_v18 = vpack.c.bf16 %v1223_v16, %v1222_v15  ;;  %v1217_v21 = vld [vmem:[#allocation2 + $0x8] sm:$0xff] }
 0x31f   : > { %v1226_v20 = vpack.c.bf16 %v1217_v21, %v1216_v19  ;;  %1589 = vmatprep.mubr.bf16.mxu1 %v1227_v17  ;;  %v1224_v31 = vld [vmem:[#allocation2 + $0x4] sm:$0xff]  ;;  %v1225_v34 = vld [vmem:[#allocation2 + $0xc] sm:$0xff]  ;;  %v7535_v19 = vld [vmem:[#allocation10 + $0x2a0] sm:$0xff]  }
 0x320   : > { %1630 = vmatprep.mubr.bf16.mxu0 %v1229_v18  ;;  %v1230_v35 = vpack.c.bf16 %v1225_v34, %v1224_v31  ;;  %v7529_v13 = vld [vmem:[#allocation10 + $0x330] sm:$0xff]   ;;  %v7530_v14 = vld [vmem:[#allocation10 + $0x2e8] sm:$0xff]   ;;  %v7534_v18 = vld [vmem:[#allocation10 + $0x2e0] sm:$0xff]  }
 0x321   : > { %1590 = vmatmul.mubr.bf16.vlgmr.msra.gmra.mxu1 %v1226_v20  ;;  %1631 = vmatmul.mubr.bf16.vlgmr.msra.gmra.mxu0 %v1228_v23  ;;  %v7531_v15 = vld [vmem:[#allocation10 + $0x2a8] sm:$0xff]   ;;  %v7536_v21 = vld [vmem:[#allocation10 + $0x360] sm:$0xff]   ;;  %v7538_v20 = vld [vmem:[#allocation10 + $0x2d8] sm:$0xff]  }
 0x322   : > { %7090 = vmatpush3.bf16.msra.mxu1 %v7514_v22  ;;  %7105 = vmatprep.mubr.msk.bf16.mxu1 %vm8284_vm0, %v8283_v2  ;;  %v7532_v16 = vld [vmem:[#allocation10 + $0x368] sm:$0xff]   ;;  %v7537_v22 = vld [vmem:[#allocation10 + $0x320] sm:$0xff]   ;;  %v7539_v23 = vld [vmem:[#allocation10 + $0x298] sm:$0xff]  }
 0x323   : > { %7091 = vmatprep.subr.bf16.mxu1 %v8283_v2  ;;  %6682 = vmatpush3.bf16.msra.mxu0 %v7523_v7  ;;  %v7533_v17 = vld [vmem:[#allocation10 + $0x328] sm:$0xff]   ;;  %v7558_v7 = vld [vmem:[#allocation10 + $0x398] sm:$0xff]  }
 0x324   : > { %6683 = vmatprep.subr.bf16.mxu0 %v7526_v10  ;;  %v7547_v31 = vld [vmem:[#allocation10 + $0x288] sm:$0xff]   ;;  %v7561_v10 = vld [vmem:[#allocation10 + $0x380] sm:$0xff]  }
 0x325   : > { %v7548_v34 = vld [vmem:[#allocation10 + $0x348] sm:$0xff]  }
 0x326   : > { %7092 = vmatpush3.bf16.msra.mxu1 %v7515_v24  ;;  %v7540_v24 = vld [vmem:[#allocation10 + $0x358] sm:$0xff]  }
 0x327   : > { %7093 = vmatprep.subr.bf16.mxu1 %v8283_v2  ;;  %6684 = vmatpush3.bf16.msra.mxu0 %v7527_v11 }
 0x328   : > { %6685 = vmatprep.subr.bf16.mxu0 %v7530_v14 }
 0x32a   : > { %7094 = vmatpush3.bf16.msra.mxu1 %v7516_v25  ;;  %v7541_v25 = vld [vmem:[#allocation10 + $0x318] sm:$0xff]  }
 0x32b   : > { %7095 = vmatprep.subr.bf16.mxu1 %v8283_v2  ;;  %6686 = vmatpush3.bf16.msra.mxu0 %v7531_v15 }
 0x32c   : > { %6687 = vmatprep.subr.bf16.mxu0 %v7534_v18 }
 0x32e   : > { %7096 = vmatpush3.bf16.msra.mxu1 %v7517_v26  ;;  %v7542_v26 = vld [vmem:[#allocation10 + $0x2d0] sm:$0xff]  }
 0x32f   : > { %7097 = vmatprep.subr.bf16.mxu1 %v8283_v2  ;;  %6688 = vmatpush3.bf16.msra.mxu0 %v7535_v19 }
 0x330   : > { %6689 = vmatprep.subr.bf16.mxu0 %v7538_v20 }
 0x332   : > { %7098 = vmatpush3.bf16.msra.mxu1 %v7518_v27  ;;  %v7543_v27 = vld [vmem:[#allocation10 + $0x290] sm:$0xff]  }
 0x333   : > { %7099 = vmatprep.subr.bf16.mxu1 %v8283_v2  ;;  %6690 = vmatpush3.bf16.msra.mxu0 %v7539_v23 }
 0x334   : > { %6691 = vmatprep.subr.bf16.mxu0 %v7542_v26 }
 0x336   : > { %7100 = vmatpush3.bf16.msra.mxu1 %v7519_v28  ;;  %v7544_v28 = vld [vmem:[#allocation10 + $0x350] sm:$0xff]  }
 0x337   : > { %7101 = vmatprep.subr.bf16.mxu1 %v8283_v2  ;;  %6692 = vmatpush3.bf16.msra.mxu0 %v7543_v27 }
 0x33a   : > { %7102 = vmatpush3.bf16.msra.mxu1 %v7520_v29  ;;  %v7545_v29 = vld [vmem:[#allocation10 + $0x310] sm:$0xff]  }
 0x33b   : > { %7103 = vmatprep.subr.bf16.mxu1 %v8283_v2 }
 0x33e   : > { %7104 = vmatpush3.bf16.msra.mxu1 %v7521_v30  ;;  %v7546_v30 = vld [vmem:[#allocation10 + $0x2c8] sm:$0xff]  }
 0x33f   : > { %6703 = vmatprep.subr.bf16.mxu1 %v7524_v8  ;;  %6693 = vmatprep.subr.bf16.mxu0 %v7546_v30  ;;  %v7559_v8 = vld [vmem:[#allocation10 + $0x390] sm:$0xff]  }
 0x340   : > { %6694 = vmatpush3.bf16.msra.mxu0 %v7547_v31 }
 0x341   : > { %7106 = vmatmul.mubr.bf16.vlgmr.msra.gmra.mxu1 %v1230_v35  ;;  %v7549_v35 = vld [vmem:[#allocation10 + $0x308] sm:$0xff]  }
 0x342   : > { %6704 = vmatpush3.bf16.msra.mxu1 %v7525_v9  ;;  %v7560_v9 = vld [vmem:[#allocation10 + $0x388] sm:$0xff]  }
 0x343   : > { %6705 = vmatprep.subr.bf16.mxu1 %v7528_v12 }
 0x346   : > { %6706 = vmatpush3.bf16.msra.mxu1 %v7529_v13 }
 0x347   : > { %6707 = vmatprep.subr.bf16.mxu1 %v7532_v16 }
 0x34a   : > { %6708 = vmatpush3.bf16.msra.mxu1 %v7533_v17 }
 0x34b   : > { %6709 = vmatprep.subr.bf16.mxu1 %v7536_v21  ;;  %v6252_v21 = vld [vmem:[#allocation11 + $0x2] ss:$0 sm:$0xff] }
 0x34e   : > { %6710 = vmatpush3.bf16.msra.mxu1 %v7537_v22 }
 0x34f   : > { %6711 = vmatprep.subr.bf16.mxu1 %v7540_v24 }
 0x352   : > { %6712 = vmatpush3.bf16.msra.mxu1 %v7541_v25 }
 0x353   : > { %6713 = vmatprep.subr.bf16.mxu1 %v7544_v28 }
 0x356   : > { %6714 = vmatpush3.bf16.msra.mxu1 %v7545_v29 }
 0x357   : > { %6715 = vmatprep.subr.bf16.mxu1 %v7548_v34 }
 0x35a   : > { %6716 = vmatpush3.bf16.msra.mxu1 %v7549_v35 }
 0x3e1   : > { %v6644_v36 = vpop.f32.mrf.mxu1  ;;  %v6666_v38 = vpop.f32.mrf.mxu0 }
 0x3e3   : > { %v6645_v37 = vpop.f32.mrf.mxu1  ;;  %v6667_v40 = vpop.f32.mrf.mxu0 }
 0x3e4   : > { %v6646_v41 = vadd.f32 %v6645_v37, %v6644_v36  ;;  %v6668_v47 = vadd.f32 %v6667_v40, %v6666_v38  ;;  %v7550_v36 = vld [vmem:[#allocation10 + $0x2c0] sm:$0xff]  }
 0x3e5   : > { %v6647_v39 = vpop.f32.mrf.mxu1  ;;  %v6669_v44 = vpop.f32.mrf.mxu0  ;;  %v7552_v37 = vld [vmem:[#allocation10 + $0x340] sm:$0xff]   ;;  %6695 = vmatprep.subr.bf16.mxu0 %v7550_v36 }
 0x3e6   : > { %v1592_v45 = vadd.f32 %v6646_v41, %v6209_v42  ;;  %v7551_v38 = vld [vmem:[#allocation10 + $0x280] sm:$0xff]   ;;  %6717 = vmatprep.subr.bf16.mxu1 %v7552_v37 }
 0x3e7   : > { %v6648_v43 = vpop.f32.mrf.mxu1  ;;  %v6670_v48 = vpop.f32.mrf.mxu0  ;;  %6696 = vmatpush3.bf16.msra.mxu0 %v7551_v38 }
 0x3e8   : > { %v6649_v46 = vadd.f32 %v6648_v43, %v6647_v39  ;;  %v1633_v50 = vadd.f32 %v6668_v47, %v1592_v45  ;;  %v6671_v52 = vadd.f32 %v6670_v48, %v6669_v44  ;;  %v7553_v39 = vld [vmem:[#allocation10 + $0x300] sm:$0xff]   ;;  %7109 = vmatprep.subr.bf16.mxu0 %v8283_v2  ;;  %v6250_v47 = vld [vmem:[#allocation13 + $0x1] ss:$0 sm:$0xff] }
 0x3e9   : > { %6718 = vmatpush3.bf16.msra.mxu1 %v7553_v39 }
 0x3ea   : > { %v1595_v49 = vadd.f32 %v6649_v46, %v6209_v42  ;;  %7129 = vmatprep.subr.mxu1 %v8283_v2 }
 0x3ec   : > { %v1636_v56 = vadd.f32 %v6671_v52, %v1595_v49  ;;  %v6251_v49 = vld [vmem:[#allocation14 + $0x1] ss:$0 sm:$0xff] }
 0x401   : > { %v1673_v51 = vpop.f32.mrf.mxu1 }
 0x402   : > { %v1674_v53 = vadd.f32 %v1673_v51, %v1633_v50 }
 0x403   : > { %v7107_v54 = vpop.f32.mrf.mxu1 }
 0x404   : > { %v1680_v55 = vmax.f32 %v1674_v53, 0.0 }
 0x405   : > { %v1676_v57 = vpop.f32.mrf.mxu1 }
 0x406   : > { %v1677_v58 = vadd.f32 %v1676_v57, %v1636_v56  ;;  %1682 = vadd.xlane.f32.xlu0 %v1680_v55 }
 0x407   : > { %v7108_v59 = vpop.f32.mrf.mxu1 }
 0x408   : > { %v1681_v60 = vmax.f32 %v1677_v58, 0.0 }
 0x40a   : > { %1684 = vadd.xlane.f32.xlu1 %v1681_v60 }
 0x48f   : > { %v1683_v61 = vpop.xlane.xlu0 %1682 }
 0x490   : > { %v1686_v62 = vmul.f32 0.0078125, %v1683_v61 }
 0x492   : > { %v8692_v63 = vsub.f32 %v1680_v55, %v1686_v62 }
 0x493   : > { %v1685_v0 = vpop.xlane.xlu1 %1684 }
 0x494   : > { %v1687_v1 = vmul.f32 0.0078125, %v1685_v0  ;;  %v1690_v3 = vmul.f32 %v8692_v63, %v8692_v63 }
 0x496   : > { %v8696_v4 = vsub.f32 %v1681_v60, %v1687_v1  ;;  %1692 = vadd.xlane.f32.xlu0 %v1690_v3  ;;  %v7554_v1 = vld [vmem:[#allocation10 + $0x3b8] sm:$0xff]  }
 0x498   : > { %v1691_v5 = vmul.f32 %v8696_v4, %v8696_v4 }
 0x49a   : > { %1694 = vadd.xlane.f32.xlu1 %v1691_v5  ;;  %v7556_v5 = vld [vmem:[#allocation10 + $0x3a8] sm:$0xff]  }
 0x51f   : > { %v1693_v40 = vpop.xlane.xlu0 %1692 }
 0x520   : > { %v1696_v41 = vmul.f32 0.0078125, %v1693_v40 }
 0x522   : > { %v1698_v42 = vadd.f32 1e-05, %v1696_v41 }
 0x523   : > { %v1695_v43 = vpop.xlane.xlu1 %1694 }
 0x524   : > { %7806 = vrsqrt.f32 %v1698_v42  ;;  %v1697_v44 = vmul.f32 0.0078125, %v1695_v43 }
 0x526   : > { %v1699_v45 = vadd.f32 1e-05, %v1697_v44 }
 0x528   : > { %7808 = vrsqrt.f32 %v1699_v45 }
 0x531   : > { %v7807_v46 = vpop.eup %7806 }
 0x532   : > { %v1702_v48 = vmul.f32 %v7807_v46, %v8692_v63 }
 0x534   : > { %v1709_v50 = vmul.f32 %v6250_v47, %v1702_v48 }
 0x535   : > { %v7809_v51 = vpop.eup %7808 }
 0x536   : > { %v1716_v52 = vadd.f32 %v6251_v49, %v1709_v50  ;;  %v1703_v53 = vmul.f32 %v7809_v51, %v8696_v4  ;;  %v7555_v4 = vld [vmem:[#allocation10 + $0x3b0] sm:$0xff]  }
 0x538   : > { %1718 = vst [vmem:[#allocation2 + $0x2] sm:$0xff] %v1716_v52  ;;  %v1710_v54 = vmul.f32 %v6250_v47, %v1703_v53 }
 0x53a   : > { %v1717_v55 = vadd.f32 %v6251_v49, %v1710_v54 }
 0x53c   : > { %1719 = vst [vmem:[#allocation2 + $0xa] sm:$0xff] %v1717_v55  ;;  %v1732_v3 = vpack.c.bf16 %v1717_v55, %v1716_v52  ;;  %v2302_v55 = vlaneseq }
 0x53f   : > { %v1722_v56 = vld [vmem:[#allocation2 + $0x1] sm:$0xff] }
 0x540   : > { %v1720_v62 = vld [vmem:[#allocation2] sm:$0xff] }
 0x543   : > { %v1723_v57 = vld [vmem:[#allocation2 + $0x9] sm:$0xff] }
 0x544   : > { %v1726_v58 = vld [vmem:[#allocation2 + $0x3] sm:$0xff]  ;;  %v1727_v59 = vld [vmem:[#allocation2 + $0xb] sm:$0xff]  ;;  %v1731_v60 = vpack.c.bf16 %v1723_v57, %v1722_v56  ;;  %v8716_v56 = vshrl.u32 %v2302_v55, 7 }
 0x545   : > { %v1733_v61 = vpack.c.bf16 %v1727_v59, %v1726_v58  ;;  %v1721_v0 = vld [vmem:[#allocation2 + $0x8] sm:$0xff] }
 0x546   : > { %v1730_v63 = vpack.c.bf16 %v1721_v0, %v1720_v62  ;;  %2093 = vmatprep.mubr.bf16.mxu0 %v1731_v60  ;;  %v1728_v11 = vld [vmem:[#allocation2 + $0x4] sm:$0xff]  ;;  %v1729_v12 = vld [vmem:[#allocation2 + $0xc] sm:$0xff]  ;;  %v2304_v57 = vsub.s32 0, %v8716_v56  ;;  %v2222_v60 = vld [vmem:[#allocation16] sm:$0x1] }
 0x547   : > { %2134 = vmatprep.mubr.bf16.mxu1 %v1733_v61  ;;  %v1734_v13 = vpack.c.bf16 %v1729_v12, %v1728_v11  ;;  %v6293_v59 = vld [vmem:[#allocation13 + $0x2] ss:$0 sm:$0xff]  ;;  %v6294_v62 = vld [vmem:[#allocation14 + $0x2] ss:$0 sm:$0xff]  ;;  %v702_v12 = vld [vmem:[%s8732_s8] sm:$0xff] }
 0x548   : > { %2094 = vmatmul.mubr.bf16.vlgmr.msra.gmra.mxu0 %v1730_v63  ;;  %2135 = vmatmul.mubr.bf16.vlgmr.msra.gmra.mxu1 %v1732_v3  ;;  %v7843_v56 = vld [vmem:[%s9049_s9 + $0x1] ss:$0 sm:$0xff] }
 0x549   : > { %7110 = vmatpush3.bf16.msra.mxu0 %v7554_v1  ;;  %7125 = vmatprep.mubr.msk.bf16.mxu0 %vm8284_vm0, %v8283_v2  ;;  %v2305_v1 = vrot.slane %v2222_v60, %v2304_v57 }
 0x54a   : > { %7111 = vmatprep.subr.bf16.mxu0 %v8283_v2  ;;  %7133 = vmatprep.mubr.msk.f32.mxu1 %vm8284_vm0, %v8283_v2 }
 0x54d   : > { %7112 = vmatpush3.bf16.msra.mxu0 %v7555_v4 }
 0x54e   : > { %7113 = vmatprep.subr.bf16.mxu0 %v8283_v2 }
 0x551   : > { %7114 = vmatpush3.bf16.msra.mxu0 %v7556_v5 }
 0x552   : > { %7115 = vmatprep.subr.bf16.mxu0 %v8283_v2 }
 0x555   : > { %7116 = vmatpush3.bf16.msra.mxu0 %v7557_v6 }
 0x556   : > { %7117 = vmatprep.subr.bf16.mxu0 %v8283_v2 }
 0x559   : > { %7118 = vmatpush3.bf16.msra.mxu0 %v7558_v7 }
 0x55a   : > { %7119 = vmatprep.subr.bf16.mxu0 %v8283_v2 }
 0x55d   : > { %7120 = vmatpush3.bf16.msra.mxu0 %v7559_v8 }
 0x55e   : > { %7121 = vmatprep.subr.bf16.mxu0 %v8283_v2 }
 0x561   : > { %7122 = vmatpush3.bf16.msra.mxu0 %v7560_v9  ;;  %v8285_v9 = vmov 0  }
 0x562   : > { %7123 = vmatprep.subr.bf16.mxu0 %v8283_v2  ;;  %7440 = vset.pattern.permute.xlu0 %v8285_v9 }
 0x563   : > { %7441 = vset.pattern.permute.xlu1 %v8285_v9 }
 0x565   : > { %7124 = vmatpush3.bf16.msra.mxu0 %v7561_v10  ;;  %v7842_v10 = vld [vmem:[%s9049_s9] ss:$0 sm:$0xff] }
 0x568   : > { %7126 = vmatmul.mubr.bf16.vlgmr.msra.gmra.mxu0 %v1734_v13 }
 0x608   : > { %v6697_v14 = vpop.f32.mrf.mxu0  ;;  %v6719_v16 = vpop.f32.mrf.mxu1 }
 0x60a   : > { %v6698_v15 = vpop.f32.mrf.mxu0  ;;  %v6720_v18 = vpop.f32.mrf.mxu1 }
 0x60b   : > { %v6699_v19 = vadd.f32 %v6698_v15, %v6697_v14  ;;  %v6721_v25 = vadd.f32 %v6720_v18, %v6719_v16  ;;  %v8735_v14 = vstv %s709_s4 }
 0x60c   : > { %v6700_v17 = vpop.f32.mrf.mxu0  ;;  %v6722_v20 = vpop.f32.mrf.mxu1 }
 0x60d   : > { %v2096_v23 = vadd.f32 %v6699_v19, %v6252_v21 }
 0x60e   : > { %v6701_v22 = vpop.f32.mrf.mxu0  ;;  %v6723_v26 = vpop.f32.mrf.mxu1 }
 0x60f   : > { %v6702_v24 = vadd.f32 %v6701_v22, %v6700_v17  ;;  %v2137_v28 = vadd.f32 %v6721_v25, %v2096_v23  ;;  %v6724_v30 = vadd.f32 %v6723_v26, %v6722_v20  ;;  %v703_v17 = vld [vmem:[%s8732_s8 + $0x8] sm:$0xff]  ;;  %v6295_v20 = vld [vmem:[#allocation17] ss:$0 sm:$0xff] }
 0x611   : > { %v2099_v27 = vadd.f32 %v6702_v24, %v6252_v21 }
 0x613   : > { %v2140_v36 = vadd.f32 %v6724_v30, %v2099_v27 }
 0x628   : > { %v2177_v29 = vpop.f32.mrf.mxu0 }
 0x629   : > { %v2178_v31 = vadd.f32 %v2177_v29, %v2137_v28 }
 0x62a   : > { %v7127_v34 = vpop.f32.mrf.mxu0 }
 0x62b   : > { %v2184_v35 = vmax.f32 %v2178_v31, 0.0 }
 0x62c   : > { %v2180_v37 = vpop.f32.mrf.mxu0 }
 0x62d   : > { %v2181_v38 = vadd.f32 %v2180_v37, %v2140_v36  ;;  %2186 = vadd.xlane.f32.xlu0 %v2184_v35  ;;  %v2374_v37 = vld [vmem:[#allocation19 + $0x8] sm:$0xff] }
 0x62e   : > { %v7128_v39 = vpop.f32.mrf.mxu0 }
 0x62f   : > { %v2185_v40 = vmax.f32 %v2181_v38, 0.0  ;;  %v2373_v38 = vld [vmem:[#allocation19] sm:$0xff]  ;;  %v7562_v39 = vld [vmem:[#allocation10 + $0x438] sm:$0xff]  }
 0x631   : > { %2188 = vadd.xlane.f32.xlu1 %v2185_v40 }
 0x6b6   : > { %v2187_v41 = vpop.xlane.xlu0 %2186 }
 0x6b7   : > { %v2190_v42 = vmul.f32 0.0078125, %v2187_v41  ;;  %v7565_v41 = vld [vmem:[#allocation10 + $0x478] sm:$0xff]  }
 0x6b9   : > { %v2192_v43 = vsub.f32 %v2184_v35, %v2190_v42  ;;  %v7568_v42 = vld [vmem:[#allocation10 + $0x4b0] sm:$0xff]  }
 0x6ba   : > { %v2189_v44 = vpop.xlane.xlu1 %2188 }
 0x6bb   : > { %v2191_v45 = vmul.f32 0.0078125, %v2189_v44  ;;  %v2194_v46 = vmul.f32 %v2192_v43, %v2192_v43  ;;  %v7572_v44 = vld [vmem:[#allocation10 + $0x4a8] sm:$0xff]  }
 0x6bd   : > { %v2193_v47 = vsub.f32 %v2185_v40, %v2191_v45  ;;  %2196 = vadd.xlane.f32.xlu0 %v2194_v46  ;;  %v7564_v40 = vld [vmem:[#allocation10 + $0x4b8] sm:$0xff]   ;;  %v7573_v45 = vld [vmem:[#allocation10 + $0x468] sm:$0xff]  }
 0x6be   : > { %6763 = vmatprep.subr.bf16.mxu0 %v7564_v40 }
 0x6bf   : > { %v2195_v48 = vmul.f32 %v2193_v47, %v2193_v47  ;;  %6764 = vmatpush3.bf16.msra.mxu0 %v7565_v41 }
 0x6c0   : > { %6765 = vmatprep.subr.bf16.mxu0 %v7568_v42 }
 0x6c1   : > { %2198 = vadd.xlane.f32.xlu1 %v2195_v48  ;;  %v7576_v48 = vld [vmem:[#allocation10 + $0x4a0] sm:$0xff]  }
 0x746   : > { %v2197_v49 = vpop.xlane.xlu0 %2196 }
 0x747   : > { %v2200_v50 = vmul.f32 0.0078125, %v2197_v49  ;;  %v7577_v49 = vld [vmem:[#allocation10 + $0x460] sm:$0xff]  }
 0x749   : > { %v2202_v51 = vadd.f32 1e-05, %v2200_v50 }
 0x74a   : > { %v2199_v52 = vpop.xlane.xlu1 %2198 }
 0x74b   : > { %7810 = vrsqrt.f32 %v2202_v51  ;;  %v2201_v53 = vmul.f32 0.0078125, %v2199_v52 }
 0x74d   : > { %v2203_v54 = vadd.f32 1e-05, %v2201_v53 }
 0x74f   : > { %7812 = vrsqrt.f32 %v2203_v54 }
 0x758   : > { %v7811_v58 = vpop.eup %7810 }
 0x759   : > { %v2206_v61 = vmul.f32 %v7811_v58, %v2192_v43  ;;  %v7569_v43 = vld [vmem:[#allocation10 + $0x470] sm:$0xff]  }
 0x75a   : > { %6766 = vmatpush3.bf16.msra.mxu0 %v7569_v43  ;;  %v7594_v43 = vld [vmem:[#allocation10 + $0x4f8] sm:$0xff]  }
 0x75b   : > { %v2213_v0 = vmul.f32 %v6293_v59, %v2206_v61  ;;  %6767 = vmatprep.subr.bf16.mxu0 %v7572_v44 }
 0x75c   : > { %v7813_v63 = vpop.eup %7812 }
 0x75d   : > { %v2207_v3 = vmul.f32 %v7813_v63, %v2193_v47  ;;  %v2220_v4 = vadd.f32 %v6294_v62, %v2213_v0 }
 0x75e   : > { %6768 = vmatpush3.bf16.msra.mxu0 %v7573_v45  ;;  %v7596_v45 = vld [vmem:[#allocation10 + $0x4e8] sm:$0xff]  }
 0x75f   : > { %v2214_v5 = vmul.f32 %v6293_v59, %v2207_v3  ;;  %v2306_v6 = vmul.f32 %v2305_v1, %v2220_v4  ;;  %6769 = vmatprep.subr.bf16.mxu0 %v7576_v48  ;;  %v7598_v48 = vld [vmem:[#allocation10 + $0x4d8] sm:$0xff]  }
 0x761   : > { %v2221_v7 = vadd.f32 %v6294_v62, %v2214_v5  ;;  %2308 = vadd.xlane.f32.xlu0 %v2306_v6  ;;  %v7566_v5 = vld [vmem:[#allocation10 + $0x430] sm:$0xff]  }
 0x762   : > { %6770 = vmatpush3.bf16.msra.mxu0 %v7577_v49  ;;  %v7599_v49 = vld [vmem:[#allocation10 + $0x4d0] sm:$0xff]  }
 0x763   : > { %7130 = vmatpush3.xpose.msra.mxu1 %v2221_v7  ;;  %v2307_v8 = vmul.f32 %v2305_v1, %v2221_v7  ;;  %v7570_v7 = vld [vmem:[#allocation10 + $0x428] sm:$0xff]  }
 0x764   : > { %7131 = vmatprep.subr.mxu1 %v8283_v2 }
 0x765   : > { %2310 = vadd.xlane.f32.xlu1 %v2307_v8  ;;  %v7571_v8 = vld [vmem:[#allocation10 + $0x3e8] sm:$0xff]  }
 0x767   : > { %7132 = vmatpush3.xpose.msra.mxu1 %v2220_v4  ;;  %v7563_v4 = vld [vmem:[#allocation10 + $0x3f8] sm:$0xff]  }
 0x768   : > { %7136 = vmatprep.subr.mxu1 %v2374_v37 }
 0x76a   : > { %7134 = vmatmul.mubr.f32.vlgmr.msra.gmra.mxu1 %v2222_v60  ;;  %v8745_v60 = vand.u32 127, %v2302_v55  ;;  %v7567_v55 = vld [vmem:[#allocation10 + $0x3f0] sm:$0xff]  }
 0x76b   : > { %7137 = vmatpush3.msra.mxu1 %v2374_v37 }
 0x76c   : > { %7138 = vmatprep.subr.mxu1 %v2373_v38 }
 0x76d   : > { %7139 = vmatpush3.msra.mxu1 %v2373_v38 }
 0x76e   : > { %6741 = vmatprep.subr.bf16.mxu1 %v7562_v39 }
 0x7ea   : > { %v2309_v11 = vpop.xlane.xlu0 %2308 }
 0x7eb   : > { %v2316_v13 = vadd.f32 %v7842_v10, %v2309_v11  ;;  %v7575_v11 = vld [vmem:[#allocation10 + $0x3e0] sm:$0xff]  }
 0x7ed   : > { %v2318_v15 = vmul.f32 %v2316_v13, %v702_v12  ;;  %v7578_v12 = vld [vmem:[#allocation10 + $0x418] sm:$0xff]  }
 0x7ee   : > { %v2311_v16 = vpop.xlane.xlu1 %2310  ;;  %v7579_v13 = vld [vmem:[#allocation10 + $0x3d8] sm:$0xff]  }
 0x7ef   : > { %v2317_v18 = vadd.f32 %v7842_v10, %v2311_v16  ;;  %v2320_v19 = vmul.f32 %v2318_v15, %v8735_v14  ;;  %v7574_v10 = vld [vmem:[#allocation10 + $0x420] sm:$0xff]   ;;  %v7580_v15 = vld [vmem:[#allocation10 + $0x498] sm:$0xff]  }
 0x7f0   : > { %v7581_v16 = vld [vmem:[#allocation10 + $0x458] sm:$0xff]   ;;  %6771 = vmatprep.subr.bf16.mxu0 %v7580_v15 }
 0x7f1   : > { %v2319_v21 = vmul.f32 %v2317_v18, %v703_v17  ;;  %2329 = vperm.xlu0 %7440, %v2320_v19   ;;  %6772 = vmatpush3.bf16.msra.mxu0 %v7581_v16  ;;  %v7582_v17 = vld [vmem:[#allocation10 + $0x410] sm:$0xff]  }
 0x7f2   : > { %v7583_v18 = vld [vmem:[#allocation10 + $0x3d0] sm:$0xff]  }
 0x7f3   : > { %v2321_v22 = vmul.f32 %v2319_v21, %v8735_v14  ;;  %v7584_v19 = vld [vmem:[#allocation10 + $0x490] sm:$0xff]  }
 0x7f4   : > { %v7585_v21 = vld [vmem:[#allocation10 + $0x450] sm:$0xff]   ;;  %6773 = vmatprep.subr.bf16.mxu0 %v7584_v19 }
 0x7f5   : > { %2334 = vperm.xlu1 %7441, %v2321_v22   ;;  %6774 = vmatpush3.bf16.msra.mxu0 %v7585_v21  ;;  %v7586_v22 = vld [vmem:[#allocation10 + $0x408] sm:$0xff]  }
 0x82a   : > { %v8742_v46 = vpop.f32.mrf.mxu1 }
 0x82c   : > { %v7135_v47 = vpop.f32.mrf.mxu1 }
 0x82d   : > { %v7597_v47 = vld [vmem:[#allocation10 + $0x4e0] sm:$0xff]  }
 0x86c   : > { %v2330_v23 = vpop.permute.xlu0 %2329 }
 0x86d   : > { %vm2337_vm1 = vcmp.lt.f32.partialorder %v6295_v20, %v2330_v23  ;;  %v7588_v23 = vld [vmem:[#allocation10 + $0x488] sm:$0xff]  }
 0x86e   : > { %v2339_v24 = vsel %vm2337_vm1, 1, %v8285_v9  ;;  %6775 = vmatprep.subr.bf16.mxu0 %v7588_v23 }
 0x86f   : > { %v2342_v25 = vshrl.u32 %v2339_v24, 16  ;;  %v2341_v28 = vand.u32 65535, %v2339_v24  ;;  %v7589_v24 = vld [vmem:[#allocation10 + $0x448] sm:$0xff]  }
 0x870   : > { %v2335_v26 = vpop.permute.xlu1 %2334  ;;  %6776 = vmatpush3.bf16.msra.mxu0 %v7589_v24 }
 0x871   : > { %vm2338_vm2 = vcmp.lt.f32.partialorder %v6295_v20, %v2335_v26  ;;  %v2344_v27 = vcvt.s32.f32 %v2342_v25  ;;  %v2343_v34 = vcvt.s32.f32 %v2341_v28  ;;  %v7587_v20 = vld [vmem:[#allocation10 + $0x3c8] sm:$0xff]   ;;  %v7590_v25 = vld [vmem:[#allocation10 + $0x400] sm:$0xff]  }
 0x872   : > { %v2340_v29 = vsel %vm2338_vm2, 1, %v8285_v9  ;;  %v7592_v26 = vld [vmem:[#allocation10 + $0x480] sm:$0xff]  }
 0x873   : > { %2347 = vadd.xlane.f32.xlu1 %v2344_v27  ;;  %v2354_v30 = vshrl.u32 %v2340_v29, 16  ;;  %v2353_v35 = vand.u32 65535, %v2340_v29  ;;  %v7591_v27 = vld [vmem:[#allocation10 + $0x3c0] sm:$0xff]   ;;  %6777 = vmatprep.subr.bf16.mxu0 %v7592_v26 }
 0x874   : > { %v7593_v28 = vld [vmem:[#allocation10 + $0x440] sm:$0xff]  }
 0x875   : > { %v2356_v31 = vcvt.s32.f32 %v2354_v30  ;;  %v2355_v36 = vcvt.s32.f32 %v2353_v35  ;;  %6778 = vmatpush3.bf16.msra.mxu0 %v7593_v28 }
 0x877   : > { %2359 = vadd.xlane.f32.xlu0 %v2356_v31  ;;  %2345 = vadd.xlane.f32.xlu1 %v2343_v34 }
 0x87b   : > { %2357 = vadd.xlane.f32.xlu1 %v2355_v36 }
 0x8fc   : > { %v2348_v50 = vpop.xlane.xlu1 %2347 }
 0x8fd   : > { %v2350_v51 = vcvt.f32.s32 %v2348_v50  ;;  %v7600_v50 = vld [vmem:[#allocation10 + $0x4c8] sm:$0xff]  }
 0x8ff   : > { %v2351_v54 = vshll.u32 %v2350_v51, 16  ;;  %v7601_v51 = vld [vmem:[#allocation10 + $0x4c0] sm:$0xff]  }
 0x900   : > { %v2346_v52 = vpop.xlane.xlu1 %2345  ;;  %v2360_v53 = vpop.xlane.xlu0 %2359 }
 0x901   : > { %v2349_v58 = vcvt.f32.s32 %v2346_v52  ;;  %v2362_v59 = vcvt.f32.s32 %v2360_v53 }
 0x903   : > { %v2352_v61 = vadd.s32 %v2351_v54, %v2349_v58  ;;  %v2363_v0 = vshll.u32 %v2362_v59, 16 }
 0x904   : > { %v2358_v62 = vpop.xlane.xlu1 %2357 }
 0x905   : > { %v2361_v1 = vcvt.f32.s32 %v2358_v62  ;;  %vm2367_vm4 = vcmp.eq.s32.totalorder %v8745_v60, %v2352_v61 }
 0x906   : > { %v6296_v63 = vsel %vm2367_vm4, 1.0, %v8283_v2 }
 0x907   : > { %v2364_v3 = vadd.s32 %v2363_v0, %v2361_v1  ;;  %7140 = vmatprep.mubr.msk.f32.mxu1 %vm2375_vm3, %v6296_v63  ;;  %v6301_v63 = vld [vmem:[#allocation11 + $0x4] ss:$0 sm:$0xff] }
 0x909   : > { %vm2368_vm5 = vcmp.eq.s32.totalorder %v8745_v60, %v2364_v3 }
 0x90a   : > { %v6297_v6 = vsel %vm2368_vm5, 1.0, %v8283_v2 }
 0x90b   : > { %7141 = vmatmul.mubr.msk.f32.vlgmr.msra.gmra.mxu1 %vm2375_vm3, %v6297_v6 }
 0x90c   : > { %6742 = vmatpush3.bf16.msra.mxu1 %v7563_v4 }
 0x90d   : > { %6743 = vmatprep.subr.bf16.mxu1 %v7566_v5 }
 0x910   : > { %6744 = vmatpush3.bf16.msra.mxu1 %v7567_v55 }
 0x911   : > { %6745 = vmatprep.subr.bf16.mxu1 %v7570_v7 }
 0x914   : > { %6746 = vmatpush3.bf16.msra.mxu1 %v7571_v8 }
 0x915   : > { %6747 = vmatprep.subr.bf16.mxu1 %v7574_v10 }
 0x918   : > { %6748 = vmatpush3.bf16.msra.mxu1 %v7575_v11 }
 0x919   : > { %6749 = vmatprep.subr.bf16.mxu1 %v7578_v12 }
 0x91c   : > { %6750 = vmatpush3.bf16.msra.mxu1 %v7579_v13 }
 0x91d   : > { %6751 = vmatprep.subr.bf16.mxu1 %v7582_v17 }
 0x920   : > { %6752 = vmatpush3.bf16.msra.mxu1 %v7583_v18 }
 0x921   : > { %6753 = vmatprep.subr.bf16.mxu1 %v7586_v22 }
 0x924   : > { %6754 = vmatpush3.bf16.msra.mxu1 %v7587_v20 }
 0x925   : > { %6755 = vmatprep.subr.bf16.mxu1 %v7590_v25 }
 0x928   : > { %6756 = vmatpush3.bf16.msra.mxu1 %v7591_v27 }
 0x929   : > { %7143 = vmatprep.subr.bf16.mxu1 %v8283_v2 }
 0x9cb   : > { %v7142_v29 = vpop.f32.mrf.mxu1 }
 0x9cc   : > { %v8755_v30 = vadd.f32 %v7142_v29, %v8656_v33 }
 0x9cd   : > { %v2448_v31 = vpop.f32.mrf.mxu1 }
 0x9ce   : > { %2461 = vst [vmem:[#allocation2 + $0xa] sm:$0xff] %v8755_v30  ;;  %v8759_v34 = vadd.f32 %v2448_v31, %v8653_v32  ;;  %v7595_v32 = vld [vmem:[#allocation10 + $0x4f0] sm:$0xff]   ;;  %v7602_v31 = vld [vmem:[#allocation10 + $0x578] sm:$0xff]  }
 0x9cf   : > { %6794 = vmatprep.subr.bf16.mxu0 %v7602_v31 }
 0x9d0   : > { %2460 = vst [vmem:[#allocation2 + $0x2] sm:$0xff] %v8759_v34  ;;  %v2474_v33 = vpack.c.bf16 %v8755_v30, %v8759_v34 }
 0x9d5   : > { %v2469_v35 = vld [vmem:[#allocation2 + $0xb] sm:$0xff] }
 0x9d6   : > { %v2471_v53 = vld [vmem:[#allocation2 + $0xc] sm:$0xff] }
 0x9d7   : > { %v2464_v36 = vld [vmem:[#allocation2 + $0x1] sm:$0xff]  ;;  %v2465_v37 = vld [vmem:[#allocation2 + $0x9] sm:$0xff] }
 0x9d8   : > { %v2468_v38 = vld [vmem:[#allocation2 + $0x3] sm:$0xff]  ;;  %v2473_v39 = vpack.c.bf16 %v2465_v37, %v2464_v36  ;;  %v7604_v36 = vld [vmem:[#allocation10 + $0x5f8] sm:$0xff]  }
 0x9d9   : > { %v2475_v40 = vpack.c.bf16 %v2469_v35, %v2468_v38  ;;  %v2462_v41 = vld [vmem:[#allocation2] sm:$0xff]  ;;  %v2463_v42 = vld [vmem:[#allocation2 + $0x8] sm:$0xff]  ;;  %v7603_v35 = vld [vmem:[#allocation10 + $0x538] sm:$0xff]  }
 0x9da   : > { %v2472_v44 = vpack.c.bf16 %v2463_v42, %v2462_v41  ;;  %2836 = vmatprep.mubr.bf16.mxu1 %v2473_v39  ;;  %v2470_v52 = vld [vmem:[#allocation2 + $0x4] sm:$0xff]  ;;  %v7605_v37 = vld [vmem:[#allocation10 + $0x5b8] sm:$0xff]  }
 0x9db   : > { %2877 = vmatprep.mubr.bf16.mxu0 %v2475_v40  ;;  %v2476_v54 = vpack.c.bf16 %v2471_v53, %v2470_v52  ;;  %v7606_v38 = vld [vmem:[#allocation10 + $0x570] sm:$0xff]   ;;  %v7610_v42 = vld [vmem:[#allocation10 + $0x568] sm:$0xff]   ;;  %v7621_v52 = vld [vmem:[#allocation10 + $0x598] sm:$0xff]  }
 0x9dc   : > { %2837 = vmatmul.mubr.bf16.vlgmr.msra.gmra.mxu1 %v2472_v44  ;;  %2878 = vmatmul.mubr.bf16.vlgmr.msra.gmra.mxu0 %v2474_v33  ;;  %v7607_v39 = vld [vmem:[#allocation10 + $0x530] sm:$0xff]   ;;  %v7612_v44 = vld [vmem:[#allocation10 + $0x5e8] sm:$0xff]  }
 0x9dd   : > { %7144 = vmatpush3.bf16.msra.mxu1 %v7594_v43  ;;  %7159 = vmatprep.mubr.msk.bf16.mxu1 %vm8284_vm0, %v8283_v2  ;;  %v7608_v40 = vld [vmem:[#allocation10 + $0x5f0] sm:$0xff]   ;;  %v7611_v43 = vld [vmem:[#allocation10 + $0x528] sm:$0xff]  }
 0x9de   : > { %7145 = vmatprep.subr.bf16.mxu1 %v8283_v2  ;;  %6795 = vmatpush3.bf16.msra.mxu0 %v7603_v35  ;;  %v7609_v41 = vld [vmem:[#allocation10 + $0x5b0] sm:$0xff]   ;;  %v7613_v33 = vld [vmem:[#allocation10 + $0x5a8] sm:$0xff]  }
 0x9df   : > { %6796 = vmatprep.subr.bf16.mxu0 %v7606_v38  ;;  %v7622_v53 = vld [vmem:[#allocation10 + $0x550] sm:$0xff]  }
 0x9e1   : > { %7146 = vmatpush3.bf16.msra.mxu1 %v7595_v32  ;;  %v7614_v32 = vld [vmem:[#allocation10 + $0x560] sm:$0xff]  }
 0x9e2   : > { %7147 = vmatprep.subr.bf16.mxu1 %v8283_v2  ;;  %6797 = vmatpush3.bf16.msra.mxu0 %v7607_v39  ;;  %v7636_v39 = vld [vmem:[#allocation10 + $0x628] sm:$0xff]  }
 0x9e3   : > { %6798 = vmatprep.subr.bf16.mxu0 %v7610_v42  ;;  %v7639_v42 = vld [vmem:[#allocation10 + $0x610] sm:$0xff]  }
 0x9e5   : > { %7148 = vmatpush3.bf16.msra.mxu1 %v7596_v45  ;;  %v7615_v45 = vld [vmem:[#allocation10 + $0x520] sm:$0xff]  }
 0x9e6   : > { %7149 = vmatprep.subr.bf16.mxu1 %v8283_v2  ;;  %6799 = vmatpush3.bf16.msra.mxu0 %v7611_v43  ;;  %v7640_v43 = vld [vmem:[#allocation10 + $0x608] sm:$0xff]  }
 0x9e7   : > { %6800 = vmatprep.subr.bf16.mxu0 %v7614_v32 }
 0x9e9   : > { %7150 = vmatpush3.bf16.msra.mxu1 %v7597_v47  ;;  %v7616_v47 = vld [vmem:[#allocation10 + $0x5e0] sm:$0xff]  }
 0x9ea   : > { %7151 = vmatprep.subr.bf16.mxu1 %v8283_v2  ;;  %6801 = vmatpush3.bf16.msra.mxu0 %v7615_v45 }
 0x9ed   : > { %7152 = vmatpush3.bf16.msra.mxu1 %v7598_v48  ;;  %v7617_v48 = vld [vmem:[#allocation10 + $0x5a0] sm:$0xff]  }
 0x9ee   : > { %7153 = vmatprep.subr.bf16.mxu1 %v8283_v2 }
 0x9f1   : > { %7154 = vmatpush3.bf16.msra.mxu1 %v7599_v49  ;;  %v7618_v49 = vld [vmem:[#allocation10 + $0x558] sm:$0xff]  }
 0x9f2   : > { %7155 = vmatprep.subr.bf16.mxu1 %v8283_v2  ;;  %6802 = vmatprep.subr.bf16.mxu0 %v7618_v49 }
 0x9f5   : > { %7156 = vmatpush3.bf16.msra.mxu1 %v7600_v50  ;;  %v7619_v50 = vld [vmem:[#allocation10 + $0x518] sm:$0xff]  }
 0x9f6   : > { %7157 = vmatprep.subr.bf16.mxu1 %v8283_v2  ;;  %6803 = vmatpush3.bf16.msra.mxu0 %v7619_v50 }
 0x9f7   : > { %6804 = vmatprep.subr.bf16.mxu0 %v7622_v53  ;;  %v6344_v53 = vld [vmem:[#allocation11 + $0x5] ss:$0 sm:$0xff] }
 0x9f9   : > { %7158 = vmatpush3.bf16.msra.mxu1 %v7601_v51  ;;  %v7620_v51 = vld [vmem:[#allocation10 + $0x5d8] sm:$0xff]  }
 0x9fa   : > { %6816 = vmatprep.subr.bf16.mxu1 %v7604_v36 }
 0x9fc   : > { %7160 = vmatmul.mubr.bf16.vlgmr.msra.gmra.mxu1 %v2476_v54  ;;  %v7623_v54 = vld [vmem:[#allocation10 + $0x510] sm:$0xff]  }
 0x9fd   : > { %6817 = vmatpush3.bf16.msra.mxu1 %v7605_v37  ;;  %6805 = vmatpush3.bf16.msra.mxu0 %v7623_v54  ;;  %v7634_v37 = vld [vmem:[#allocation10 + $0x638] sm:$0xff]  }
 0x9fe   : > { %6818 = vmatprep.subr.bf16.mxu1 %v7608_v40  ;;  %v7637_v40 = vld [vmem:[#allocation10 + $0x620] sm:$0xff]  }
 0xa01   : > { %6819 = vmatpush3.bf16.msra.mxu1 %v7609_v41  ;;  %v7638_v41 = vld [vmem:[#allocation10 + $0x618] sm:$0xff]  }
 0xa02   : > { %6820 = vmatprep.subr.bf16.mxu1 %v7612_v44  ;;  %v7641_v44 = vld [vmem:[#allocation10 + $0x600] sm:$0xff]  }
 0xa05   : > { %6821 = vmatpush3.bf16.msra.mxu1 %v7613_v33 }
 0xa06   : > { %6822 = vmatprep.subr.bf16.mxu1 %v7616_v47 }
 0xa09   : > { %6823 = vmatpush3.bf16.msra.mxu1 %v7617_v48 }
 0xa0a   : > { %6824 = vmatprep.subr.bf16.mxu1 %v7620_v51 }
 0xa0d   : > { %6825 = vmatpush3.bf16.msra.mxu1 %v7621_v52 }
 0xa9c   : > { %v6757_v58 = vpop.f32.mrf.mxu1  ;;  %v6779_v61 = vpop.f32.mrf.mxu0 }
 0xa9e   : > { %v6758_v59 = vpop.f32.mrf.mxu1  ;;  %v6780_v0 = vpop.f32.mrf.mxu0 }
 0xa9f   : > { %v6759_v1 = vadd.f32 %v6758_v59, %v6757_v58  ;;  %v6781_v55 = vadd.f32 %v6780_v0, %v6779_v61  ;;  %v7624_v58 = vld [vmem:[#allocation10 + $0x5d0] sm:$0xff]   ;;  %v7626_v61 = vld [vmem:[#allocation10 + $0x548] sm:$0xff]  }
 0xaa0   : > { %v6760_v62 = vpop.f32.mrf.mxu1  ;;  %v6782_v4 = vpop.f32.mrf.mxu0  ;;  %v7625_v59 = vld [vmem:[#allocation10 + $0x590] sm:$0xff]   ;;  %6826 = vmatprep.subr.bf16.mxu1 %v7624_v58  ;;  %v7628_v0 = vld [vmem:[#allocation10 + $0x5c8] sm:$0xff]   ;;  %6806 = vmatprep.subr.bf16.mxu0 %v7626_v61 }
 0xaa1   : > { %v2839_v5 = vadd.f32 %v6759_v1, %v6301_v63  ;;  %6827 = vmatpush3.bf16.msra.mxu1 %v7625_v59  ;;  %v7629_v1 = vld [vmem:[#allocation10 + $0x588] sm:$0xff]  }
 0xaa2   : > { %v6761_v3 = vpop.f32.mrf.mxu1  ;;  %v6783_v7 = vpop.f32.mrf.mxu0  ;;  %6828 = vmatprep.subr.bf16.mxu1 %v7628_v0 }
 0xaa3   : > { %v6762_v6 = vadd.f32 %v6761_v3, %v6760_v62  ;;  %v2880_v10 = vadd.f32 %v6781_v55, %v2839_v5  ;;  %v6784_v12 = vadd.f32 %v6783_v7, %v6782_v4  ;;  %v7627_v62 = vld [vmem:[#allocation10 + $0x508] sm:$0xff]   ;;  %v7632_v3 = vld [vmem:[#allocation10 + $0x5c0] sm:$0xff]  }
 0xaa4   : > { %6807 = vmatpush3.bf16.msra.mxu0 %v7627_v62  ;;  %v7631_v4 = vld [vmem:[#allocation10 + $0x500] sm:$0xff]  }
 0xaa5   : > { %v2842_v8 = vadd.f32 %v6762_v6, %v6301_v63  ;;  %v7630_v63 = vld [vmem:[#allocation10 + $0x540] sm:$0xff]   ;;  %6829 = vmatpush3.bf16.msra.mxu1 %v7629_v1 }
 0xaa6   : > { %6808 = vmatprep.subr.bf16.mxu0 %v7630_v63  ;;  %v7633_v5 = vld [vmem:[#allocation10 + $0x580] sm:$0xff]   ;;  %6830 = vmatprep.subr.bf16.mxu1 %v7632_v3 }
 0xaa7   : > { %v2883_v17 = vadd.f32 %v6784_v12, %v2842_v8 }
 0xaa8   : > { %6809 = vmatpush3.bf16.msra.mxu0 %v7631_v4 }
 0xaa9   : > { %6831 = vmatpush3.bf16.msra.mxu1 %v7633_v5  ;;  %7163 = vmatprep.subr.bf16.mxu0 %v8283_v2 }
 0xabc   : > { %v2920_v11 = vpop.f32.mrf.mxu1 }
 0xabd   : > { %v2921_v13 = vadd.f32 %v2920_v11, %v2880_v10 }
 0xabe   : > { %v7161_v15 = vpop.f32.mrf.mxu1 }
 0xabf   : > { %v2927_v16 = vmax.f32 %v2921_v13, 0.0  ;;  %v6342_v13 = vld [vmem:[#allocation13 + $0x4] ss:$0 sm:$0xff] }
 0xac0   : > { %v2923_v18 = vpop.f32.mrf.mxu1 }
 0xac1   : > { %v2924_v19 = vadd.f32 %v2923_v18, %v2883_v17  ;;  %2929 = vadd.xlane.f32.xlu1 %v2927_v16 }
 0xac2   : > { %v7162_v21 = vpop.f32.mrf.mxu1 }
 0xac3   : > { %v2928_v22 = vmax.f32 %v2924_v19, 0.0 }
 0xac5   : > { %2931 = vadd.xlane.f32.xlu1 %v2928_v22 }
 0xb4a   : > { %v2930_v20 = vpop.xlane.xlu1 %2929 }
 0xb4b   : > { %v2933_v23 = vmul.f32 0.0078125, %v2930_v20 }
 0xb4d   : > { %v8773_v24 = vsub.f32 %v2927_v16, %v2933_v23  ;;  %v6343_v16 = vld [vmem:[#allocation14 + $0x4] ss:$0 sm:$0xff] }
 0xb4e   : > { %v2932_v25 = vpop.xlane.xlu1 %2931 }
 0xb4f   : > { %v2934_v26 = vmul.f32 0.0078125, %v2932_v25  ;;  %v2937_v27 = vmul.f32 %v8773_v24, %v8773_v24 }
 0xb51   : > { %v8777_v28 = vsub.f32 %v2928_v22, %v2934_v26  ;;  %2939 = vadd.xlane.f32.xlu1 %v2937_v27 }
 0xb53   : > { %v2938_v29 = vmul.f32 %v8777_v28, %v8777_v28 }
 0xb55   : > { %2941 = vadd.xlane.f32.xlu1 %v2938_v29 }
 0xbda   : > { %v2940_v6 = vpop.xlane.xlu1 %2939 }
 0xbdb   : > { %v2943_v55 = vmul.f32 0.0078125, %v2940_v6 }
 0xbdd   : > { %v2945_v7 = vadd.f32 1e-05, %v2943_v55 }
 0xbde   : > { %v2942_v8 = vpop.xlane.xlu1 %2941 }
 0xbdf   : > { %7814 = vrsqrt.f32 %v2945_v7  ;;  %v2944_v10 = vmul.f32 0.0078125, %v2942_v8 }
 0xbe1   : > { %v2946_v11 = vadd.f32 1e-05, %v2944_v10 }
 0xbe3   : > { %7816 = vrsqrt.f32 %v2946_v11 }
 0xbec   : > { %v7815_v12 = vpop.eup %7814 }
 0xbed   : > { %v2949_v15 = vmul.f32 %v7815_v12, %v8773_v24 }
 0xbef   : > { %v2957_v17 = vmul.f32 %v6342_v13, %v2949_v15 }
 0xbf0   : > { %v7817_v18 = vpop.eup %7816 }
 0xbf1   : > { %v2965_v19 = vadd.f32 %v6343_v16, %v2957_v17  ;;  %v2950_v21 = vmul.f32 %v7817_v18, %v8777_v28  ;;  %v7635_v28 = vld [vmem:[#allocation10 + $0x630] sm:$0xff]  }
 0xbf3   : > { %2967 = vst [vmem:[#allocation2 + $0x2] sm:$0xff] %v2965_v19  ;;  %v2958_v22 = vmul.f32 %v6342_v13, %v2950_v21 }
 0xbf5   : > { %v2966_v20 = vadd.f32 %v6343_v16, %v2958_v22 }
 0xbf7   : > { %2968 = vst [vmem:[#allocation2 + $0xa] sm:$0xff] %v2966_v20  ;;  %v2981_v38 = vpack.c.bf16 %v2966_v20, %v2965_v19  ;;  %v7642_v20 = vld [vmem:[#allocation10 + $0x6b8] sm:$0xff]  }
 0xbf8   : > { %6847 = vmatprep.subr.bf16.mxu1 %v7642_v20 }
 0xbfa   : > { %v2971_v23 = vld [vmem:[#allocation2 + $0x1] sm:$0xff] }
 0xbfb   : > { %v2969_v35 = vld [vmem:[#allocation2] sm:$0xff] }
 0xbfe   : > { %v2972_v25 = vld [vmem:[#allocation2 + $0x9] sm:$0xff] }
 0xbff   : > { %v2975_v26 = vld [vmem:[#allocation2 + $0x3] sm:$0xff]  ;;  %v2976_v27 = vld [vmem:[#allocation2 + $0xb] sm:$0xff]  ;;  %v2980_v29 = vpack.c.bf16 %v2972_v25, %v2971_v23 }
 0xc00   : > { %v2982_v31 = vpack.c.bf16 %v2976_v27, %v2975_v26  ;;  %v2970_v36 = vld [vmem:[#allocation2 + $0x8] sm:$0xff]  ;;  %v7643_v23 = vld [vmem:[#allocation10 + $0x678] sm:$0xff]  }
 0xc01   : > { %v2979_v24 = vpack.c.bf16 %v2970_v36, %v2969_v35  ;;  %3342 = vmatprep.mubr.bf16.mxu0 %v2980_v29  ;;  %v2977_v33 = vld [vmem:[#allocation2 + $0x4] sm:$0xff]  ;;  %v2978_v32 = vld [vmem:[#allocation2 + $0xc] sm:$0xff] }
 0xc02   : > { %3383 = vmatprep.mubr.bf16.mxu1 %v2982_v31  ;;  %v2983_v45 = vpack.c.bf16 %v2978_v32, %v2977_v33  ;;  %v7644_v25 = vld [vmem:[#allocation10 + $0x738] sm:$0xff]   ;;  %v7646_v27 = vld [vmem:[#allocation10 + $0x6b0] sm:$0xff]   ;;  %v7650_v36 = vld [vmem:[#allocation10 + $0x6a8] sm:$0xff]  }
 0xc03   : > { %3343 = vmatmul.mubr.bf16.vlgmr.msra.gmra.mxu0 %v2979_v24  ;;  %3384 = vmatmul.mubr.bf16.vlgmr.msra.gmra.mxu1 %v2981_v38  ;;  %v7645_v26 = vld [vmem:[#allocation10 + $0x6f8] sm:$0xff]   ;;  %v7647_v29 = vld [vmem:[#allocation10 + $0x670] sm:$0xff]   ;;  %v7652_v24 = vld [vmem:[#allocation10 + $0x728] sm:$0xff]  }
 0xc04   : > { %7164 = vmatpush3.bf16.msra.mxu0 %v7634_v37  ;;  %7179 = vmatprep.mubr.msk.bf16.mxu0 %vm8284_vm0, %v8283_v2  ;;  %v7648_v31 = vld [vmem:[#allocation10 + $0x730] sm:$0xff]   ;;  %v7651_v37 = vld [vmem:[#allocation10 + $0x668] sm:$0xff]   ;;  %v7661_v33 = vld [vmem:[#allocation10 + $0x6d8] sm:$0xff]  }
 0xc05   : > { %7165 = vmatprep.subr.bf16.mxu0 %v8283_v2  ;;  %6848 = vmatpush3.bf16.msra.mxu1 %v7643_v23  ;;  %v7649_v35 = vld [vmem:[#allocation10 + $0x6f0] sm:$0xff]   ;;  %v7653_v38 = vld [vmem:[#allocation10 + $0x6e8] sm:$0xff]  }
 0xc06   : > { %6849 = vmatprep.subr.bf16.mxu1 %v7646_v27  ;;  %v7662_v32 = vld [vmem:[#allocation10 + $0x690] sm:$0xff]  }
 0xc08   : > { %7166 = vmatpush3.bf16.msra.mxu0 %v7635_v28  ;;  %v7654_v28 = vld [vmem:[#allocation10 + $0x6a0] sm:$0xff]  }
 0xc09   : > { %7167 = vmatprep.subr.bf16.mxu0 %v8283_v2  ;;  %6850 = vmatpush3.bf16.msra.mxu1 %v7647_v29  ;;  %v7676_v29 = vld [vmem:[#allocation10 + $0x768] sm:$0xff]  }
 0xc0a   : > { %6851 = vmatprep.subr.bf16.mxu1 %v7650_v36  ;;  %v7679_v36 = vld [vmem:[#allocation10 + $0x750] sm:$0xff]  }
 0xc0c   : > { %7168 = vmatpush3.bf16.msra.mxu0 %v7636_v39  ;;  %v7655_v39 = vld [vmem:[#allocation10 + $0x660] sm:$0xff]  }
 0xc0d   : > { %7169 = vmatprep.subr.bf16.mxu0 %v8283_v2  ;;  %6852 = vmatpush3.bf16.msra.mxu1 %v7651_v37  ;;  %v7680_v37 = vld [vmem:[#allocation10 + $0x748] sm:$0xff]  }
 0xc0e   : > { %6853 = vmatprep.subr.bf16.mxu1 %v7654_v28 }
 0xc10   : > { %7170 = vmatpush3.bf16.msra.mxu0 %v7637_v40  ;;  %v7656_v40 = vld [vmem:[#allocation10 + $0x720] sm:$0xff]  }
 0xc11   : > { %7171 = vmatprep.subr.bf16.mxu0 %v8283_v2  ;;  %6854 = vmatpush3.bf16.msra.mxu1 %v7655_v39 }
 0xc14   : > { %7172 = vmatpush3.bf16.msra.mxu0 %v7638_v41  ;;  %v7657_v41 = vld [vmem:[#allocation10 + $0x6e0] sm:$0xff]  }
 0xc15   : > { %7173 = vmatprep.subr.bf16.mxu0 %v8283_v2 }
 0xc18   : > { %7174 = vmatpush3.bf16.msra.mxu0 %v7639_v42  ;;  %v7658_v42 = vld [vmem:[#allocation10 + $0x698] sm:$0xff]  }
 0xc19   : > { %7175 = vmatprep.subr.bf16.mxu0 %v8283_v2  ;;  %6855 = vmatprep.subr.bf16.mxu1 %v7658_v42 }
 0xc1c   : > { %7176 = vmatpush3.bf16.msra.mxu0 %v7640_v43  ;;  %v7659_v43 = vld [vmem:[#allocation10 + $0x658] sm:$0xff]  }
 0xc1d   : > { %7177 = vmatprep.subr.bf16.mxu0 %v8283_v2  ;;  %6856 = vmatpush3.bf16.msra.mxu1 %v7659_v43 }
 0xc1e   : > { %6857 = vmatprep.subr.bf16.mxu1 %v7662_v32  ;;  %v6387_v32 = vld [vmem:[#allocation11 + $0x6] ss:$0 sm:$0xff] }
 0xc20   : > { %7178 = vmatpush3.bf16.msra.mxu0 %v7641_v44  ;;  %v7660_v44 = vld [vmem:[#allocation10 + $0x718] sm:$0xff]  }
 0xc21   : > { %6869 = vmatprep.subr.bf16.mxu0 %v7644_v25 }
 0xc23   : > { %7180 = vmatmul.mubr.bf16.vlgmr.msra.gmra.mxu0 %v2983_v45  ;;  %v7663_v45 = vld [vmem:[#allocation10 + $0x650] sm:$0xff]  }
 0xc24   : > { %6870 = vmatpush3.bf16.msra.mxu0 %v7645_v26  ;;  %6858 = vmatpush3.bf16.msra.mxu1 %v7663_v45  ;;  %v7674_v26 = vld [vmem:[#allocation10 + $0x778] sm:$0xff]  }
 0xc25   : > { %6871 = vmatprep.subr.bf16.mxu0 %v7648_v31  ;;  %v7677_v31 = vld [vmem:[#allocation10 + $0x760] sm:$0xff]  }
 0xc28   : > { %6872 = vmatpush3.bf16.msra.mxu0 %v7649_v35  ;;  %v7678_v35 = vld [vmem:[#allocation10 + $0x758] sm:$0xff]  }
 0xc29   : > { %6873 = vmatprep.subr.bf16.mxu0 %v7652_v24  ;;  %v7681_v24 = vld [vmem:[#allocation10 + $0x740] sm:$0xff]  }
 0xc2c   : > { %6874 = vmatpush3.bf16.msra.mxu0 %v7653_v38 }
 0xc2d   : > { %6875 = vmatprep.subr.bf16.mxu0 %v7656_v40 }
 0xc30   : > { %6876 = vmatpush3.bf16.msra.mxu0 %v7657_v41 }
 0xc31   : > { %6877 = vmatprep.subr.bf16.mxu0 %v7660_v44 }
 0xc34   : > { %6878 = vmatpush3.bf16.msra.mxu0 %v7661_v33 }
 0xcc3   : > { %v6810_v47 = vpop.f32.mrf.mxu0  ;;  %v6832_v49 = vpop.f32.mrf.mxu1 }
 0xcc5   : > { %v6811_v48 = vpop.f32.mrf.mxu0  ;;  %v6833_v51 = vpop.f32.mrf.mxu1 }
 0xcc6   : > { %v6812_v52 = vadd.f32 %v6811_v48, %v6810_v47  ;;  %v6834_v62 = vadd.f32 %v6833_v51, %v6832_v49  ;;  %v7664_v47 = vld [vmem:[#allocation10 + $0x710] sm:$0xff]   ;;  %v7666_v49 = vld [vmem:[#allocation10 + $0x688] sm:$0xff]  }
 0xcc7   : > { %v6813_v50 = vpop.f32.mrf.mxu0  ;;  %v6835_v58 = vpop.f32.mrf.mxu1  ;;  %v7665_v48 = vld [vmem:[#allocation10 + $0x6d0] sm:$0xff]   ;;  %6879 = vmatprep.subr.bf16.mxu0 %v7664_v47  ;;  %v7668_v51 = vld [vmem:[#allocation10 + $0x708] sm:$0xff]   ;;  %6859 = vmatprep.subr.bf16.mxu1 %v7666_v49 }
 0xcc8   : > { %v3345_v59 = vadd.f32 %v6812_v52, %v6344_v53  ;;  %6880 = vmatpush3.bf16.msra.mxu0 %v7665_v48  ;;  %v7669_v52 = vld [vmem:[#allocation10 + $0x6c8] sm:$0xff]  }
 0xcc9   : > { %v6814_v54 = vpop.f32.mrf.mxu0  ;;  %v6836_v0 = vpop.f32.mrf.mxu1  ;;  %6881 = vmatprep.subr.bf16.mxu0 %v7668_v51 }
 0xcca   : > { %v6815_v61 = vadd.f32 %v6814_v54, %v6813_v50  ;;  %v3386_v63 = vadd.f32 %v6834_v62, %v3345_v59  ;;  %v6837_v4 = vadd.f32 %v6836_v0, %v6835_v58  ;;  %v7667_v50 = vld [vmem:[#allocation10 + $0x648] sm:$0xff]   ;;  %v7672_v54 = vld [vmem:[#allocation10 + $0x700] sm:$0xff]  }
 0xccb   : > { %6860 = vmatpush3.bf16.msra.mxu1 %v7667_v50  ;;  %v7671_v58 = vld [vmem:[#allocation10 + $0x640] sm:$0xff]  }
 0xccc   : > { %v3348_v1 = vadd.f32 %v6815_v61, %v6344_v53  ;;  %v7670_v53 = vld [vmem:[#allocation10 + $0x680] sm:$0xff]   ;;  %6882 = vmatpush3.bf16.msra.mxu0 %v7669_v52 }
 0xccd   : > { %6861 = vmatprep.subr.bf16.mxu1 %v7670_v53  ;;  %v7673_v59 = vld [vmem:[#allocation10 + $0x6c0] sm:$0xff]   ;;  %6883 = vmatprep.subr.bf16.mxu0 %v7672_v54 }
 0xcce   : > { %v3389_v7 = vadd.f32 %v6837_v4, %v3348_v1 }
 0xccf   : > { %6862 = vmatpush3.bf16.msra.mxu1 %v7671_v58 }
 0xcd0   : > { %6884 = vmatpush3.bf16.msra.mxu0 %v7673_v59  ;;  %7183 = vmatprep.subr.bf16.mxu1 %v8283_v2 }
 0xce3   : > { %v3426_v3 = vpop.f32.mrf.mxu0 }
 0xce4   : > { %v3427_v5 = vadd.f32 %v3426_v3, %v3386_v63 }
 0xce5   : > { %v7181_v6 = vpop.f32.mrf.mxu0 }
 0xce6   : > { %v3433_v55 = vmax.f32 %v3427_v5, 0.0  ;;  %v6385_v5 = vld [vmem:[#allocation13 + $0x5] ss:$0 sm:$0xff] }
 0xce7   : > { %v3429_v8 = vpop.f32.mrf.mxu0 }
 0xce8   : > { %v3430_v10 = vadd.f32 %v3429_v8, %v3389_v7  ;;  %3435 = vadd.xlane.f32.xlu0 %v3433_v55 }
 0xce9   : > { %v7182_v11 = vpop.f32.mrf.mxu0 }
 0xcea   : > { %v3434_v12 = vmax.f32 %v3430_v10, 0.0 }
 0xcec   : > { %3437 = vadd.xlane.f32.xlu1 %v3434_v12 }
 0xd71   : > { %v3436_v13 = vpop.xlane.xlu0 %3435 }
 0xd72   : > { %v3439_v15 = vmul.f32 0.0078125, %v3436_v13 }
 0xd74   : > { %v8793_v16 = vsub.f32 %v3433_v55, %v3439_v15  ;;  %v6386_v55 = vld [vmem:[#allocation14 + $0x5] ss:$0 sm:$0xff] }
 0xd75   : > { %v3438_v17 = vpop.xlane.xlu1 %3437 }
 0xd76   : > { %v3440_v18 = vmul.f32 0.0078125, %v3438_v17  ;;  %v3443_v19 = vmul.f32 %v8793_v16, %v8793_v16 }
 0xd78   : > { %v8797_v21 = vsub.f32 %v3434_v12, %v3440_v18  ;;  %3445 = vadd.xlane.f32.xlu0 %v3443_v19 }
 0xd7a   : > { %v3444_v22 = vmul.f32 %v8797_v21, %v8797_v21 }
 0xd7c   : > { %3447 = vadd.xlane.f32.xlu1 %v3444_v22 }
 0xe01   : > { %v3446_v61 = vpop.xlane.xlu0 %3445 }
 0xe02   : > { %v3449_v62 = vmul.f32 0.0078125, %v3446_v61 }
 0xe04   : > { %v3451_v0 = vadd.f32 1e-05, %v3449_v62 }
 0xe05   : > { %v3448_v1 = vpop.xlane.xlu1 %3447 }
 0xe06   : > { %7818 = vrsqrt.f32 %v3451_v0  ;;  %v3450_v63 = vmul.f32 0.0078125, %v3448_v1 }
 0xe08   : > { %v3452_v3 = vadd.f32 1e-05, %v3450_v63 }
 0xe0a   : > { %7820 = vrsqrt.f32 %v3452_v3 }
 0xe13   : > { %v7819_v4 = vpop.eup %7818 }
 0xe14   : > { %v3455_v6 = vmul.f32 %v7819_v4, %v8793_v16 }
 0xe16   : > { %v3462_v7 = vmul.f32 %v6385_v5, %v3455_v6 }
 0xe17   : > { %v7821_v8 = vpop.eup %7820 }
 0xe18   : > { %v3469_v10 = vadd.f32 %v6386_v55, %v3462_v7  ;;  %v3456_v11 = vmul.f32 %v7821_v8, %v8797_v21  ;;  %v7675_v21 = vld [vmem:[#allocation10 + $0x770] sm:$0xff]  }
 0xe1a   : > { %3471 = vst [vmem:[#allocation2 + $0x2] sm:$0xff] %v3469_v10  ;;  %v3463_v12 = vmul.f32 %v6385_v5, %v3456_v11 }
 0xe1c   : > { %v3470_v13 = vadd.f32 %v6386_v55, %v3463_v12 }
 0xe1e   : > { %3472 = vst [vmem:[#allocation2 + $0xa] sm:$0xff] %v3470_v13  ;;  %v3485_v27 = vpack.c.bf16 %v3470_v13, %v3469_v10 }
 0xe21   : > { %v3475_v15 = vld [vmem:[#allocation2 + $0x1] sm:$0xff] }
 0xe22   : > { %v3473_v23 = vld [vmem:[#allocation2] sm:$0xff] }
 0xe25   : > { %v3476_v17 = vld [vmem:[#allocation2 + $0x9] sm:$0xff] }
 0xe26   : > { %v3479_v18 = vld [vmem:[#allocation2 + $0x3] sm:$0xff]  ;;  %v3480_v19 = vld [vmem:[#allocation2 + $0xb] sm:$0xff]  ;;  %v3484_v22 = vpack.c.bf16 %v3476_v17, %v3475_v15 }
 0xe27   : > { %v3486_v20 = vpack.c.bf16 %v3480_v19, %v3479_v18  ;;  %v3474_v25 = vld [vmem:[#allocation2 + $0x8] sm:$0xff] }
 0xe28   : > { %v3483_v16 = vpack.c.bf16 %v3474_v25, %v3473_v23  ;;  %3846 = vmatprep.mubr.bf16.mxu1 %v3484_v22  ;;  %v3481_v38 = vld [vmem:[#allocation2 + $0x4] sm:$0xff]  ;;  %v3482_v28 = vld [vmem:[#allocation2 + $0xc] sm:$0xff]  ;;  %v3975_v25 = vld [vmem:[#allocation16 + $0x1] sm:$0x1] }
 0xe29   : > { %3887 = vmatprep.mubr.bf16.mxu0 %v3486_v20  ;;  %v3487_v39 = vpack.c.bf16 %v3482_v28, %v3481_v38  ;;  %v6428_v23 = vld [vmem:[#allocation13 + $0x6] ss:$0 sm:$0xff] }
 0xe2a   : > { %3847 = vmatmul.mubr.bf16.vlgmr.msra.gmra.mxu1 %v3483_v16  ;;  %3888 = vmatmul.mubr.bf16.vlgmr.msra.gmra.mxu0 %v3485_v27  ;;  %v6429_v16 = vld [vmem:[#allocation14 + $0x6] ss:$0 sm:$0xff] }
 0xe2b   : > { %7184 = vmatpush3.bf16.msra.mxu1 %v7674_v26  ;;  %7199 = vmatprep.mubr.msk.bf16.mxu1 %vm8284_vm0, %v8283_v2 }
 0xe2c   : > { %7185 = vmatprep.subr.bf16.mxu1 %v8283_v2 }
 0xe2f   : > { %7186 = vmatpush3.bf16.msra.mxu1 %v7675_v21  ;;  %v4058_v21 = vrot.slane %v3975_v25, %v2304_v57 }
 0xe30   : > { %7187 = vmatprep.subr.bf16.mxu1 %v8283_v2 }
 0xe33   : > { %7188 = vmatpush3.bf16.msra.mxu1 %v7676_v29 }
 0xe34   : > { %7189 = vmatprep.subr.bf16.mxu1 %v8283_v2 }
 0xe37   : > { %7190 = vmatpush3.bf16.msra.mxu1 %v7677_v31 }
 0xe38   : > { %7191 = vmatprep.subr.bf16.mxu1 %v8283_v2 }
 0xe3b   : > { %7192 = vmatpush3.bf16.msra.mxu1 %v7678_v35 }
 0xe3c   : > { %7193 = vmatprep.subr.bf16.mxu1 %v8283_v2 }
 0xe3f   : > { %7194 = vmatpush3.bf16.msra.mxu1 %v7679_v36 }
 0xe40   : > { %7195 = vmatprep.subr.bf16.mxu1 %v8283_v2 }
 0xe43   : > { %7196 = vmatpush3.bf16.msra.mxu1 %v7680_v37 }
 0xe44   : > { %7197 = vmatprep.subr.bf16.mxu1 %v8283_v2 }
 0xe47   : > { %7198 = vmatpush3.bf16.msra.mxu1 %v7681_v24 }
 0xe48   : > { %7203 = vmatprep.subr.mxu1 %v8283_v2 }
 0xe4a   : > { %7200 = vmatmul.mubr.bf16.vlgmr.msra.gmra.mxu1 %v3487_v39  ;;  %v8822_v39 = vstv %s6300_s1  ;;  %s8286_s1 = smov [#allocation21]  }
 0xe4b   : > { %7207 = vmatprep.mubr.msk.f32.mxu1 %vm8284_vm0, %v8283_v2 }
 0xeea   : > { %v6863_v40 = vpop.f32.mrf.mxu1  ;;  %v6885_v42 = vpop.f32.mrf.mxu0 }
 0xeec   : > { %v6864_v41 = vpop.f32.mrf.mxu1  ;;  %v6886_v44 = vpop.f32.mrf.mxu0 }
 0xeed   : > { %v6865_v33 = vadd.f32 %v6864_v41, %v6863_v40  ;;  %v6887_v50 = vadd.f32 %v6886_v44, %v6885_v42  ;;  %v7838_v40 = vld [vmem:[%s8732_s8] sm:$0xff] }
 0xeee   : > { %v6866_v43 = vpop.f32.mrf.mxu1  ;;  %v6888_v47 = vpop.f32.mrf.mxu0 }
 0xeef   : > { %v3849_v48 = vadd.f32 %v6865_v33, %v6387_v32  ;;  %v7839_v33 = vld [vmem:[%s8732_s8 + $0x8] sm:$0xff] }
 0xef0   : > { %v6867_v45 = vpop.f32.mrf.mxu1  ;;  %v6889_v51 = vpop.f32.mrf.mxu0 }
 0xef1   : > { %v6868_v49 = vadd.f32 %v6867_v45, %v6866_v43  ;;  %v3890_v53 = vadd.f32 %v6887_v50, %v3849_v48  ;;  %v6890_v58 = vadd.f32 %v6889_v51, %v6888_v47  ;;  %v6430_v47 = vld [vmem:[#allocation17 + $0x1] ss:$0 sm:$0xff] }
 0xef3   : > { %v3852_v52 = vadd.f32 %v6868_v49, %v6387_v32 }
 0xef5   : > { %v3893_v0 = vadd.f32 %v6890_v58, %v3852_v52 }
 0xf0a   : > { %v3930_v54 = vpop.f32.mrf.mxu1 }
 0xf0b   : > { %v3931_v59 = vadd.f32 %v3930_v54, %v3890_v53 }
 0xf0c   : > { %v7201_v61 = vpop.f32.mrf.mxu1 }
 0xf0d   : > { %v3937_v62 = vmax.f32 %v3931_v59, 0.0 }
 0xf0e   : > { %v3933_v1 = vpop.f32.mrf.mxu1 }
 0xf0f   : > { %v3934_v63 = vadd.f32 %v3933_v1, %v3893_v0  ;;  %3939 = vadd.xlane.f32.xlu0 %v3937_v62  ;;  %v4126_v1 = vld [vmem:[#allocation19 + $0x18] sm:$0xff] }
 0xf10   : > { %v7202_v3 = vpop.f32.mrf.mxu1 }
 0xf11   : > { %v3938_v4 = vmax.f32 %v3934_v63, 0.0  ;;  %v4125_v63 = vld [vmem:[#allocation19 + $0x10] sm:$0xff] }
 0xf12   : > { %v7682_v3 = vld [vmem:[#allocation10 + $0x7f8] sm:$0xff]  }
 0xf13   : > { %3941 = vadd.xlane.f32.xlu1 %v3938_v4  ;;  %6907 = vmatprep.subr.bf16.mxu0 %v7682_v3 }
 0xf98   : > { %v3940_v5 = vpop.xlane.xlu0 %3939 }
 0xf99   : > { %v3943_v6 = vmul.f32 0.0078125, %v3940_v5  ;;  %v7684_v5 = vld [vmem:[#allocation10 + $0x878] sm:$0xff]  }
 0xf9b   : > { %v3945_v55 = vsub.f32 %v3937_v62, %v3943_v6  ;;  %v7687_v6 = vld [vmem:[#allocation10 + $0x7b0] sm:$0xff]  }
 0xf9c   : > { %v3942_v7 = vpop.xlane.xlu1 %3941 }
 0xf9d   : > { %v3944_v8 = vmul.f32 0.0078125, %v3942_v7  ;;  %v3947_v10 = vmul.f32 %v3945_v55, %v3945_v55  ;;  %v7691_v7 = vld [vmem:[#allocation10 + $0x7a8] sm:$0xff]  }
 0xf9f   : > { %v3946_v11 = vsub.f32 %v3938_v4, %v3944_v8  ;;  %3949 = vadd.xlane.f32.xlu0 %v3947_v10  ;;  %v7683_v4 = vld [vmem:[#allocation10 + $0x7b8] sm:$0xff]   ;;  %v7694_v10 = vld [vmem:[#allocation10 + $0x7e0] sm:$0xff]  }
 0xfa0   : > { %6908 = vmatpush3.bf16.msra.mxu0 %v7683_v4  ;;  %v7714_v4 = vld [vmem:[#allocation10 + $0x8b8] sm:$0xff]  }
 0xfa1   : > { %v3948_v12 = vmul.f32 %v3946_v11, %v3946_v11 }
 0xfa3   : > { %3951 = vadd.xlane.f32.xlu1 %v3948_v12  ;;  %v7695_v12 = vld [vmem:[#allocation10 + $0x7a0] sm:$0xff]  }
0x1028   : > { %v3950_v13 = vpop.xlane.xlu0 %3949 }
0x1029   : > { %v3953_v15 = vmul.f32 0.0078125, %v3950_v13  ;;  %v7698_v13 = vld [vmem:[#allocation10 + $0x7d8] sm:$0xff]  }
0x102b   : > { %v3955_v17 = vadd.f32 1e-05, %v3953_v15 }
0x102c   : > { %v3952_v18 = vpop.xlane.xlu1 %3951 }
0x102d   : > { %7822 = vrsqrt.f32 %v3955_v17  ;;  %v3954_v19 = vmul.f32 0.0078125, %v3952_v18 }
0x102f   : > { %v3956_v22 = vadd.f32 1e-05, %v3954_v19 }
0x1031   : > { %7824 = vrsqrt.f32 %v3956_v22 }
0x103a   : > { %v7823_v20 = vpop.eup %7822 }
0x103b   : > { %v3959_v26 = vmul.f32 %v7823_v20, %v3945_v55  ;;  %v7690_v55 = vld [vmem:[#allocation10 + $0x7e8] sm:$0xff]  }
0x103d   : > { %v3966_v27 = vmul.f32 %v6428_v23, %v3959_v26 }
0x103e   : > { %v7825_v29 = vpop.eup %7824 }
0x103f   : > { %v3960_v31 = vmul.f32 %v7825_v29, %v3946_v11  ;;  %v3973_v35 = vadd.f32 %v6429_v16, %v3966_v27  ;;  %v7685_v29 = vld [vmem:[#allocation10 + $0x838] sm:$0xff]  }
0x1041   : > { %v3967_v36 = vmul.f32 %v6428_v23, %v3960_v31  ;;  %v4059_v37 = vmul.f32 %v4058_v21, %v3973_v35 }
0x1043   : > { %v3974_v24 = vadd.f32 %v6429_v16, %v3967_v36  ;;  %4061 = vadd.xlane.f32.xlu0 %v4059_v37  ;;  %v7689_v37 = vld [vmem:[#allocation10 + $0x830] sm:$0xff]  }
0x1045   : > { %7204 = vmatpush3.xpose.msra.mxu1 %v3974_v24  ;;  %v4060_v38 = vmul.f32 %v4058_v21, %v3974_v24  ;;  %v7692_v24 = vld [vmem:[#allocation10 + $0x868] sm:$0xff]  }
0x1046   : > { %7205 = vmatprep.subr.mxu1 %v8283_v2 }
0x1047   : > { %4063 = vadd.xlane.f32.xlu1 %v4060_v38  ;;  %v7693_v38 = vld [vmem:[#allocation10 + $0x828] sm:$0xff]  }
0x1049   : > { %7206 = vmatpush3.xpose.msra.mxu1 %v3973_v35  ;;  %v7688_v35 = vld [vmem:[#allocation10 + $0x870] sm:$0xff]  }
0x104a   : > { %7210 = vmatprep.subr.mxu1 %v4126_v1 }
0x104c   : > { %7208 = vmatmul.mubr.f32.vlgmr.msra.gmra.mxu1 %v3975_v25 }
0x104d   : > { %7211 = vmatpush3.msra.mxu1 %v4126_v1 }
0x104e   : > { %7212 = vmatprep.subr.mxu1 %v4125_v63 }
0x104f   : > { %7213 = vmatpush3.msra.mxu1 %v4125_v63 }
0x1050   : > { %6929 = vmatprep.subr.bf16.mxu1 %v7684_v5 }
0x10cc   : > { %v4062_v57 = vpop.xlane.xlu0 %4061 }
0x10cd   : > { %v4069_v28 = vadd.f32 %v7843_v56, %v4062_v57  ;;  %v7699_v57 = vld [vmem:[#allocation10 + $0x798] sm:$0xff]  }
0x10cf   : > { %v4071_v41 = vmul.f32 %v7838_v40, %v4069_v28  ;;  %v7700_v28 = vld [vmem:[#allocation10 + $0x858] sm:$0xff]  }
0x10d0   : > { %v4064_v42 = vpop.xlane.xlu1 %4063  ;;  %v7701_v40 = vld [vmem:[#allocation10 + $0x818] sm:$0xff]  }
0x10d1   : > { %v4070_v43 = vadd.f32 %v7843_v56, %v4064_v42  ;;  %v4073_v44 = vmul.f32 %v4071_v41, %v8822_v39  ;;  %v7696_v56 = vld [vmem:[#allocation10 + $0x860] sm:$0xff]   ;;  %v7702_v41 = vld [vmem:[#allocation10 + $0x7d0] sm:$0xff]  }
0x10d2   : > { %v7703_v42 = vld [vmem:[#allocation10 + $0x790] sm:$0xff]  }
0x10d3   : > { %v4072_v32 = vmul.f32 %v7839_v33, %v4070_v43  ;;  %4082 = vperm.xlu0 %7440, %v4073_v44   ;;  %v7704_v43 = vld [vmem:[#allocation10 + $0x850] sm:$0xff]   ;;  %v7706_v33 = vld [vmem:[#allocation10 + $0x7c8] sm:$0xff]  }
0x10d4   : > { %v7705_v44 = vld [vmem:[#allocation10 + $0x810] sm:$0xff]  }
0x10d5   : > { %v4074_v45 = vmul.f32 %v4072_v32, %v8822_v39  ;;  %v7707_v32 = vld [vmem:[#allocation10 + $0x788] sm:$0xff]  }
0x10d7   : > { %4087 = vperm.xlu1 %7441, %v4074_v45   ;;  %v7708_v45 = vld [vmem:[#allocation10 + $0x848] sm:$0xff]  }
0x110c   : > { %v8830_v8 = vpop.f32.mrf.mxu1 }
0x110e   : > { %v7209_v11 = vpop.f32.mrf.mxu1 }
0x110f   : > { %v7720_v11 = vld [vmem:[#allocation10 + $0x888] sm:$0xff]  }
0x114e   : > { %v4083_v48 = vpop.permute.xlu0 %4082 }
0x114f   : > { %vm4090_vm6 = vcmp.lt.f32.partialorder %v6430_v47, %v4083_v48  ;;  %v7710_v48 = vld [vmem:[#allocation10 + $0x7c0] sm:$0xff]  }
0x1150   : > { %v4092_v49 = vsel %vm4090_vm6, 1, %v8285_v9 }
0x1151   : > { %v4095_v50 = vshrl.u32 %v4092_v49, 16  ;;  %v4094_v62 = vand.u32 65535, %v4092_v49  ;;  %v7712_v49 = vld [vmem:[#allocation10 + $0x840] sm:$0xff]  }
0x1152   : > { %v4088_v51 = vpop.permute.xlu1 %4087 }
0x1153   : > { %vm4091_vm7 = vcmp.lt.f32.partialorder %v6430_v47, %v4088_v51  ;;  %v4097_v52 = vcvt.s32.f32 %v4095_v50  ;;  %v4096_v0 = vcvt.s32.f32 %v4094_v62  ;;  %v7709_v47 = vld [vmem:[#allocation10 + $0x808] sm:$0xff]   ;;  %v7711_v50 = vld [vmem:[#allocation10 + $0x780] sm:$0xff]  }
0x1154   : > { %v4093_v53 = vsel %vm4091_vm7, 1, %v8285_v9  ;;  %v7686_v9 = vld [vmem:[#allocation10 + $0x7f0] sm:$0xff]   ;;  %v7713_v51 = vld [vmem:[#allocation10 + $0x800] sm:$0xff]  }
0x1155   : > { %4100 = vadd.xlane.f32.xlu1 %v4097_v52  ;;  %v4107_v54 = vshrl.u32 %v4093_v53, 16  ;;  %v4106_v58 = vand.u32 65535, %v4093_v53  ;;  %6909 = vmatprep.subr.bf16.mxu0 %v7686_v9 }
0x1156   : > { %6910 = vmatpush3.bf16.msra.mxu0 %v7687_v6  ;;  %v7715_v6 = vld [vmem:[#allocation10 + $0x8b0] sm:$0xff]  }
0x1157   : > { %v4109_v59 = vcvt.s32.f32 %v4107_v54  ;;  %v4108_v61 = vcvt.s32.f32 %v4106_v58  ;;  %6911 = vmatprep.subr.bf16.mxu0 %v7690_v55  ;;  %v7717_v55 = vld [vmem:[#allocation10 + $0x8a0] sm:$0xff]  }
0x1159   : > { %4112 = vadd.xlane.f32.xlu0 %v4109_v59  ;;  %4110 = vadd.xlane.f32.xlu1 %v4108_v61 }
0x115a   : > { %6912 = vmatpush3.bf16.msra.mxu0 %v7691_v7  ;;  %v7718_v7 = vld [vmem:[#allocation10 + $0x898] sm:$0xff]  }
0x115b   : > { %6913 = vmatprep.subr.bf16.mxu0 %v7694_v10  ;;  %v7719_v10 = vld [vmem:[#allocation10 + $0x890] sm:$0xff]  }
0x115d   : > { %4098 = vadd.xlane.f32.xlu0 %v4096_v0 }
0x115e   : > { %6914 = vmatpush3.bf16.msra.mxu0 %v7695_v12  ;;  %v7721_v12 = vld [vmem:[#allocation10 + $0x880] sm:$0xff]  }
0x115f   : > { %6915 = vmatprep.subr.bf16.mxu0 %v7698_v13 }
0x1162   : > { %6916 = vmatpush3.bf16.msra.mxu0 %v7699_v57 }
0x1163   : > { %6917 = vmatprep.subr.bf16.mxu0 %v7702_v41 }
0x1166   : > { %6918 = vmatpush3.bf16.msra.mxu0 %v7703_v42 }
0x1167   : > { %6919 = vmatprep.subr.bf16.mxu0 %v7706_v33 }
0x116a   : > { %6920 = vmatpush3.bf16.msra.mxu0 %v7707_v32 }
0x116b   : > { %6921 = vmatprep.subr.bf16.mxu0 %v7710_v48 }
0x116e   : > { %6922 = vmatpush3.bf16.msra.mxu0 %v7711_v50 }
0x116f   : > { %7217 = vmatprep.subr.bf16.mxu0 %v8283_v2 }
0x11de   : > { %v4101_v15 = vpop.xlane.xlu1 %4100 }
0x11df   : > { %v4103_v19 = vcvt.f32.s32 %v4101_v15 }
0x11e1   : > { %v4104_v26 = vshll.u32 %v4103_v19, 16 }
0x11e2   : > { %v4111_v17 = vpop.xlane.xlu1 %4110  ;;  %v4113_v18 = vpop.xlane.xlu0 %4112 }
0x11e3   : > { %v4115_v22 = vcvt.f32.s32 %v4113_v18  ;;  %v4114_v20 = vcvt.f32.s32 %v4111_v17 }
0x11e5   : > { %v4116_v23 = vshll.u32 %v4115_v22, 16 }
0x11e6   : > { %v4099_v25 = vpop.xlane.xlu0 %4098 }
0x11e7   : > { %v4117_v16 = vadd.s32 %v4116_v23, %v4114_v20  ;;  %v4102_v27 = vcvt.f32.s32 %v4099_v25 }
0x11e9   : > { %v4105_v21 = vadd.s32 %v4104_v26, %v4102_v27  ;;  %vm4119_vm8 = vcmp.eq.s32.totalorder %v8745_v60, %v4117_v16  ;;  %v6435_v26 = vld [vmem:[#allocation11 + $0x8] ss:$0 sm:$0xff] }
0x11ea   : > { %v6432_v36 = vsel %vm4119_vm8, 1.0, %v8283_v2 }
0x11eb   : > { %vm4118_vm9 = vcmp.eq.s32.totalorder %v8745_v60, %v4105_v21  ;;  %v7697_v60 = vld [vmem:[#allocation10 + $0x820] sm:$0xff]  }
0x11ec   : > { %v6431_v31 = vsel %vm4118_vm9, 1.0, %v8283_v2 }
0x11ed   : > { %7214 = vmatprep.mubr.msk.f32.mxu1 %vm2375_vm3, %v6431_v31 }
0x11ee   : > { %7215 = vmatmul.mubr.msk.f32.vlgmr.msra.gmra.mxu1 %vm2375_vm3, %v6432_v36 }
0x11ef   : > { %6930 = vmatpush3.bf16.msra.mxu1 %v7685_v29 }
0x11f0   : > { %6931 = vmatprep.subr.bf16.mxu1 %v7688_v35 }
0x11f3   : > { %6932 = vmatpush3.bf16.msra.mxu1 %v7689_v37 }
0x11f4   : > { %6933 = vmatprep.subr.bf16.mxu1 %v7692_v24 }
0x11f7   : > { %6934 = vmatpush3.bf16.msra.mxu1 %v7693_v38 }
0x11f8   : > { %6935 = vmatprep.subr.bf16.mxu1 %v7696_v56 }
0x11fb   : > { %6936 = vmatpush3.bf16.msra.mxu1 %v7697_v60 }
0x11fc   : > { %6937 = vmatprep.subr.bf16.mxu1 %v7700_v28 }
0x11ff   : > { %6938 = vmatpush3.bf16.msra.mxu1 %v7701_v40 }
0x1200   : > { %6939 = vmatprep.subr.bf16.mxu1 %v7704_v43 }
0x1203   : > { %6940 = vmatpush3.bf16.msra.mxu1 %v7705_v44 }
0x1204   : > { %6941 = vmatprep.subr.bf16.mxu1 %v7708_v45 }
0x1207   : > { %6942 = vmatpush3.bf16.msra.mxu1 %v7709_v47 }
0x1208   : > { %6943 = vmatprep.subr.bf16.mxu1 %v7712_v49 }
0x120b   : > { %6944 = vmatpush3.bf16.msra.mxu1 %v7713_v51  ;;  %v7722_v51 = vld [vmem:[#allocation10 + $0x938] sm:$0xff]  }
0x120c   : > { %6960 = vmatprep.subr.bf16.mxu1 %v7722_v51 }
0x12ae   : > { %v7216_v52 = vpop.f32.mrf.mxu1 }
0x12af   : > { %v4209_v53 = vadd.f32 %v7216_v52, %v8755_v30  ;;  %v7723_v52 = vld [vmem:[#allocation10 + $0x8f8] sm:$0xff]  }
0x12b0   : > { %v4199_v54 = vpop.f32.mrf.mxu1 }
0x12b1   : > { %5804 = vst [vmem:[%s8842_s10 + $0x8] sm:$0xff] %v4209_v53  ;;  %4211 = vst [vmem:[#allocation2 + $0xa] sm:$0xff] %v4209_v53  ;;  %v4208_v58 = vadd.f32 %v4199_v54, %v8759_v34  ;;  %v7716_v34 = vld [vmem:[#allocation10 + $0x8a8] sm:$0xff]   ;;  %v7725_v54 = vld [vmem:[#allocation10 + $0x978] sm:$0xff]  }
0x12b3   : > { %5803 = vst [vmem:[%s8842_s10] sm:$0xff] %v4208_v58  ;;  %4210 = vst [vmem:[#allocation2 + $0x2] sm:$0xff] %v4208_v58  ;;  %v4224_v9 = vpack.c.bf16 %v4209_v53, %v4208_v58  ;;  %v7724_v53 = vld [vmem:[#allocation10 + $0x9b8] sm:$0xff]   ;;  %v7726_v58 = vld [vmem:[#allocation10 + $0x930] sm:$0xff]   ;;  %s8097_s10 = sshll.u32 %s8286_s1, 4  ;;  %s8098_s10 = int_to_ptr.vmem [resolvable:$false] %s8097_s10 }
0x12b4   : > { %s8099_s20 = scalar_lea.vmem %s8098_s10, 32 }
0x12b8   : > { %v4219_v59 = vld [vmem:[#allocation2 + $0xb] sm:$0xff] }
0x12b9   : > { %v4221_v15 = vld [vmem:[#allocation2 + $0xc] sm:$0xff] }
0x12ba   : > { %v4214_v61 = vld [vmem:[#allocation2 + $0x1] sm:$0xff]  ;;  %v4215_v62 = vld [vmem:[#allocation2 + $0x9] sm:$0xff] }
0x12bb   : > { %v4218_v0 = vld [vmem:[#allocation2 + $0x3] sm:$0xff]  ;;  %v4223_v1 = vpack.c.bf16 %v4215_v62, %v4214_v61 }
0x12bc   : > { %v4225_v63 = vpack.c.bf16 %v4219_v59, %v4218_v0  ;;  %v4212_v3 = vld [vmem:[#allocation2] sm:$0xff]  ;;  %v4213_v30 = vld [vmem:[#allocation2 + $0x8] sm:$0xff] }
0x12bd   : > { %v4222_v5 = vpack.c.bf16 %v4213_v30, %v4212_v3  ;;  %4586 = vmatprep.mubr.bf16.mxu0 %v4223_v1  ;;  %v4220_v13 = vld [vmem:[#allocation2 + $0x4] sm:$0xff]  ;;  %v7734_v30 = vld [vmem:[#allocation10 + $0x920] sm:$0xff]  }
0x12be   : > { %4627 = vmatprep.mubr.bf16.mxu1 %v4225_v63  ;;  %v4226_v17 = vpack.c.bf16 %v4221_v15, %v4220_v13  ;;  %v7727_v59 = vld [vmem:[#allocation10 + $0x8f0] sm:$0xff]   ;;  %v7730_v0 = vld [vmem:[#allocation10 + $0x928] sm:$0xff]  }
0x12bf   : > { %4587 = vmatmul.mubr.bf16.vlgmr.msra.gmra.mxu0 %v4222_v5  ;;  %4628 = vmatmul.mubr.bf16.vlgmr.msra.gmra.mxu1 %v4224_v9  ;;  %v7728_v61 = vld [vmem:[#allocation10 + $0x9b0] sm:$0xff]   ;;  %v7731_v1 = vld [vmem:[#allocation10 + $0x8e8] sm:$0xff]   ;;  %v7736_v5 = vld [vmem:[#allocation10 + $0x9a0] sm:$0xff]  }
0x12c0   : > { %7218 = vmatpush3.bf16.msra.mxu0 %v7714_v4  ;;  %7233 = vmatprep.mubr.msk.bf16.mxu0 %vm8284_vm0, %v8283_v2  ;;  %v7729_v62 = vld [vmem:[#allocation10 + $0x970] sm:$0xff]   ;;  %v7732_v63 = vld [vmem:[#allocation10 + $0x9a8] sm:$0xff]   ;;  %v7735_v4 = vld [vmem:[#allocation10 + $0x8e0] sm:$0xff]  }
0x12c1   : > { %7219 = vmatprep.subr.bf16.mxu0 %v8283_v2  ;;  %6961 = vmatpush3.bf16.msra.mxu1 %v7723_v52  ;;  %v7733_v3 = vld [vmem:[#allocation10 + $0x968] sm:$0xff]   ;;  %v7737_v9 = vld [vmem:[#allocation10 + $0x960] sm:$0xff]   ;;  %v7745_v13 = vld [vmem:[#allocation10 + $0x950] sm:$0xff]  }
0x12c2   : > { %6962 = vmatprep.subr.bf16.mxu1 %v7726_v58  ;;  %v7746_v15 = vld [vmem:[#allocation10 + $0x908] sm:$0xff]   ;;  %v7759_v58 = vld [vmem:[#allocation10 + $0x9d0] sm:$0xff]  }
0x12c3   : > { %v7756_v52 = vld [vmem:[#allocation10 + $0x9e8] sm:$0xff]  }
0x12c4   : > { %7220 = vmatpush3.bf16.msra.mxu0 %v7715_v6  ;;  %v7738_v6 = vld [vmem:[#allocation10 + $0x918] sm:$0xff]  }
0x12c5   : > { %7221 = vmatprep.subr.bf16.mxu0 %v8283_v2  ;;  %6963 = vmatpush3.bf16.msra.mxu1 %v7727_v59  ;;  %v7760_v59 = vld [vmem:[#allocation10 + $0x9c8] sm:$0xff]  }
0x12c6   : > { %6964 = vmatprep.subr.bf16.mxu1 %v7730_v0 }
0x12c8   : > { %7222 = vmatpush3.bf16.msra.mxu0 %v7716_v34  ;;  %v7739_v34 = vld [vmem:[#allocation10 + $0x8d8] sm:$0xff]  }
0x12c9   : > { %7223 = vmatprep.subr.bf16.mxu0 %v8283_v2  ;;  %6965 = vmatpush3.bf16.msra.mxu1 %v7731_v1 }
0x12ca   : > { %6966 = vmatprep.subr.bf16.mxu1 %v7734_v30 }
0x12cc   : > { %7224 = vmatpush3.bf16.msra.mxu0 %v7717_v55  ;;  %v7740_v55 = vld [vmem:[#allocation10 + $0x998] sm:$0xff]  }
0x12cd   : > { %7225 = vmatprep.subr.bf16.mxu0 %v8283_v2  ;;  %6967 = vmatpush3.bf16.msra.mxu1 %v7735_v4 }
0x12ce   : > { %6968 = vmatprep.subr.bf16.mxu1 %v7738_v6  ;;  %v6478_v6 = vld [vmem:[#allocation11 + $0x9] ss:$0 sm:$0xff] }
0x12d0   : > { %7226 = vmatpush3.bf16.msra.mxu0 %v7718_v7  ;;  %v7741_v7 = vld [vmem:[#allocation10 + $0x958] sm:$0xff]  }
0x12d1   : > { %7227 = vmatprep.subr.bf16.mxu0 %v8283_v2  ;;  %6969 = vmatpush3.bf16.msra.mxu1 %v7739_v34 }
0x12d4   : > { %7228 = vmatpush3.bf16.msra.mxu0 %v7719_v10  ;;  %v7742_v10 = vld [vmem:[#allocation10 + $0x910] sm:$0xff]  }
0x12d5   : > { %7229 = vmatprep.subr.bf16.mxu0 %v8283_v2  ;;  %6970 = vmatprep.subr.bf16.mxu1 %v7742_v10 }
0x12d8   : > { %7230 = vmatpush3.bf16.msra.mxu0 %v7720_v11  ;;  %v7743_v11 = vld [vmem:[#allocation10 + $0x8d0] sm:$0xff]  }
0x12d9   : > { %7231 = vmatprep.subr.bf16.mxu0 %v8283_v2  ;;  %6971 = vmatpush3.bf16.msra.mxu1 %v7743_v11 }
0x12da   : > { %6972 = vmatprep.subr.bf16.mxu1 %v7746_v15 }
0x12dc   : > { %7232 = vmatpush3.bf16.msra.mxu0 %v7721_v12  ;;  %v7744_v12 = vld [vmem:[#allocation10 + $0x990] sm:$0xff]  }
0x12dd   : > { %6982 = vmatprep.subr.bf16.mxu0 %v7724_v53  ;;  %v7757_v53 = vld [vmem:[#allocation10 + $0x9e0] sm:$0xff]  }
0x12df   : > { %7234 = vmatmul.mubr.bf16.vlgmr.msra.gmra.mxu0 %v4226_v17  ;;  %v7747_v17 = vld [vmem:[#allocation10 + $0x8c8] sm:$0xff]  }
0x12e0   : > { %6983 = vmatpush3.bf16.msra.mxu0 %v7725_v54  ;;  %6973 = vmatpush3.bf16.msra.mxu1 %v7747_v17  ;;  %v7758_v54 = vld [vmem:[#allocation10 + $0x9d8] sm:$0xff]  }
0x12e1   : > { %6984 = vmatprep.subr.bf16.mxu0 %v7728_v61  ;;  %v7761_v61 = vld [vmem:[#allocation10 + $0x9c0] sm:$0xff]  }
0x12e4   : > { %6985 = vmatpush3.bf16.msra.mxu0 %v7729_v62 }
0x12e5   : > { %6986 = vmatprep.subr.bf16.mxu0 %v7732_v63 }
0x12e8   : > { %6987 = vmatpush3.bf16.msra.mxu0 %v7733_v3 }
0x12e9   : > { %6988 = vmatprep.subr.bf16.mxu0 %v7736_v5 }
0x12ec   : > { %6989 = vmatpush3.bf16.msra.mxu0 %v7737_v9 }
0x12ed   : > { %6990 = vmatprep.subr.bf16.mxu0 %v7740_v55 }
0x12f0   : > { %6991 = vmatpush3.bf16.msra.mxu0 %v7741_v7 }
0x12f1   : > { %6992 = vmatprep.subr.bf16.mxu0 %v7744_v12 }
0x12f4   : > { %6993 = vmatpush3.bf16.msra.mxu0 %v7745_v13 }
0x137f   : > { %v6923_v18 = vpop.f32.mrf.mxu0  ;;  %v6945_v22 = vpop.f32.mrf.mxu1 }
0x1381   : > { %v6924_v19 = vpop.f32.mrf.mxu0  ;;  %v6946_v23 = vpop.f32.mrf.mxu1 }
0x1382   : > { %v6925_v25 = vadd.f32 %v6924_v19, %v6923_v18  ;;  %v6947_v31 = vadd.f32 %v6946_v23, %v6945_v22  ;;  %v7748_v18 = vld [vmem:[#allocation10 + $0x988] sm:$0xff]   ;;  %v7750_v22 = vld [vmem:[#allocation10 + $0x900] sm:$0xff]  }
0x1383   : > { %v6926_v20 = vpop.f32.mrf.mxu0  ;;  %v6948_v27 = vpop.f32.mrf.mxu1  ;;  %v7749_v19 = vld [vmem:[#allocation10 + $0x948] sm:$0xff]   ;;  %6994 = vmatprep.subr.bf16.mxu0 %v7748_v18  ;;  %v7751_v23 = vld [vmem:[#allocation10 + $0x8c0] sm:$0xff]   ;;  %6974 = vmatprep.subr.bf16.mxu1 %v7750_v22 }
0x1384   : > { %v4589_v21 = vadd.f32 %v6925_v25, %v6435_v26  ;;  %6995 = vmatpush3.bf16.msra.mxu0 %v7749_v19  ;;  %v7753_v25 = vld [vmem:[#allocation10 + $0x940] sm:$0xff]   ;;  %6975 = vmatpush3.bf16.msra.mxu1 %v7751_v23 }
0x1385   : > { %v6927_v16 = vpop.f32.mrf.mxu0  ;;  %v6949_v35 = vpop.f32.mrf.mxu1  ;;  %7237 = vmatprep.subr.bf16.mxu1 %v8283_v2 }
0x1386   : > { %v6928_v29 = vadd.f32 %v6927_v16, %v6926_v20  ;;  %v4630_v37 = vadd.f32 %v6947_v31, %v4589_v21  ;;  %v6950_v38 = vadd.f32 %v6949_v35, %v6948_v27  ;;  %v7752_v20 = vld [vmem:[#allocation10 + $0x980] sm:$0xff]  }
0x1387   : > { %6996 = vmatprep.subr.bf16.mxu0 %v7752_v20 }
0x1388   : > { %v4592_v36 = vadd.f32 %v6928_v29, %v6435_v26  ;;  %6997 = vmatpush3.bf16.msra.mxu0 %v7753_v25 }
0x138a   : > { %v4633_v28 = vadd.f32 %v6950_v38, %v4592_v36  ;;  %v6476_v36 = vld [vmem:[#allocation13 + $0x8] ss:$0 sm:$0xff] }
0x139f   : > { %v4670_v24 = vpop.f32.mrf.mxu0 }
0x13a0   : > { %v4671_v56 = vadd.f32 %v4670_v24, %v4630_v37  ;;  %v6477_v24 = vld [vmem:[#allocation14 + $0x8] ss:$0 sm:$0xff] }
0x13a1   : > { %v7235_v60 = vpop.f32.mrf.mxu0 }
0x13a2   : > { %v4677_v57 = vmax.f32 %v4671_v56, 0.0 }
0x13a3   : > { %v4673_v40 = vpop.f32.mrf.mxu0 }
0x13a4   : > { %v4674_v41 = vadd.f32 %v4673_v40, %v4633_v28  ;;  %4679 = vadd.xlane.f32.xlu0 %v4677_v57 }
0x13a5   : > { %v7236_v42 = vpop.f32.mrf.mxu0 }
0x13a6   : > { %v4678_v43 = vmax.f32 %v4674_v41, 0.0 }
0x13a8   : > { %4681 = vadd.xlane.f32.xlu1 %v4678_v43 }
0x142d   : > { %v4680_v44 = vpop.xlane.xlu0 %4679 }
0x142e   : > { %v4683_v33 = vmul.f32 0.0078125, %v4680_v44 }
0x1430   : > { %v8856_v32 = vsub.f32 %v4677_v57, %v4683_v33 }
0x1431   : > { %v4682_v45 = vpop.xlane.xlu1 %4681 }
0x1432   : > { %v4684_v47 = vmul.f32 0.0078125, %v4682_v45  ;;  %v4687_v48 = vmul.f32 %v8856_v32, %v8856_v32 }
0x1434   : > { %v8860_v49 = vsub.f32 %v4678_v43, %v4684_v47  ;;  %4689 = vadd.xlane.f32.xlu0 %v4687_v48 }
0x1436   : > { %v4688_v50 = vmul.f32 %v8860_v49, %v8860_v49 }
0x1438   : > { %4691 = vadd.xlane.f32.xlu1 %v4688_v50  ;;  %v7754_v50 = vld [vmem:[#allocation10 + $0x9f8] sm:$0xff]  }
0x14bd   : > { %v4690_v26 = vpop.xlane.xlu0 %4689 }
0x14be   : > { %v4693_v16 = vmul.f32 0.0078125, %v4690_v26 }
0x14c0   : > { %v4695_v27 = vadd.f32 1e-05, %v4693_v16 }
0x14c1   : > { %v4692_v21 = vpop.xlane.xlu1 %4691 }
0x14c2   : > { %7826 = vrsqrt.f32 %v4695_v27  ;;  %v4694_v29 = vmul.f32 0.0078125, %v4692_v21 }
0x14c4   : > { %v4696_v31 = vadd.f32 1e-05, %v4694_v29 }
0x14c6   : > { %7828 = vrsqrt.f32 %v4696_v31 }
0x14cf   : > { %v7827_v35 = vpop.eup %7826 }
0x14d0   : > { %v4699_v37 = vmul.f32 %v7827_v35, %v8856_v32 }
0x14d2   : > { %v4707_v38 = vmul.f32 %v6476_v36, %v4699_v37 }
0x14d3   : > { %v7829_v56 = vpop.eup %7828 }
0x14d4   : > { %v4715_v60 = vadd.f32 %v6477_v24, %v4707_v38  ;;  %v4700_v57 = vmul.f32 %v7829_v56, %v8860_v49  ;;  %v7755_v49 = vld [vmem:[#allocation10 + $0x9f0] sm:$0xff]   ;;  %v7762_v56 = vld [vmem:[#allocation10 + $0xa78] sm:$0xff]  }
0x14d5   : > { %7013 = vmatprep.subr.bf16.mxu0 %v7762_v56 }
0x14d6   : > { %4717 = vst [vmem:[#allocation2 + $0x2] sm:$0xff] %v4715_v60  ;;  %v4708_v28 = vmul.f32 %v6476_v36, %v4700_v57  ;;  %v7764_v57 = vld [vmem:[#allocation10 + $0xaf8] sm:$0xff]  }
0x14d8   : > { %v4716_v40 = vadd.f32 %v6477_v24, %v4708_v28  ;;  %v7765_v28 = vld [vmem:[#allocation10 + $0xab8] sm:$0xff]  }
0x14da   : > { %4718 = vst [vmem:[#allocation2 + $0xa] sm:$0xff] %v4716_v40  ;;  %v4731_v51 = vpack.c.bf16 %v4716_v40, %v4715_v60  ;;  %v7763_v60 = vld [vmem:[#allocation10 + $0xa38] sm:$0xff]   ;;  %v7766_v40 = vld [vmem:[#allocation10 + $0xa70] sm:$0xff]  }
0x14dd   : > { %v4721_v41 = vld [vmem:[#allocation2 + $0x1] sm:$0xff] }
0x14de   : > { %v4719_v47 = vld [vmem:[#allocation2] sm:$0xff] }
0x14e1   : > { %v4722_v42 = vld [vmem:[#allocation2 + $0x9] sm:$0xff] }
0x14e2   : > { %v4725_v43 = vld [vmem:[#allocation2 + $0x3] sm:$0xff]  ;;  %v4726_v44 = vld [vmem:[#allocation2 + $0xb] sm:$0xff]  ;;  %v4730_v33 = vpack.c.bf16 %v4722_v42, %v4721_v41 }
0x14e3   : > { %v4732_v45 = vpack.c.bf16 %v4726_v44, %v4725_v43  ;;  %v4720_v48 = vld [vmem:[#allocation2 + $0x8] sm:$0xff] }
0x14e4   : > { %v4729_v32 = vpack.c.bf16 %v4720_v48, %v4719_v47  ;;  %5092 = vmatprep.mubr.bf16.mxu1 %v4730_v33  ;;  %v4727_v62 = vld [vmem:[#allocation2 + $0x4] sm:$0xff]  ;;  %v4728_v0 = vld [vmem:[#allocation2 + $0xc] sm:$0xff]  ;;  %v7774_v48 = vld [vmem:[#allocation10 + $0xa60] sm:$0xff]  }
0x14e5   : > { %5133 = vmatprep.mubr.bf16.mxu0 %v4732_v45  ;;  %v4733_v1 = vpack.c.bf16 %v4728_v0, %v4727_v62  ;;  %v7767_v41 = vld [vmem:[#allocation10 + $0xa30] sm:$0xff]   ;;  %v7770_v44 = vld [vmem:[#allocation10 + $0xa68] sm:$0xff]  }
0x14e6   : > { %5093 = vmatmul.mubr.bf16.vlgmr.msra.gmra.mxu1 %v4729_v32  ;;  %5134 = vmatmul.mubr.bf16.vlgmr.msra.gmra.mxu0 %v4731_v51  ;;  %v7768_v42 = vld [vmem:[#allocation10 + $0xaf0] sm:$0xff]   ;;  %v7771_v33 = vld [vmem:[#allocation10 + $0xa28] sm:$0xff]   ;;  %v7776_v32 = vld [vmem:[#allocation10 + $0xae0] sm:$0xff]  }
0x14e7   : > { %7238 = vmatpush3.bf16.msra.mxu1 %v7754_v50  ;;  %7253 = vmatprep.mubr.msk.bf16.mxu1 %vm8284_vm0, %v8283_v2  ;;  %v7769_v43 = vld [vmem:[#allocation10 + $0xab0] sm:$0xff]   ;;  %v7772_v45 = vld [vmem:[#allocation10 + $0xae8] sm:$0xff]   ;;  %v7775_v50 = vld [vmem:[#allocation10 + $0xa20] sm:$0xff]  }
0x14e8   : > { %7239 = vmatprep.subr.bf16.mxu1 %v8283_v2  ;;  %7014 = vmatpush3.bf16.msra.mxu0 %v7763_v60  ;;  %v7773_v47 = vld [vmem:[#allocation10 + $0xaa8] sm:$0xff]   ;;  %v7777_v51 = vld [vmem:[#allocation10 + $0xaa0] sm:$0xff]   ;;  %v7785_v62 = vld [vmem:[#allocation10 + $0xa90] sm:$0xff]  }
0x14e9   : > { %7015 = vmatprep.subr.bf16.mxu0 %v7766_v40  ;;  %v7786_v0 = vld [vmem:[#allocation10 + $0xa48] sm:$0xff]   ;;  %v7799_v40 = vld [vmem:[#allocation10 + $0xb10] sm:$0xff]  }
0x14ea   : > { %v7796_v60 = vld [vmem:[#allocation10 + $0xb28] sm:$0xff]  }
0x14eb   : > { %7240 = vmatpush3.bf16.msra.mxu1 %v7755_v49  ;;  %v7778_v49 = vld [vmem:[#allocation10 + $0xa58] sm:$0xff]  }
0x14ec   : > { %7241 = vmatprep.subr.bf16.mxu1 %v8283_v2  ;;  %7016 = vmatpush3.bf16.msra.mxu0 %v7767_v41  ;;  %v7800_v41 = vld [vmem:[#allocation10 + $0xb08] sm:$0xff]  }
0x14ed   : > { %7017 = vmatprep.subr.bf16.mxu0 %v7770_v44 }
0x14ef   : > { %7242 = vmatpush3.bf16.msra.mxu1 %v7756_v52  ;;  %v7779_v52 = vld [vmem:[#allocation10 + $0xa18] sm:$0xff]  }
0x14f0   : > { %7243 = vmatprep.subr.bf16.mxu1 %v8283_v2  ;;  %7018 = vmatpush3.bf16.msra.mxu0 %v7771_v33 }
0x14f1   : > { %7019 = vmatprep.subr.bf16.mxu0 %v7774_v48 }
0x14f3   : > { %7244 = vmatpush3.bf16.msra.mxu1 %v7757_v53  ;;  %v7780_v53 = vld [vmem:[#allocation10 + $0xad8] sm:$0xff]  }
0x14f4   : > { %7245 = vmatprep.subr.bf16.mxu1 %v8283_v2  ;;  %7020 = vmatpush3.bf16.msra.mxu0 %v7775_v50 }
0x14f5   : > { %7021 = vmatprep.subr.bf16.mxu0 %v7778_v49  ;;  %v6521_v49 = vld [vmem:[#allocation11 + $0xa] ss:$0 sm:$0xff] }
0x14f7   : > { %7246 = vmatpush3.bf16.msra.mxu1 %v7758_v54  ;;  %v7781_v54 = vld [vmem:[#allocation10 + $0xa98] sm:$0xff]  }
0x14f8   : > { %7247 = vmatprep.subr.bf16.mxu1 %v8283_v2  ;;  %7022 = vmatpush3.bf16.msra.mxu0 %v7779_v52 }
0x14fb   : > { %7248 = vmatpush3.bf16.msra.mxu1 %v7759_v58  ;;  %v7782_v58 = vld [vmem:[#allocation10 + $0xa50] sm:$0xff]  }
0x14fc   : > { %7249 = vmatprep.subr.bf16.mxu1 %v8283_v2  ;;  %7023 = vmatprep.subr.bf16.mxu0 %v7782_v58 }
0x14ff   : > { %7250 = vmatpush3.bf16.msra.mxu1 %v7760_v59  ;;  %v7783_v59 = vld [vmem:[#allocation10 + $0xa10] sm:$0xff]  }
0x1500   : > { %7251 = vmatprep.subr.bf16.mxu1 %v8283_v2  ;;  %7024 = vmatpush3.bf16.msra.mxu0 %v7783_v59 }
0x1501   : > { %7025 = vmatprep.subr.bf16.mxu0 %v7786_v0 }
0x1503   : > { %7252 = vmatpush3.bf16.msra.mxu1 %v7761_v61  ;;  %v7784_v61 = vld [vmem:[#allocation10 + $0xad0] sm:$0xff]  }
0x1504   : > { %7035 = vmatprep.subr.bf16.mxu1 %v7764_v57  ;;  %v7797_v57 = vld [vmem:[#allocation10 + $0xb20] sm:$0xff]  }
0x1506   : > { %7254 = vmatmul.mubr.bf16.vlgmr.msra.gmra.mxu1 %v4733_v1  ;;  %v7787_v1 = vld [vmem:[#allocation10 + $0xa08] sm:$0xff]  }
0x1507   : > { %7036 = vmatpush3.bf16.msra.mxu1 %v7765_v28  ;;  %7026 = vmatpush3.bf16.msra.mxu0 %v7787_v1  ;;  %v7798_v28 = vld [vmem:[#allocation10 + $0xb18] sm:$0xff]  }
0x1508   : > { %7037 = vmatprep.subr.bf16.mxu1 %v7768_v42  ;;  %v7801_v42 = vld [vmem:[#allocation10 + $0xb00] sm:$0xff]  }
0x150b   : > { %7038 = vmatpush3.bf16.msra.mxu1 %v7769_v43 }
0x150c   : > { %7039 = vmatprep.subr.bf16.mxu1 %v7772_v45 }
0x150f   : > { %7040 = vmatpush3.bf16.msra.mxu1 %v7773_v47 }
0x1510   : > { %7041 = vmatprep.subr.bf16.mxu1 %v7776_v32 }
0x1513   : > { %7042 = vmatpush3.bf16.msra.mxu1 %v7777_v51 }
0x1514   : > { %7043 = vmatprep.subr.bf16.mxu1 %v7780_v53 }
0x1517   : > { %7044 = vmatpush3.bf16.msra.mxu1 %v7781_v54 }
0x1518   : > { %7045 = vmatprep.subr.bf16.mxu1 %v7784_v61 }
0x151b   : > { %7046 = vmatpush3.bf16.msra.mxu1 %v7785_v62 }
0x15a6   : > { %v6976_v63 = vpop.f32.mrf.mxu1  ;;  %v6998_v30 = vpop.f32.mrf.mxu0 }
0x15a8   : > { %v6977_v3 = vpop.f32.mrf.mxu1  ;;  %v6999_v5 = vpop.f32.mrf.mxu0 }
0x15a9   : > { %v6978_v9 = vadd.f32 %v6977_v3, %v6976_v63  ;;  %v7000_v11 = vadd.f32 %v6999_v5, %v6998_v30  ;;  %v7788_v63 = vld [vmem:[#allocation10 + $0xac8] sm:$0xff]   ;;  %v7790_v30 = vld [vmem:[#allocation10 + $0xa40] sm:$0xff]  }
0x15aa   : > { %v6979_v4 = vpop.f32.mrf.mxu1  ;;  %v7001_v55 = vpop.f32.mrf.mxu0  ;;  %v7789_v3 = vld [vmem:[#allocation10 + $0xa88] sm:$0xff]   ;;  %7047 = vmatprep.subr.bf16.mxu1 %v7788_v63  ;;  %v7791_v5 = vld [vmem:[#allocation10 + $0xa00] sm:$0xff]   ;;  %7027 = vmatprep.subr.bf16.mxu0 %v7790_v30 }
0x15ab   : > { %v5095_v7 = vadd.f32 %v6978_v9, %v6478_v6  ;;  %7048 = vmatpush3.bf16.msra.mxu1 %v7789_v3  ;;  %v7793_v9 = vld [vmem:[#allocation10 + $0xa80] sm:$0xff]   ;;  %7028 = vmatpush3.bf16.msra.mxu0 %v7791_v5 }
0x15ac   : > { %v6980_v34 = vpop.f32.mrf.mxu1  ;;  %v7002_v12 = vpop.f32.mrf.mxu0  ;;  %7257 = vmatprep.subr.bf16.mxu0 %v8283_v2 }
0x15ad   : > { %v6981_v10 = vadd.f32 %v6980_v34, %v6979_v4  ;;  %v5136_v15 = vadd.f32 %v7000_v11, %v5095_v7  ;;  %v7003_v18 = vadd.f32 %v7002_v12, %v7001_v55  ;;  %v7792_v4 = vld [vmem:[#allocation10 + $0xac0] sm:$0xff]  }
0x15ae   : > { %7049 = vmatprep.subr.bf16.mxu1 %v7792_v4 }
0x15af   : > { %v5098_v13 = vadd.f32 %v6981_v10, %v6478_v6  ;;  %7050 = vmatpush3.bf16.msra.mxu1 %v7793_v9 }
0x15b0   : > { %7277 = vmatprep.subr.mxu1 %v8283_v2 }
0x15b1   : > { %v5139_v23 = vadd.f32 %v7003_v18, %v5098_v13  ;;  %v6519_v13 = vld [vmem:[#allocation13 + $0x9] ss:$0 sm:$0xff] }
0x15c6   : > { %v5176_v17 = vpop.f32.mrf.mxu1 }
0x15c7   : > { %v5177_v19 = vadd.f32 %v5176_v17, %v5136_v15  ;;  %v6520_v17 = vld [vmem:[#allocation14 + $0x9] ss:$0 sm:$0xff] }
0x15c8   : > { %v7255_v22 = vpop.f32.mrf.mxu1 }
0x15c9   : > { %v5183_v20 = vmax.f32 %v5177_v19, 0.0 }
0x15ca   : > { %v5179_v25 = vpop.f32.mrf.mxu1 }
0x15cb   : > { %v5180_v26 = vadd.f32 %v5179_v25, %v5139_v23  ;;  %5185 = vadd.xlane.f32.xlu0 %v5183_v20 }
0x15cc   : > { %v7256_v16 = vpop.f32.mrf.mxu1 }
0x15cd   : > { %v5184_v27 = vmax.f32 %v5180_v26, 0.0 }
0x15cf   : > { %5187 = vadd.xlane.f32.xlu1 %v5184_v27 }
0x1654   : > { %v5186_v21 = vpop.xlane.xlu0 %5185 }
0x1655   : > { %v5189_v29 = vmul.f32 0.0078125, %v5186_v21 }
0x1657   : > { %v8876_v31 = vsub.f32 %v5183_v20, %v5189_v29 }
0x1658   : > { %v5188_v35 = vpop.xlane.xlu1 %5187 }
0x1659   : > { %v5190_v36 = vmul.f32 0.0078125, %v5188_v35  ;;  %v5193_v37 = vmul.f32 %v8876_v31, %v8876_v31 }
0x165b   : > { %v8880_v24 = vsub.f32 %v5184_v27, %v5190_v36  ;;  %5195 = vadd.xlane.f32.xlu0 %v5193_v37 }
0x165d   : > { %v5194_v38 = vmul.f32 %v8880_v24, %v8880_v24 }
0x165f   : > { %5197 = vadd.xlane.f32.xlu1 %v5194_v38  ;;  %v7794_v38 = vld [vmem:[#allocation10 + $0xb38] sm:$0xff]  }
0x16e4   : > { %v5196_v6 = vpop.xlane.xlu0 %5195 }
0x16e5   : > { %v5199_v34 = vmul.f32 0.0078125, %v5196_v6 }
0x16e7   : > { %v5201_v55 = vadd.f32 1e-05, %v5199_v34 }
0x16e8   : > { %v5198_v7 = vpop.xlane.xlu1 %5197 }
0x16e9   : > { %7830 = vrsqrt.f32 %v5201_v55  ;;  %v5200_v10 = vmul.f32 0.0078125, %v5198_v7 }
0x16eb   : > { %v5202_v11 = vadd.f32 1e-05, %v5200_v10 }
0x16ed   : > { %7832 = vrsqrt.f32 %v5202_v11 }
0x16f6   : > { %v7831_v12 = vpop.eup %7830 }
0x16f7   : > { %v5205_v15 = vmul.f32 %v7831_v12, %v8876_v31 }
0x16f9   : > { %v5212_v18 = vmul.f32 %v6519_v13, %v5205_v15 }
0x16fa   : > { %v7833_v19 = vpop.eup %7832 }
0x16fb   : > { %v5219_v22 = vadd.f32 %v6520_v17, %v5212_v18  ;;  %v5206_v20 = vmul.f32 %v7833_v19, %v8880_v24  ;;  %v7795_v24 = vld [vmem:[#allocation10 + $0xb30] sm:$0xff]   ;;  %v7840_v19 = vld [vmem:[%s9049_s9 + $0x1] sm:$0x1] }
0x16fd   : > { %5221 = vst [vmem:[#allocation2 + $0x2] sm:$0xff] %v5219_v22  ;;  %v5213_v23 = vmul.f32 %v6519_v13, %v5206_v20  ;;  %v7841_v20 = vld [vmem:[%s9049_s9] sm:$0x1] }
0x16ff   : > { %v5220_v25 = vadd.f32 %v6520_v17, %v5213_v23 }
0x1701   : > { %5222 = vst [vmem:[#allocation2 + $0xa] sm:$0xff] %v5220_v25  ;;  %v5235_v56 = vpack.c.bf16 %v5220_v25, %v5219_v22  ;;  %v5726_v22 = vld [vmem:[%s9049_s9 + $0x2] sm:$0x1] }
0x1704   : > { %v5225_v26 = vld [vmem:[#allocation2 + $0x1] sm:$0xff] }
0x1705   : > { %v5223_v36 = vld [vmem:[#allocation2] sm:$0xff] }
0x1708   : > { %v5226_v16 = vld [vmem:[#allocation2 + $0x9] sm:$0xff] }
0x1709   : > { %v5229_v27 = vld [vmem:[#allocation2 + $0x3] sm:$0xff]  ;;  %v5230_v21 = vld [vmem:[#allocation2 + $0xb] sm:$0xff]  ;;  %v5234_v29 = vpack.c.bf16 %v5226_v16, %v5225_v26 }
0x170a   : > { %v5236_v35 = vpack.c.bf16 %v5230_v21, %v5229_v27  ;;  %v5224_v37 = vld [vmem:[#allocation2 + $0x8] sm:$0xff]  ;;  %v8910_v27 = vld [vmem:[%s599_s17] sm:$0x1]  ;;  %s683_s17 = scalar_lea.vmem [#allocation21], %s8614_s30 }
0x170b   : > { %v5233_v31 = vpack.c.bf16 %v5224_v37, %v5223_v36  ;;  %5596 = vmatprep.mubr.bf16.mxu0 %v5234_v29  ;;  %v5231_v43 = vld [vmem:[#allocation2 + $0x4] sm:$0xff]  ;;  %v5232_v44 = vld [vmem:[#allocation2 + $0xc] sm:$0xff]  ;;  %s5851_s8 = sshll.u32 %s683_s17, 4  ;;  %s5852_s8 = int_to_ptr.vmem [resolvable:$true] %s5851_s8 }
0x170c   : > { %5637 = vmatprep.mubr.bf16.mxu1 %v5236_v35  ;;  %v5237_v33 = vpack.c.bf16 %v5232_v44, %v5231_v43  ;;  %s8093_s22 = scalar_lea.vmem %s5852_s8, 16  ;;  %p8100_p3 = scmp.lt.s32.totalorder %s5852_s8, %s8098_s10 }
0x170d   : > { %5597 = vmatmul.mubr.bf16.vlgmr.msra.gmra.mxu0 %v5233_v31  ;;  %5638 = vmatmul.mubr.bf16.vlgmr.msra.gmra.mxu1 %v5235_v56  ;;  %p8094_p6 = scmp.ne.s32.totalorder %s5852_s8, %s8093_s22  ;;  %p8101_p9 = scmp.lt.s32.totalorder %s8099_s20, %s8093_s22 }
0x170e   : > { %7258 = vmatpush3.bf16.msra.mxu0 %v7794_v38  ;;  %7273 = vmatprep.mubr.msk.bf16.mxu0 %vm8284_vm0, %v8283_v2 }
0x170f   : > { %7259 = vmatprep.subr.bf16.mxu0 %v8283_v2  ;;  %7281 = vmatprep.mubr.msk.f32.mxu1 %vm8284_vm0, %v8283_v2  ;;  %p8095_p10 = pnand %p8094_p6, %p9118_p8  ;;  %p8102_p11 = por %p8101_p9, %p8100_p3 }
0x1711   : > { %p8096_p7 = pneg %p8095_p10 }
0x1712   : > { %7260 = vmatpush3.bf16.msra.mxu0 %v7795_v24 }
0x1713   : > { %7261 = vmatprep.subr.bf16.mxu0 %v8283_v2  ;;  %p8103_p0 = pnand %p8102_p11, %p8096_p7 }
0x1716   : > { %7262 = vmatpush3.bf16.msra.mxu0 %v7796_v60 }
0x1717   : > { %7263 = vmatprep.subr.bf16.mxu0 %v8283_v2 }
0x171a   : > { %7264 = vmatpush3.bf16.msra.mxu0 %v7797_v57 }
0x171b   : > { %7265 = vmatprep.subr.bf16.mxu0 %v8283_v2 }
0x171e   : > { %7266 = vmatpush3.bf16.msra.mxu0 %v7798_v28 }
0x171f   : > { %7267 = vmatprep.subr.bf16.mxu0 %v8283_v2 }
0x1722   : > { %7268 = vmatpush3.bf16.msra.mxu0 %v7799_v40  ;;  %v6562_v40 = vld [vmem:[#allocation13 + $0xa] ss:$0 sm:$0xff] }
0x1723   : > { %7269 = vmatprep.subr.bf16.mxu0 %v8283_v2 }
0x1726   : > { %7270 = vmatpush3.bf16.msra.mxu0 %v7800_v41 }
0x1727   : > { %7271 = vmatprep.subr.bf16.mxu0 %v8283_v2 }
0x172a   : > { %7272 = vmatpush3.bf16.msra.mxu0 %v7801_v42  ;;  %v6563_v42 = vld [vmem:[#allocation14 + $0xa] ss:$0 sm:$0xff] }
0x172d   : > { %7274 = vmatmul.mubr.bf16.vlgmr.msra.gmra.mxu0 %v5237_v33 }
0x17cd   : > { %v7029_v45 = vpop.f32.mrf.mxu0  ;;  %v7051_v48 = vpop.f32.mrf.mxu1 }
0x17cf   : > { %v7030_v47 = vpop.f32.mrf.mxu0  ;;  %v7052_v32 = vpop.f32.mrf.mxu1 }
0x17d0   : > { %v7031_v51 = vadd.f32 %v7030_v47, %v7029_v45  ;;  %v7053_v59 = vadd.f32 %v7052_v32, %v7051_v48 }
0x17d1   : > { %v7032_v50 = vpop.f32.mrf.mxu0  ;;  %v7054_v53 = vpop.f32.mrf.mxu1 }
0x17d2   : > { %v5599_v54 = vadd.f32 %v7031_v51, %v6521_v49 }
0x17d3   : > { %v7033_v52 = vpop.f32.mrf.mxu0  ;;  %v7055_v61 = vpop.f32.mrf.mxu1 }
0x17d4   : > { %v7034_v58 = vadd.f32 %v7033_v52, %v7032_v50  ;;  %v5640_v0 = vadd.f32 %v7053_v59, %v5599_v54  ;;  %v7056_v63 = vadd.f32 %v7055_v61, %v7054_v53 }
0x17d6   : > { %v5602_v62 = vadd.f32 %v7034_v58, %v6521_v49 }
0x17d8   : > { %v5643_v5 = vadd.f32 %v7056_v63, %v5602_v62 }
0x17ed   : > { %v5680_v1 = vpop.f32.mrf.mxu0 }
0x17ee   : > { %v5681_v3 = vadd.f32 %v5680_v1, %v5640_v0 }
0x17ef   : > { %v7275_v30 = vpop.f32.mrf.mxu0 }
0x17f0   : > { %v5687_v4 = vmax.f32 %v5681_v3, 0.0 }
0x17f1   : > { %v5683_v9 = vpop.f32.mrf.mxu0 }
0x17f2   : > { %v5684_v6 = vadd.f32 %v5683_v9, %v5643_v5  ;;  %5689 = vadd.xlane.f32.xlu1 %v5687_v4 }
0x17f3   : > { %v7276_v34 = vpop.f32.mrf.mxu0 }
0x17f4   : > { %v5688_v55 = vmax.f32 %v5684_v6, 0.0 }
0x17f6   : > { %5691 = vadd.xlane.f32.xlu0 %v5688_v55 }
0x187b   : > { %v5690_v7 = vpop.xlane.xlu1 %5689 }
0x187c   : > { %v5693_v10 = vmul.f32 0.0078125, %v5690_v7 }
0x187e   : > { %v5695_v11 = vsub.f32 %v5687_v4, %v5693_v10 }
0x187f   : > { %v5692_v12 = vpop.xlane.xlu0 %5691 }
0x1880   : > { %v5694_v13 = vmul.f32 0.0078125, %v5692_v12  ;;  %v5697_v15 = vmul.f32 %v5695_v11, %v5695_v11 }
0x1882   : > { %v5696_v17 = vsub.f32 %v5688_v55, %v5694_v13  ;;  %5699 = vadd.xlane.f32.xlu1 %v5697_v15 }
0x1884   : > { %v5698_v18 = vmul.f32 %v5696_v17, %v5696_v17 }
0x1886   : > { %5701 = vadd.xlane.f32.xlu0 %v5698_v18 }
0x1893   : > { %3979 = vperm.xlu1 %7441, %v7840_v19  }
0x1897   : > { %5729 = vperm.xlu1 %7441, %v5726_v22  }
0x189c   : > { %2226 = vperm.xlu0 %7440, %v7841_v20  }
0x190b   : > { %v5700_v23 = vpop.xlane.xlu1 %5699 }
0x190c   : > { %v5703_v25 = vmul.f32 0.0078125, %v5700_v23 }
0x190e   : > { %v5705_v26 = vadd.f32 1e-05, %v5703_v25 }
0x190f   : > { %v5702_v16 = vpop.xlane.xlu0 %5701  ;;  %v3980_v21 = vpop.permute.xlu1 %3979 }
0x1910   : > { %v5704_v29 = vmul.f32 0.0078125, %v5702_v16  ;;  %v4049_v35 = vadd.f32 %v8830_v8, %v3980_v21  ;;  %7834 = vrsqrt.f32 %v5705_v26 }
0x1912   : > { %v5706_v36 = vadd.f32 1e-05, %v5704_v29  ;;  %v4052_v37 = vmul.f32 %v4049_v35, %v8910_v27 }
0x1914   : > { %7836 = vrsqrt.f32 %v5706_v36  ;;  %v4054_v38 = vmul.f32 %v8822_v39, %v4052_v37 }
0x1916   : > { %5807 = vst.msk [vmem:[%s689_s14] sm:$0x1] %vm5805_vm10, %v4054_v38 }
0x1917   : > { %v2227_v31 = vpop.permute.xlu0 %2226 }
0x1918   : > { %v2296_v56 = vadd.f32 %v8742_v46, %v2227_v31  ;;  %v5725_v46 = vld [vmem:[#allocation16 + $0x2] sm:$0x1] }
0x191a   : > { %v2299_v24 = vmul.f32 %v2296_v56, %v8910_v27 }
0x191c   : > { %v2301_v60 = vmul.f32 %v8735_v14, %v2299_v24 }
0x191d   : > { %v7835_v8 = vpop.eup %7834 }
0x191e   : > { %5806 = vst.msk [vmem:[%s683_s17] sm:$0x1] %vm5805_vm10, %v2301_v60  ;;  %v5709_v39 = vmul.f32 %v7835_v8, %v5695_v11 }
0x1920   : > { %v5716_v44 = vmul.f32 %v6562_v40, %v5709_v39 }
0x1921   : > { %v7837_v57 = vpop.eup %7836 }
0x1922   : > { %v5710_v28 = vmul.f32 %v7837_v57, %v5696_v17  ;;  %v5723_v14 = vadd.f32 %v6563_v42, %v5716_v44 }
0x1924   : > { %v5717_v41 = vmul.f32 %v6562_v40, %v5710_v28 }
0x1926   : > { %v5724_v43 = vadd.f32 %v6563_v42, %v5717_v41 }
0x1928   : > { %7278 = vmatpush3.xpose.msra.mxu1 %v5724_v43 }
0x1929   : > { %7279 = vmatprep.subr.mxu1 %v8283_v2 }
0x192c   : > { %7280 = vmatpush3.xpose.msra.mxu1 %v5723_v14 }
0x192f   : > { %7282 = vmatmul.mubr.f32.vlgmr.msra.gmra.mxu1 %v5725_v46 }
0x1930   : > { %8106 = shalt.err (!%p8103_p0)
}
0x1931   : > { %s8107_s28 = scalar_lea.hbm %s5849_s0, 16  ;;  %s8111_s6 = scalar_lea.hbm %s9053_s13, 32 }
0x1932   : > { %p8108_p2 = scmp.ne.s32.totalorder %s5849_s0, %s8107_s28  ;;  %p8112_p12 = scmp.lt.s32.totalorder %s5849_s0, %s9053_s13 }
0x1933   : > { %p8113_p13 = scmp.lt.s32.totalorder %s8111_s6, %s8107_s28 }
0x1934   : > { %p8109_p5 = pnand %p8108_p2, %p9118_p8 }
0x1935   : > { %p8114_p1 = por %p8113_p13, %p8112_p12 }
0x1936   : > { %p8110_p4 = pneg %p8109_p5 }
0x1938   : > { %p8115_p6 = pnand %p8114_p1, %p8110_p4 }
0x193a   : > { %8118 = shalt.err (!%p8115_p6)
}
0x193b   : > { %7321 = dma.vmem_to_hbm [thread:$0]  (%p9118_p8), %s5852_s8, 16, %s5849_s0, %s8937_s16  }
0x193c   : > { %s6574_s17 = sshll.u32 %s8393_s24, 8  ;;  %s5810_s1 = scalar_lea.sflag [#allocation5], %s8614_s30 }
0x193d   : > { %s8956_s22 = scalar_lea.hbm %s9052_s12, %s6574_s17  ;;  %s8119_s10 = scalar_lea.vmem %s8926_s7, 256 }
0x193e   : > { %p8120_p10 = scmp.ne.s32.totalorder %s8926_s7, %s8119_s10  ;;  %s8287_s20 = smov [#allocation20]  }
0x193f   : > { %s8123_s28 = sshll.u32 %s8287_s20, 4  ;;  %s8124_s28 = int_to_ptr.vmem [resolvable:$false] %s8123_s28 }
0x1940   : > { %p8121_p7 = pnand %p8120_p10, %p9118_p8  ;;  %s8125_s11 = scalar_lea.vmem %s8124_s28, 512 }
0x1941   : > { %p8126_p9 = scmp.lt.s32.totalorder %s8926_s7, %s8124_s28  ;;  %p8127_p11 = scmp.lt.s32.totalorder %s8125_s11, %s8119_s10 }
0x1942   : > { %p8122_p3 = pneg %p8121_p7 }
0x1943   : > { %p8128_p0 = por %p8127_p11, %p8126_p9 }
0x1945   : > { %p8129_p2 = pnand %p8128_p0, %p8122_p3 }
0x1947   : > { %8132 = shalt.err (!%p8129_p2)
}
0x1948   : > { %s8133_s24 = scalar_lea.hbm %s8956_s22, 256  ;;  %s8137_s29 = scalar_lea.hbm %s9052_s12, 512 }
0x1949   : > { %p8134_p5 = scmp.ne.s32.totalorder %s8956_s22, %s8133_s24  ;;  %p8138_p13 = scmp.lt.s32.totalorder %s8956_s22, %s9052_s12 }
0x194a   : > { %p8139_p1 = scmp.lt.s32.totalorder %s8137_s29, %s8133_s24 }
0x194b   : > { %p8135_p4 = pnand %p8134_p5, %p9118_p8 }
0x194c   : > { %p8140_p6 = por %p8139_p1, %p8138_p13 }
0x194d   : > { %p8136_p12 = pneg %p8135_p4 }
0x194f   : > { %p8141_p10 = pnand %p8140_p6, %p8136_p12 }
0x1951   : > { %8144 = shalt.err (!%p8141_p10)
}
0x1952   : > { %s8288_s27 = smov 128   ;;  %s8289_s17 = smov 8  }
0x1953   : > { %7320 = dma.vmem_to_hbm [thread:$0]  (%p9118_p8), %s8926_s7, 256, %s8956_s22, %s5810_s1, %s8288_s27, %s8288_s27, %s8289_s17  }
0x1954   : > { %s9119_s10 = sld [smem:[#allocation48_spill]]  ;;  %s5864_s28 = sshll.u32 %s689_s14, 4  ;;  %s5865_s28 = int_to_ptr.vmem [resolvable:$true] %s5864_s28 }
0x1955   : > { %s8145_s11 = scalar_lea.vmem %s5865_s28, 16  ;;  %s8290_s24 = smov [#allocation23]  }
0x1956   : > { %p8146_p7 = scmp.ne.s32.totalorder %s5865_s28, %s8145_s11  ;;  %s8149_s0 = sshll.u32 %s8290_s24, 4  ;;  %s8150_s0 = int_to_ptr.vmem [resolvable:$false] %s8149_s0 }
0x1957   : > { %s8151_s8 = scalar_lea.vmem %s8150_s0, 32  ;;  %p8152_p11 = scmp.lt.s32.totalorder %s5865_s28, %s8150_s0 }
0x1958   : > { %p8147_p3 = pnand %p8146_p7, %p9118_p8  ;;  %p8153_p0 = scmp.lt.s32.totalorder %s8151_s8, %s8145_s11 }
0x195a   : > { %s5862_s20 = scalar_lea.hbm %s9119_s10, %s8929_s5  ;;  %p8148_p9 = pneg %p8147_p3 }
0x195b   : > { %p8154_p2 = por %p8153_p0, %p8152_p11 }
0x195d   : > { %p8155_p5 = pnand %p8154_p2, %p8148_p9 }
0x195f   : > { %8158 = shalt.err (!%p8155_p5)
}
0x1960   : > { %s8159_s7 = scalar_lea.hbm %s5862_s20, 16  ;;  %s8163_s1 = scalar_lea.hbm %s9119_s10, 32 }
0x1961   : > { %p8160_p4 = scmp.ne.s32.totalorder %s5862_s20, %s8159_s7  ;;  %p8164_p1 = scmp.lt.s32.totalorder %s5862_s20, %s9119_s10 }
0x1962   : > { %p8165_p6 = scmp.lt.s32.totalorder %s8163_s1, %s8159_s7 }
0x1963   : > { %p8161_p12 = pnand %p8160_p4, %p9118_p8 }
0x1964   : > { %p8166_p10 = por %p8165_p6, %p8164_p1 }
0x1965   : > { %p8162_p13 = pneg %p8161_p12 }
0x1967   : > { %p8167_p7 = pnand %p8166_p10, %p8162_p13 }
0x1969   : > { %8170 = shalt.err (!%p8167_p7)
}
0x196a   : > { %7322 = dma.vmem_to_hbm [thread:$0]  (%p9118_p8), %s5865_s28, 16, %s5862_s20, %s8937_s16   ;;  %v5730_v2 = vpop.permute.xlu1 %5729 }
0x196b   : > { %s695_s25 = scalar_lea.vmem [#allocation24], %s8614_s30  ;;  %s9120_s23 = sld [smem:[#allocation49_spill]] }
0x196c   : > { %s5877_s27 = sshll.u32 %s695_s25, 4  ;;  %s5823_s24 = scalar_lea.sflag [#allocation25], %s8614_s30  ;;  %s5878_s27 = int_to_ptr.vmem [resolvable:$true] %s5877_s27 }
0x196d   : > { %s8171_s0 = scalar_lea.vmem %s5878_s27, 16  ;;  %s8291_s16 = smov [#allocation24]  }
0x196e   : > { %p8172_p3 = scmp.ne.s32.totalorder %s5878_s27, %s8171_s0  ;;  %s8175_s20 = sshll.u32 %s8291_s16, 4  ;;  %s8176_s20 = int_to_ptr.vmem [resolvable:$false] %s8175_s20 }
0x196f   : > { %s8177_s28 = scalar_lea.vmem %s8176_s20, 32  ;;  %p8178_p0 = scmp.lt.s32.totalorder %s5878_s27, %s8176_s20 }
0x1970   : > { %p8173_p9 = pnand %p8172_p3, %p9118_p8  ;;  %p8179_p2 = scmp.lt.s32.totalorder %s8177_s28, %s8171_s0 }
0x1971   : > { %s5875_s11 = scalar_lea.hbm %s9120_s23, %s8929_s5 }
0x1972   : > { %p8174_p11 = pneg %p8173_p9  ;;  %p8180_p5 = por %p8179_p2, %p8178_p0 }
0x1974   : > { %p8181_p4 = pnand %p8180_p5, %p8174_p11 }
0x19ef   : > { %v5798_v33 = vpop.f32.mrf.mxu1 }
0x19f0   : > { %v5799_v45 = vadd.f32 %v5798_v33, %v5730_v2 }
0x19f1   : > { %v7283_v47 = vpop.f32.mrf.mxu1 }
0x19f2   : > { %v5802_v48 = vmul.f32 %v5799_v45, %v8910_v27 }
0x19f4   : > { %5808 = vst.msk [vmem:[%s695_s25] sm:$0x1] %vm5805_vm10, %v5802_v48 }
0x19f5   : > { %8184 = shalt.err (!%p8181_p4)
}
0x19f6   : > { %s8185_s8 = scalar_lea.hbm %s5875_s11, 16  ;;  %s8189_s7 = scalar_lea.hbm %s9120_s23, 32 }
0x19f7   : > { %p8186_p12 = scmp.ne.s32.totalorder %s5875_s11, %s8185_s8  ;;  %p8190_p6 = scmp.lt.s32.totalorder %s5875_s11, %s9120_s23 }
0x19f8   : > { %p8191_p10 = scmp.lt.s32.totalorder %s8189_s7, %s8185_s8 }
0x19f9   : > { %p8187_p13 = pnand %p8186_p12, %p9118_p8 }
0x19fa   : > { %p8192_p7 = por %p8191_p10, %p8190_p6 }
0x19fb   : > { %p8188_p1 = pneg %p8187_p13 }
0x19fd   : > { %p8193_p3 = pnand %p8192_p7, %p8188_p1 }
0x19ff   : > { %8196 = shalt.err (!%p8193_p3)
}
0x1a00   : > { %7323 = dma.vmem_to_hbm [thread:$0]  (%p9118_p8), %s5878_s27, 16, %s5875_s11, %s5823_s24  }
0x1a01 PF: > { %s5889_s1 = sand.u32 1, %s8255_s18   ;;  %p9121_p9 = scmp.ne.s32.totalorder %s9100_s26, 0 }
0x1a02   : > { %p9122_p11 = scmp.ge.s32.totalorder %s8267_s21, 2  ;;  %s5890_s29 = scalar_lea.sflag [#allocation5], %s5889_s1 }
0x1a04   : > { %p7361_p0 = pnand %p9122_p11, %p9121_p9 }
0x1a06   : > { %p7362_p2 = pneg %p7361_p0 }
0x1a08   : > { %8242 = dma.done.wait (%p7362_p2), %s5890_s29, 256  }
0x1a09   : > { %8244 = vsyncadd (%p7362_p2), %s5890_s29, 4294967040  ;;  %s9123_s6 = sadd.s32 4294967294, %s8267_s21  }
0x1a0a   : > { %s5898_s25 = sand.u32 1, %s9123_s6  }
0x1a0b   : > { %s5899_s17 = scalar_lea.sflag [#allocation22], %s5898_s25 }
0x1a0c   : > { %8246 = dma.done.wait (%p7362_p2), %s5899_s17, 32  }
0x1a0d   : > { %8248 = vsyncadd (%p7362_p2), %s5899_s17, 4294967264  ;;  %s5915_s15 = scalar_lea.sflag [#allocation25], %s5889_s1 }
0x1a0e   : > { %8250 = dma.done.wait (%p7362_p2), %s5915_s15, 16  }
0x1a0f   : > { %8252 = vsyncadd (%p7362_p2), %s5915_s15, 4294967280  ;;  %s9124_s21 = sld [smem:[#allocation37_spill]]  ;;  %s9127_s18 = smov %s8259_s19 }
0x1a10   : > { %s9125_s27 = sld [smem:[#allocation36_spill]] }
0x1a11   : > { %s9126_s20 = sld [smem:[#allocation38_spill]] }
0x1a15   : > { %p42_p8 = scmp.ge.s32.totalorder %s9124_s21, 4  }
0x1a16   : > { %s9128_s19 = smov %s9125_s27 }
0x1a17   :  { %44 = sbr.rel (!%p42_p8) target bundleno = 27 (0x1b), region = 226 }
0x1a1c   :  { %5919 = vsyncpa [#allocation4], 1 }
0x1a1d   :  { %5921 = vsyncpa [#allocation4 + $0x1], 1 }
0x1a1e   :  { %5922 = vsyncpa [#allocation9], 1 }
0x1a1f   :  { %5924 = vsyncpa [#allocation9 + $0x1], 1 }
0x1a20   :  { %5925 = vsyncpa [#allocation12], 1 }
0x1a21   :  { %5926 = vsyncpa [#allocation15], 1 }
0x1a22   :  { %5927 = vsyncpa [#allocation18], 1 }
0x1a23   :  { %5928 = vsyncpa [#allocation5], 1 }
0x1a24   :  { %5930 = vsyncpa [#allocation5 + $0x1], 1 }
0x1a25   :  { %5931 = vsyncpa [#allocation22], 1 }
0x1a26   :  { %5933 = vsyncpa [#allocation22 + $0x1], 1 }
0x1a27   :  { %5934 = vsyncpa [#allocation25], 1 }
0x1a28   :  { %5936 = vsyncpa [#allocation25 + $0x1], 1 }
0x1a29   :  { %5937 = vsyncpa [#allocation6], 1 }
0x1a2a   :  { %5939 = vsyncpa [#allocation6 + $0x1], 1 }

</bundles_post_ra>
